<compile_context>
chip_gen: v7x
topology: tpu7x:2x2x1
jax: 0.10.0
libtpu: 0.0.40
codegen_flags: <defaults>
</compile_context>

<pallas_src>
from functools import partial

import jax
import jax.numpy as jnp
from jax import lax
from jax.experimental import pallas as pl
from jax.experimental.pallas import tpu as pltpu

EPS = 1e-5
LANE = 128


# ----------------------------------------------------------------------------
# Pallas kernels
# ----------------------------------------------------------------------------
def _gemm_bn_act_kernel(x_ref, w_ref, b_ref, o_ref, acc_ref, *, relu):
    """Tiled (M,K)@(K,N); f32 accumulator; epilogue = +shift [relu]; bf16 out."""
    @pl.when(pl.program_id(2) == 0)
    def _():
        acc_ref[...] = jnp.zeros_like(acc_ref)

    acc_ref[...] += jnp.dot(x_ref[...], w_ref[...],
                            preferred_element_type=jnp.float32)

    @pl.when(pl.program_id(2) == pl.num_programs(2) - 1)
    def _():
        y = acc_ref[...] + b_ref[...]
        if relu:
            y = jnp.maximum(y, 0.0)
        o_ref[...] = y.astype(o_ref.dtype)


def _gemm_bn_res_kernel(x_ref, w_ref, b_ref, r_ref, o_ref, acc_ref, *, relu):
    """Same as above, epilogue adds a bf16 residual tile before the ReLU."""
    @pl.when(pl.program_id(2) == 0)
    def _():
        acc_ref[...] = jnp.zeros_like(acc_ref)

    acc_ref[...] += jnp.dot(x_ref[...], w_ref[...],
                            preferred_element_type=jnp.float32)

    @pl.when(pl.program_id(2) == pl.num_programs(2) - 1)
    def _():
        y = acc_ref[...] + b_ref[...] + r_ref[...].astype(jnp.float32)
        if relu:
            y = jnp.maximum(y, 0.0)
        o_ref[...] = y.astype(o_ref.dtype)


def _attnpool_attend_kernel(q_ref, kv_ref, o_ref, *, num_heads, embed_dim):
    """Per-batch softmax(q0 k^T / sqrt(Dh)) v for the single token-0 query."""
    E = embed_dim
    Dh = E // num_heads
    q = q_ref[0].astype(jnp.float32) * (float(Dh) ** -0.5)   # (1, E)
    kv = kv_ref[0].astype(jnp.float32)                       # (L, 2E)
    k = kv[:, :E]
    v = kv[:, E:2 * E]

    outs = []
    for h in range(num_heads):                               # static unroll
        sl = slice(h * Dh, (h + 1) * Dh)
        qh = q[:, sl]                                        # (1, Dh)
        kh = k[:, sl]                                        # (L, Dh)
        vh = v[:, sl]                                        # (L, Dh)
        # contract on Dh without materializing a transpose
        s = lax.dot_general(qh, kh, (((1,), (1,)), ((), ())),
                            preferred_element_type=jnp.float32)   # (1, L)
        s = s - jnp.max(s, axis=-1, keepdims=True)
        p = jnp.exp(s)
        p = p / jnp.sum(p, axis=-1, keepdims=True)
        outs.append(jnp.dot(p, vh, preferred_element_type=jnp.float32))
    o_ref[0] = jnp.concatenate(outs, axis=-1).astype(o_ref.dtype)


# ----------------------------------------------------------------------------
# Tiling helpers + GEMM wrapper
# ----------------------------------------------------------------------------
def _round_up(x, m):
    return (x + m - 1) // m * m


def _pick_tile_m(M):
    """Prefer tm in {512,256,128}; pad M up to the tile (<=25% extra pad)."""
    m128 = _round_up(M, 128)
    tm = 128
    for t in (256, 512):
        if _round_up(M, t) <= max(m128, (m128 * 5) // 4):
            tm = t
    return tm, _round_up(M, tm)


def _pick_tile_div(D):
    """Largest of {512,256,128} dividing D, else the full extent (D<128 etc)."""
    for t in (512, 256, 128):
        if D % t == 0:
            return t
    return D


def _gemm_bias_act(x, w, bias, *, relu, residual=None, out_dtype=jnp.bfloat16):
    """out = act((x @ w) + bias [+ residual]).  x bf16 (M,K); w bf16 prepped
    (Kp,Np) with Np%128==0; bias f32 (1,Np); residual bf16 (M,Np)."""
    M, K = x.shape
    Kp, Np = w.shape
    assert Kp >= K and Np % 128 == 0

    tm, Mp = _pick_tile_m(M)
    tn = _pick_tile_div(Np)
    tk = _pick_tile_div(Kp)
    # v7x: make sure both TensorCores get work on the parallel axes.
    if (Mp // tm) * (Np // tn) < 2:
        if tn > 128:
            tn //= 2
        elif tm > 128:
            tm //= 2

    xp = x.astype(jnp.bfloat16)
    if Mp != M or Kp != K:
        xp = jnp.pad(xp, ((0, Mp - M), (0, Kp - K)))

    in_specs = [
        pl.BlockSpec((tm, tk), lambda i, j, k: (i, k)),
        pl.BlockSpec((tk, tn), lambda i, j, k: (k, j)),
        pl.BlockSpec((1, tn), lambda i, j, k: (0, j)),
    ]
    args = [xp, w, bias]
    out_item = jnp.dtype(out_dtype).itemsize
    bytes_accessed = Mp * Kp * 2 + Kp * Np * 2 + Mp * Np * out_item + Np * 4

    if residual is None:
        kernel = partial(_gemm_bn_act_kernel, relu=relu)
    else:
        rp = residual.astype(jnp.bfloat16)
        if Mp != M:
            rp = jnp.pad(rp, ((0, Mp - M), (0, 0)))
        in_specs.append(pl.BlockSpec((tm, tn), lambda i, j, k: (i, j)))
        args.append(rp)
        bytes_accessed += Mp * Np * 2
        kernel = partial(_gemm_bn_res_kernel, relu=relu)

    # VMEM budget = double-buffered tiles + f32 accumulator (+ headroom).
    vmem = (2 * (tm * tk + tk * tn) * 2 + 2 * tn * 4
            + 2 * tm * tn * out_item + tm * tn * 4)
    if residual is not None:
        vmem += 2 * tm * tn * 2
    vmem_limit = min(2 * vmem + (4 << 20), 64 << 20)

    out = pl.pallas_call(
        kernel,
        out_shape=jax.ShapeDtypeStruct((Mp, Np), out_dtype),
        grid_spec=pltpu.PrefetchScalarGridSpec(
            num_scalar_prefetch=0,
            grid=(Mp // tm, Np // tn, Kp // tk),
            in_specs=in_specs,
            out_specs=pl.BlockSpec((tm, tn), lambda i, j, k: (i, j)),
            scratch_shapes=[pltpu.VMEM((tm, tn), jnp.float32)],
        ),
        compiler_params=pltpu.CompilerParams(
            dimension_semantics=("parallel", "parallel", "arbitrary"),
            vmem_limit_bytes=vmem_limit,
        ),
        cost_estimate=pl.CostEstimate(
            flops=2 * Mp * Kp * Np,
            transcendentals=0,
            bytes_accessed=bytes_accessed,
        ),
    )(*args)
    return out if Mp == M else out[:M]


# ----------------------------------------------------------------------------
# Plain-JAX glue (im2col in NHWC bf16, avgpool) and one-time parameter prep
# ----------------------------------------------------------------------------
def _im2col_nhwc(x, kh, kw, stride, pad):
    N, H, W, C = x.shape
    xp = jnp.pad(x, ((0, 0), (pad, pad), (pad, pad), (0, 0)))
    Ho = (H + 2 * pad - kh) // stride + 1
    Wo = (W + 2 * pad - kw) // stride + 1
    cols = []
    for i in range(kh):
        for j in range(kw):
            cols.append(xp[:, i:i + Ho * stride:stride,
                           j:j + Wo * stride:stride, :])
    patches = jnp.concatenate(cols, axis=-1)            # (N, Ho, Wo, kh*kw*C)
    return patches.reshape(N * Ho * Wo, kh * kw * C), Ho, Wo


def _bn_fold(bn):
    scale = bn['gamma'] / jnp.sqrt(bn['var'] + EPS)
    shift = bn['beta'] - bn['mean'] * scale
    return scale, shift


def _prep_conv(w, bn, cin_in, *, stride=1, pad=0):
    """Fold BN into columns, pad K/N to lane-friendly sizes, cast bf16."""
    Cout, Cin, kh, kw = w.shape
    scale, shift = _bn_fold(bn)
    Np = _round_up(Cout, LANE)
    w = jnp.pad(w, ((0, Np - Cout), (0, cin_in - Cin), (0, 0), (0, 0)))
    scale = jnp.pad(scale, (0, Np - Cout))
    shift = jnp.pad(shift, (0, Np - Cout))
    K = kh * kw * cin_in
    w2d = w.transpose(2, 3, 1, 0).reshape(K, Np) * scale[None, :]
    if K % LANE == 0:
        Kp = K
    elif K < LANE:
        Kp = _round_up(K, 16)          # e.g. conv1: K=27 -> 32, tk = full K
    else:
        Kp = _round_up(K, LANE)
    if Kp != K:
        w2d = jnp.pad(w2d, ((0, Kp - K), (0, 0)))
    return dict(w=w2d.astype(jnp.bfloat16),
                b=shift.reshape(1, Np).astype(jnp.float32),
                kh=kh, kw=kw, stride=stride, pad=pad,
                cin=cin_in, cout_p=Np)


def _prep_attnpool(ap):
    E = ap['q_w'].shape[0]
    O = ap['c_w'].shape[0]
    Ep = _round_up(E, LANE)
    E2p = _round_up(2 * E, LANE)
    Op = _round_up(O, LANE)
    wq = jnp.pad(ap['q_w'].T, ((0, 0), (0, Ep - E)))
    wkv = jnp.pad(jnp.concatenate([ap['k_w'].T, ap['v_w'].T], axis=1),
                  ((0, 0), (0, E2p - 2 * E)))
    wc = jnp.pad(ap['c_w'].T, ((0, 0), (0, Op - O)))
    bq = jnp.pad(ap['q_b'], (0, Ep - E)).reshape(1, Ep)
    bkv = jnp.pad(jnp.concatenate([ap['k_b'], ap['v_b']]),
                  (0, E2p - 2 * E)).reshape(1, E2p)
    bc = jnp.pad(ap['c_b'], (0, Op - O)).reshape(1, Op)
    return dict(E=E, O=O,
                pos=ap['pos'].astype(jnp.float32),
                wq=wq.astype(jnp.bfloat16), bq=bq.astype(jnp.float32),
                wkv=wkv.astype(jnp.bfloat16), bkv=bkv.astype(jnp.float32),
                wc=wc.astype(jnp.bfloat16), bc=bc.astype(jnp.float32))


def prepare_params(p):
    """One-time weight preparation (hoisted out of the forward pass)."""
    q = {}
    q['conv1'] = _prep_conv(p['conv1_w'], p['bn1'], 3, stride=2, pad=1)
    c = q['conv1']['cout_p']
    q['conv2'] = _prep_conv(p['conv2_w'], p['bn2'], c, stride=1, pad=1)
    c = q['conv2']['cout_p']
    q['conv3'] = _prep_conv(p['conv3_w'], p['bn3'], c, stride=1, pad=1)
    c = q['conv3']['cout_p']

    layers_q = []
    for layer in p['layers']:
        lq = []
        for blk in layer:
            bq = {'stride': blk['stride']}
            bq['conv1'] = _prep_conv(blk['conv1_w'], blk['bn1'], c)
            c1 = bq['conv1']['cout_p']
            bq['conv2'] = _prep_conv(blk['conv2_w'], blk['bn2'], c1,
                                     stride=1, pad=1)
            c2 = bq['conv2']['cout_p']
            bq['conv3'] = _prep_conv(blk['conv3_w'], blk['bn3'], c2)
            if 'down_conv_w' in blk:
                bq['down'] = _prep_conv(blk['down_conv_w'], blk['down_bn'], c)
            c = bq['conv3']['cout_p']
            lq.append(bq)
        layers_q.append(lq)
    q['layers'] = layers_q
    q['attnpool'] = _prep_attnpool(p['attnpool'])
    return q


def conv_bn(x, cv, *, relu=True, residual=None, out_dtype=jnp.bfloat16):
    """x: NHWC bf16 (channel-padded).  cv: prepped conv dict.  Returns NHWC."""
    kh, kw, stride, pad = cv['kh'], cv['kw'], cv['stride'], cv['pad']
    N, H, W, C = x.shape
    if kh == 1 and kw == 1 and stride == 1 and pad == 0:
        Ho, Wo = H, W
        patches = x.reshape(N * H * W, C)
    else:
        patches, Ho, Wo = _im2col_nhwc(x, kh, kw, stride, pad)
    res2d = None
    if residual is not None:
        res2d = residual.reshape(N * Ho * Wo, residual.shape[-1])
    out2d = _gemm_bias_act(patches, cv['w'], cv['b'], relu=relu,
                           residual=res2d, out_dtype=out_dtype)
    return out2d.reshape(N, Ho, Wo, cv['cout_p'])


def avg_pool(x, k):
    if k == 1:
        return x
    N, H, W, C = x.shape
    x32 = x.astype(jnp.float32).reshape(N, H // k, k, W // k, k, C)
    return x32.mean(axis=(2, 4)).astype(x.dtype)


# ----------------------------------------------------------------------------
# Model forward
# ----------------------------------------------------------------------------
def bottleneck_forward(x, blk):
    stride = blk['stride']
    out = conv_bn(x, blk['conv1'], relu=True)                    # 1x1
    out = conv_bn(out, blk['conv2'], relu=True)                  # 3x3 pad 1
    if stride > 1:
        out = avg_pool(out, stride)
    if 'down' in blk:
        identity = avg_pool(x, stride) if stride > 1 else x      # AvgPool2d(1)==id
        identity = conv_bn(identity, blk['down'], relu=False)
    else:
        identity = x
    # conv3 + bn3 + residual add + relu fused in one tiled Pallas GEMM
    return conv_bn(out, blk['conv3'], relu=True, residual=identity)


def attnpool_forward(x, ap, num_heads):
    E, O = ap['E'], ap['O']
    N, H, W, _ = x.shape
    x = x[..., :E]                                               # drop channel pad
    xs = x.reshape(N, H * W, E).astype(jnp.float32)
    xs = jnp.concatenate([xs.mean(axis=1, keepdims=True), xs], axis=1)  # (N,L,E)
    xs = (xs + ap['pos'][None, :, :]).astype(jnp.bfloat16)
    L = xs.shape[1]

    # Batched projections through the tiled GEMM kernel (real M for the MXU).
    q0 = _gemm_bias_act(xs[:, 0, :], ap['wq'], ap['bq'], relu=False)[:, :E]
    kv = _gemm_bias_act(xs.reshape(N * L, E), ap['wkv'], ap['bkv'],
                        relu=False)[:, :2 * E]
    kv = kv.reshape(N, L, 2 * E)

    attn = pl.pallas_call(
        partial(_attnpool_attend_kernel, num_heads=num_heads, embed_dim=E),
        out_shape=jax.ShapeDtypeStruct((N, 1, E), jnp.bfloat16),
        grid=(N,),
        in_specs=[
            pl.BlockSpec((1, 1, E), lambda b: (b, 0, 0)),
            pl.BlockSpec((1, L, 2 * E), lambda b: (b, 0, 0)),
        ],
        out_specs=pl.BlockSpec((1, 1, E), lambda b: (b, 0, 0)),
        compiler_params=pltpu.CompilerParams(
            dimension_semantics=("parallel",),
            vmem_limit_bytes=16 * 1024 * 1024,
        ),
    )(q0.reshape(N, 1, E), kv)

    out = _gemm_bias_act(attn.reshape(N, E), ap['wc'], ap['bc'],
                         relu=False, out_dtype=jnp.float32)
    return out[:, :O]


def modified_resnet_forward(x, p, heads):
    # bf16 activation path (f32 accumulation in the kernels).
    x = x.astype(jnp.bfloat16)
    x = x.transpose(0, 2, 3, 1)              # NCHW -> NHWC once
    # stem
    x = conv_bn(x, p['conv1'], relu=True)
    x = conv_bn(x, p['conv2'], relu=True)
    x = conv_bn(x, p['conv3'], relu=True)
    x = avg_pool(x, 2)
    # residual layers
    for layer in p['layers']:
        for blk in layer:
            x = bottleneck_forward(x, blk)
    # attention pooling
    return attnpool_forward(x, p['attnpool'], heads)


# ----------------------------------------------------------------------------
# Deterministic synthetic parameters (PyTorch layouts)
# ----------------------------------------------------------------------------
def make_params(layers, output_dim, heads, input_resolution, width, key):
    keys = iter(jax.random.split(key, 512))

    def nrm(shape, s=0.05):
        return jax.random.normal(next(keys), shape, dtype=jnp.float32) * s

    def bn(c):
        return dict(gamma=1.0 + nrm((c,), 0.1), beta=nrm((c,), 0.1),
                    mean=nrm((c,), 0.1), var=1.0 + jnp.abs(nrm((c,), 0.1)))

    p = {}
    w2 = width // 2
    p['conv1_w'] = nrm((w2, 3, 3, 3));      p['bn1'] = bn(w2)
    p['conv2_w'] = nrm((w2, w2, 3, 3));     p['bn2'] = bn(w2)
    p['conv3_w'] = nrm((width, w2, 3, 3));  p['bn3'] = bn(width)

    inplanes = width

    def make_layer(planes, blocks, stride):
        nonlocal inplanes
        layer = []
        strides = [stride] + [1] * (blocks - 1)
        for s in strides:
            blk = dict(stride=s)
            blk['conv1_w'] = nrm((planes, inplanes, 1, 1));     blk['bn1'] = bn(planes)
            blk['conv2_w'] = nrm((planes, planes, 3, 3));       blk['bn2'] = bn(planes)
            blk['conv3_w'] = nrm((planes * 4, planes, 1, 1));   blk['bn3'] = bn(planes * 4)
            if s > 1 or inplanes != planes * 4:
                blk['down_conv_w'] = nrm((planes * 4, inplanes, 1, 1))
                blk['down_bn'] = bn(planes * 4)
            layer.append(blk)
            inplanes = planes * 4
        return layer

    p['layers'] = [
        make_layer(width, layers[0], 1),
        make_layer(width * 2, layers[1], 2),
        make_layer(width * 4, layers[2], 2),
        make_layer(width * 8, layers[3], 2),
    ]

    embed_dim = width * 32
    spacial = input_resolution // 32
    ap = {}
    ap['pos'] = nrm((spacial * spacial + 1, embed_dim), 1.0 / (embed_dim ** 0.5))
    ap['q_w'] = nrm((embed_dim, embed_dim)); ap['q_b'] = nrm((embed_dim,))
    ap['k_w'] = nrm((embed_dim, embed_dim)); ap['k_b'] = nrm((embed_dim,))
    ap['v_w'] = nrm((embed_dim, embed_dim)); ap['v_b'] = nrm((embed_dim,))
    ap['c_w'] = nrm((output_dim, embed_dim)); ap['c_b'] = nrm((output_dim,))
    p['attnpool'] = ap
    return p


# ----------------------------------------------------------------------------
if __name__ == "__main__":
    layers = (1, 1, 1, 1)
    output_dim = 64
    heads = 4
    input_resolution = 32   # -> attnpool spacial_dim = 1, embed_dim = width*32
    width = 8

    key = jax.random.PRNGKey(0)
    pkey, xkey = jax.random.split(key)
    params = make_params(layers, output_dim, heads, input_resolution, width, pkey)
    prepped = prepare_params(params)          # one-time weight prep (hoisted)

    x = jax.random.normal(xkey, (2, 3, input_resolution, input_resolution),
                          dtype=jnp.float32)

    fwd = jax.jit(lambda inp: modified_resnet_forward(inp, prepped, heads))
    out = jax.block_until_ready(fwd(x))

    assert out.shape == (2, output_dim), out.shape
    assert bool(jnp.all(jnp.isfinite(out)))
    print("KERNEL_OK")
</pallas_src>

<mosaic_0001>
module attributes {stable_mosaic.version = 11 : i64} {
  func.func @_gemm_bn_act_kernel(%arg0: i32, %arg1: i32, %arg2: i32, %arg3: memref<256x32xbf16, #tpu.memory_space<vmem>>, %arg4: memref<32x128xbf16, #tpu.memory_space<vmem>>, %arg5: memref<1x128xf32, #tpu.memory_space<vmem>>, %arg6: memref<256x128xbf16, #tpu.memory_space<vmem>>, %arg7: memref<256x128xf32, #tpu.memory_space<vmem>>) attributes {dimension_semantics = [#tpu.dimension_semantics<parallel>, #tpu.dimension_semantics<parallel>, #tpu.dimension_semantics<arbitrary>], iteration_bounds = array<i64: 2, 1, 1>, scalar_prefetch = 0 : i64, scratch_operands = 1 : i64, tpu.core_type = #tpu.core_type<tc>, window_params = [{transform_indices = @transform_0, window_bounds = array<i64: 256, 32>}, {transform_indices = @transform_1, window_bounds = array<i64: 32, 128>}, {transform_indices = @transform_2, window_bounds = array<i64: 1, 128>}, {transform_indices = @transform_3, window_bounds = array<i64: 256, 128>}]} {
    %c0_i32 = arith.constant 0 : i32
    %0 = arith.cmpi eq, %arg2, %c0_i32 : i32
    %1 = arith.extui %0 : i1 to i32
    %c0_i32_0 = arith.constant 0 : i32
    %2 = arith.cmpi ne, %1, %c0_i32_0 : i32
    scf.if %2 {
      %cst_10 = arith.constant 0.000000e+00 : f32
      %12 = vector.broadcast %cst_10 : f32 to vector<256x128xf32>
      %c0_11 = arith.constant 0 : index
      %c0_12 = arith.constant 0 : index
      %13 = vector.load %arg7[%c0_11, %c0_12] : memref<256x128xf32, #tpu.memory_space<vmem>>, vector<256x128xf32>
      tpu.vector_store %arg7[%c0_11, %c0_12], %12 {strides = array<i32>} : memref<256x128xf32, #tpu.memory_space<vmem>>, vector<256x128xf32>,
    } else {
    }
    %c0 = arith.constant 0 : index
    %c0_1 = arith.constant 0 : index
    %3 = vector.load %arg7[%c0, %c0_1] : memref<256x128xf32, #tpu.memory_space<vmem>>, vector<256x128xf32>
    %c0_2 = arith.constant 0 : index
    %c0_3 = arith.constant 0 : index
    %4 = vector.load %arg3[%c0_2, %c0_3] : memref<256x32xbf16, #tpu.memory_space<vmem>>, vector<256x32xbf16>
    %c0_4 = arith.constant 0 : index
    %c0_5 = arith.constant 0 : index
    %5 = vector.load %arg4[%c0_4, %c0_5] : memref<32x128xbf16, #tpu.memory_space<vmem>>, vector<32x128xbf16>
    %cst = arith.constant dense<0.000000e+00> : vector<256x128xf32>
    %6 = tpu.matmul %4, %5, %cst {dimension_numbers = #tpu.dot_dimension_numbers<[1], [0], [0], [1], [0, 0, 1, 1], [], []>} : vector<256x32xbf16>, vector<32x128xbf16>, vector<256x128xf32> -> vector<256x128xf32>
    %7 = arith.addf %3, %6 : vector<256x128xf32>
    %c0_6 = arith.constant 0 : index
    %c0_7 = arith.constant 0 : index
    %8 = vector.load %arg7[%c0_6, %c0_7] : memref<256x128xf32, #tpu.memory_space<vmem>>, vector<256x128xf32>
    tpu.vector_store %arg7[%c0_6, %c0_7], %7 {strides = array<i32>} : memref<256x128xf32, #tpu.memory_space<vmem>>, vector<256x128xf32>,
    %c0_i32_8 = arith.constant 0 : i32
    %9 = arith.cmpi eq, %arg2, %c0_i32_8 : i32
    %10 = arith.extui %9 : i1 to i32
    %c0_i32_9 = arith.constant 0 : i32
    %11 = arith.cmpi ne, %10, %c0_i32_9 : i32
    scf.if %11 {
      %c0_10 = arith.constant 0 : index
      %c0_11 = arith.constant 0 : index
      %12 = vector.load %arg7[%c0_10, %c0_11] : memref<256x128xf32, #tpu.memory_space<vmem>>, vector<256x128xf32>
      %c0_12 = arith.constant 0 : index
      %c0_13 = arith.constant 0 : index
      %13 = vector.load %arg5[%c0_12, %c0_13] : memref<1x128xf32, #tpu.memory_space<vmem>>, vector<1x128xf32>
      %14 = vector.broadcast %13 : vector<1x128xf32> to vector<256x128xf32>
      %15 = arith.addf %12, %14 : vector<256x128xf32>
      %cst_14 = arith.constant 0.000000e+00 : f32
      %16 = vector.broadcast %cst_14 : f32 to vector<256x128xf32>
      %17 = arith.maximumf %15, %16 : vector<256x128xf32>
      %18 = arith.truncf %17 : vector<256x128xf32> to vector<256x128xbf16>
      %c0_15 = arith.constant 0 : index
      %c0_16 = arith.constant 0 : index
      %19 = vector.load %arg6[%c0_15, %c0_16] : memref<256x128xbf16, #tpu.memory_space<vmem>>, vector<256x128xbf16>
      tpu.vector_store %arg6[%c0_15, %c0_16], %18 {strides = array<i32>} : memref<256x128xbf16, #tpu.memory_space<vmem>>, vector<256x128xbf16>,
    } else {
    }
    return
  }
  func.func @transform_0(%arg0: i32, %arg1: i32, %arg2: i32) -> (i32, i32) {
    %c0_i32 = arith.constant 0 : i32
    return %arg0, %arg2 : i32, i32
  }
  func.func @transform_1(%arg0: i32, %arg1: i32, %arg2: i32) -> (i32, i32) {
    %c0_i32 = arith.constant 0 : i32
    return %arg2, %arg1 : i32, i32
  }
  func.func @transform_2(%arg0: i32, %arg1: i32, %arg2: i32) -> (i32, i32) {
    %c0_i32 = arith.constant 0 : i32
    %c0_i32_0 = arith.constant 0 : i32
    return %c0_i32, %arg1 : i32, i32
  }
  func.func @transform_3(%arg0: i32, %arg1: i32, %arg2: i32) -> (i32, i32) {
    %c0_i32 = arith.constant 0 : i32
    return %arg0, %arg1 : i32, i32
  }
}

module attributes {stable_mosaic.version = 11 : i64} {
  func.func @_gemm_bn_act_kernel(%arg0: i32, %arg1: i32, %arg2: i32, %arg3: memref<256x128xbf16, #tpu.memory_space<vmem>>, %arg4: memref<128x128xbf16, #tpu.memory_space<vmem>>, %arg5: memref<1x128xf32, #tpu.memory_space<vmem>>, %arg6: memref<256x128xbf16, #tpu.memory_space<vmem>>, %arg7: memref<256x128xf32, #tpu.memory_space<vmem>>) attributes {dimension_semantics = [#tpu.dimension_semantics<parallel>, #tpu.dimension_semantics<parallel>, #tpu.dimension_semantics<arbitrary>], iteration_bounds = array<i64: 2, 1, 9>, scalar_prefetch = 0 : i64, scratch_operands = 1 : i64, tpu.core_type = #tpu.core_type<tc>, window_params = [{transform_indices = @transform_0, window_bounds = array<i64: 256, 128>}, {transform_indices = @transform_1, window_bounds = array<i64: 128, 128>}, {transform_indices = @transform_2, window_bounds = array<i64: 1, 128>}, {transform_indices = @transform_3, window_bounds = array<i64: 256, 128>}]} {
    %c0_i32 = arith.constant 0 : i32
    %0 = arith.cmpi eq, %arg2, %c0_i32 : i32
    %1 = arith.extui %0 : i1 to i32
    %c0_i32_0 = arith.constant 0 : i32
    %2 = arith.cmpi ne, %1, %c0_i32_0 : i32
    scf.if %2 {
      %cst_9 = arith.constant 0.000000e+00 : f32
      %12 = vector.broadcast %cst_9 : f32 to vector<256x128xf32>
      %c0_10 = arith.constant 0 : index
      %c0_11 = arith.constant 0 : index
      %13 = vector.load %arg7[%c0_10, %c0_11] : memref<256x128xf32, #tpu.memory_space<vmem>>, vector<256x128xf32>
      tpu.vector_store %arg7[%c0_10, %c0_11], %12 {strides = array<i32>} : memref<256x128xf32, #tpu.memory_space<vmem>>, vector<256x128xf32>,
    } else {
    }
    %c0 = arith.constant 0 : index
    %c0_1 = arith.constant 0 : index
    %3 = vector.load %arg7[%c0, %c0_1] : memref<256x128xf32, #tpu.memory_space<vmem>>, vector<256x128xf32>
    %c0_2 = arith.constant 0 : index
    %c0_3 = arith.constant 0 : index
    %4 = vector.load %arg3[%c0_2, %c0_3] : memref<256x128xbf16, #tpu.memory_space<vmem>>, vector<256x128xbf16>
    %c0_4 = arith.constant 0 : index
    %c0_5 = arith.constant 0 : index
    %5 = vector.load %arg4[%c0_4, %c0_5] : memref<128x128xbf16, #tpu.memory_space<vmem>>, vector<128x128xbf16>
    %cst = arith.constant dense<0.000000e+00> : vector<256x128xf32>
    %6 = tpu.matmul %4, %5, %cst {dimension_numbers = #tpu.dot_dimension_numbers<[1], [0], [0], [1], [0, 0, 1, 1], [], []>} : vector<256x128xbf16>, vector<128x128xbf16>, vector<256x128xf32> -> vector<256x128xf32>
    %7 = arith.addf %3, %6 : vector<256x128xf32>
    %c0_6 = arith.constant 0 : index
    %c0_7 = arith.constant 0 : index
    %8 = vector.load %arg7[%c0_6, %c0_7] : memref<256x128xf32, #tpu.memory_space<vmem>>, vector<256x128xf32>
    tpu.vector_store %arg7[%c0_6, %c0_7], %7 {strides = array<i32>} : memref<256x128xf32, #tpu.memory_space<vmem>>, vector<256x128xf32>,
    %c8_i32 = arith.constant 8 : i32
    %9 = arith.cmpi eq, %arg2, %c8_i32 : i32
    %10 = arith.extui %9 : i1 to i32
    %c0_i32_8 = arith.constant 0 : i32
    %11 = arith.cmpi ne, %10, %c0_i32_8 : i32
    scf.if %11 {
      %c0_9 = arith.constant 0 : index
      %c0_10 = arith.constant 0 : index
      %12 = vector.load %arg7[%c0_9, %c0_10] : memref<256x128xf32, #tpu.memory_space<vmem>>, vector<256x128xf32>
      %c0_11 = arith.constant 0 : index
      %c0_12 = arith.constant 0 : index
      %13 = vector.load %arg5[%c0_11, %c0_12] : memref<1x128xf32, #tpu.memory_space<vmem>>, vector<1x128xf32>
      %14 = vector.broadcast %13 : vector<1x128xf32> to vector<256x128xf32>
      %15 = arith.addf %12, %14 : vector<256x128xf32>
      %cst_13 = arith.constant 0.000000e+00 : f32
      %16 = vector.broadcast %cst_13 : f32 to vector<256x128xf32>
      %17 = arith.maximumf %15, %16 : vector<256x128xf32>
      %18 = arith.truncf %17 : vector<256x128xf32> to vector<256x128xbf16>
      %c0_14 = arith.constant 0 : index
      %c0_15 = arith.constant 0 : index
      %19 = vector.load %arg6[%c0_14, %c0_15] : memref<256x128xbf16, #tpu.memory_space<vmem>>, vector<256x128xbf16>
      tpu.vector_store %arg6[%c0_14, %c0_15], %18 {strides = array<i32>} : memref<256x128xbf16, #tpu.memory_space<vmem>>, vector<256x128xbf16>,
    } else {
    }
    return
  }
  func.func @transform_0(%arg0: i32, %arg1: i32, %arg2: i32) -> (i32, i32) {
    %c0_i32 = arith.constant 0 : i32
    return %arg0, %arg2 : i32, i32
  }
  func.func @transform_1(%arg0: i32, %arg1: i32, %arg2: i32) -> (i32, i32) {
    %c0_i32 = arith.constant 0 : i32
    return %arg2, %arg1 : i32, i32
  }
  func.func @transform_2(%arg0: i32, %arg1: i32, %arg2: i32) -> (i32, i32) {
    %c0_i32 = arith.constant 0 : i32
    %c0_i32_0 = arith.constant 0 : i32
    return %c0_i32, %arg1 : i32, i32
  }
  func.func @transform_3(%arg0: i32, %arg1: i32, %arg2: i32) -> (i32, i32) {
    %c0_i32 = arith.constant 0 : i32
    return %arg0, %arg1 : i32, i32
  }
}

module attributes {stable_mosaic.version = 11 : i64} {
  func.func @_gemm_bn_act_kernel(%arg0: i32, %arg1: i32, %arg2: i32, %arg3: memref<128x128xbf16, #tpu.memory_space<vmem>>, %arg4: memref<128x128xbf16, #tpu.memory_space<vmem>>, %arg5: memref<1x128xf32, #tpu.memory_space<vmem>>, %arg6: memref<128x128xbf16, #tpu.memory_space<vmem>>, %arg7: memref<128x128xf32, #tpu.memory_space<vmem>>) attributes {dimension_semantics = [#tpu.dimension_semantics<parallel>, #tpu.dimension_semantics<parallel>, #tpu.dimension_semantics<arbitrary>], iteration_bounds = array<i64: 1, 1, 1>, scalar_prefetch = 0 : i64, scratch_operands = 1 : i64, tpu.core_type = #tpu.core_type<tc>, window_params = [{transform_indices = @transform_0, window_bounds = array<i64: 128, 128>}, {transform_indices = @transform_1, window_bounds = array<i64: 128, 128>}, {transform_indices = @transform_2, window_bounds = array<i64: 1, 128>}, {transform_indices = @transform_3, window_bounds = array<i64: 128, 128>}]} {
    %c0_i32 = arith.constant 0 : i32
    %0 = arith.cmpi eq, %arg2, %c0_i32 : i32
    %1 = arith.extui %0 : i1 to i32
    %c0_i32_0 = arith.constant 0 : i32
    %2 = arith.cmpi ne, %1, %c0_i32_0 : i32
    scf.if %2 {
      %cst_10 = arith.constant 0.000000e+00 : f32
      %12 = vector.broadcast %cst_10 : f32 to vector<128x128xf32>
      %c0_11 = arith.constant 0 : index
      %c0_12 = arith.constant 0 : index
      %13 = vector.load %arg7[%c0_11, %c0_12] : memref<128x128xf32, #tpu.memory_space<vmem>>, vector<128x128xf32>
      tpu.vector_store %arg7[%c0_11, %c0_12], %12 {strides = array<i32>} : memref<128x128xf32, #tpu.memory_space<vmem>>, vector<128x128xf32>,
    } else {
    }
    %c0 = arith.constant 0 : index
    %c0_1 = arith.constant 0 : index
    %3 = vector.load %arg7[%c0, %c0_1] : memref<128x128xf32, #tpu.memory_space<vmem>>, vector<128x128xf32>
    %c0_2 = arith.constant 0 : index
    %c0_3 = arith.constant 0 : index
    %4 = vector.load %arg3[%c0_2, %c0_3] : memref<128x128xbf16, #tpu.memory_space<vmem>>, vector<128x128xbf16>
    %c0_4 = arith.constant 0 : index
    %c0_5 = arith.constant 0 : index
    %5 = vector.load %arg4[%c0_4, %c0_5] : memref<128x128xbf16, #tpu.memory_space<vmem>>, vector<128x128xbf16>
    %cst = arith.constant dense<0.000000e+00> : vector<128x128xf32>
    %6 = tpu.matmul %4, %5, %cst {dimension_numbers = #tpu.dot_dimension_numbers<[1], [0], [0], [1], [0, 0, 1, 1], [], []>} : vector<128x128xbf16>, vector<128x128xbf16>, vector<128x128xf32> -> vector<128x128xf32>
    %7 = arith.addf %3, %6 : vector<128x128xf32>
    %c0_6 = arith.constant 0 : index
    %c0_7 = arith.constant 0 : index
    %8 = vector.load %arg7[%c0_6, %c0_7] : memref<128x128xf32, #tpu.memory_space<vmem>>, vector<128x128xf32>
    tpu.vector_store %arg7[%c0_6, %c0_7], %7 {strides = array<i32>} : memref<128x128xf32, #tpu.memory_space<vmem>>, vector<128x128xf32>,
    %c0_i32_8 = arith.constant 0 : i32
    %9 = arith.cmpi eq, %arg2, %c0_i32_8 : i32
    %10 = arith.extui %9 : i1 to i32
    %c0_i32_9 = arith.constant 0 : i32
    %11 = arith.cmpi ne, %10, %c0_i32_9 : i32
    scf.if %11 {
      %c0_10 = arith.constant 0 : index
      %c0_11 = arith.constant 0 : index
      %12 = vector.load %arg7[%c0_10, %c0_11] : memref<128x128xf32, #tpu.memory_space<vmem>>, vector<128x128xf32>
      %c0_12 = arith.constant 0 : index
      %c0_13 = arith.constant 0 : index
      %13 = vector.load %arg5[%c0_12, %c0_13] : memref<1x128xf32, #tpu.memory_space<vmem>>, vector<1x128xf32>
      %14 = vector.broadcast %13 : vector<1x128xf32> to vector<128x128xf32>
      %15 = arith.addf %12, %14 : vector<128x128xf32>
      %cst_14 = arith.constant 0.000000e+00 : f32
      %16 = vector.broadcast %cst_14 : f32 to vector<128x128xf32>
      %17 = arith.maximumf %15, %16 : vector<128x128xf32>
      %18 = arith.truncf %17 : vector<128x128xf32> to vector<128x128xbf16>
      %c0_15 = arith.constant 0 : index
      %c0_16 = arith.constant 0 : index
      %19 = vector.load %arg6[%c0_15, %c0_16] : memref<128x128xbf16, #tpu.memory_space<vmem>>, vector<128x128xbf16>
      tpu.vector_store %arg6[%c0_15, %c0_16], %18 {strides = array<i32>} : memref<128x128xbf16, #tpu.memory_space<vmem>>, vector<128x128xbf16>,
    } else {
    }
    return
  }
  func.func @transform_0(%arg0: i32, %arg1: i32, %arg2: i32) -> (i32, i32) {
    %c0_i32 = arith.constant 0 : i32
    return %arg0, %arg2 : i32, i32
  }
  func.func @transform_1(%arg0: i32, %arg1: i32, %arg2: i32) -> (i32, i32) {
    %c0_i32 = arith.constant 0 : i32
    return %arg2, %arg1 : i32, i32
  }
  func.func @transform_2(%arg0: i32, %arg1: i32, %arg2: i32) -> (i32, i32) {
    %c0_i32 = arith.constant 0 : i32
    %c0_i32_0 = arith.constant 0 : i32
    return %c0_i32, %arg1 : i32, i32
  }
  func.func @transform_3(%arg0: i32, %arg1: i32, %arg2: i32) -> (i32, i32) {
    %c0_i32 = arith.constant 0 : i32
    return %arg0, %arg1 : i32, i32
  }
}

module attributes {stable_mosaic.version = 11 : i64} {
  func.func @_gemm_bn_act_kernel(%arg0: i32, %arg1: i32, %arg2: i32, %arg3: memref<128x128xbf16, #tpu.memory_space<vmem>>, %arg4: memref<128x128xbf16, #tpu.memory_space<vmem>>, %arg5: memref<1x128xf32, #tpu.memory_space<vmem>>, %arg6: memref<128x128xbf16, #tpu.memory_space<vmem>>, %arg7: memref<128x128xf32, #tpu.memory_space<vmem>>) attributes {dimension_semantics = [#tpu.dimension_semantics<parallel>, #tpu.dimension_semantics<parallel>, #tpu.dimension_semantics<arbitrary>], iteration_bounds = array<i64: 1, 1, 9>, scalar_prefetch = 0 : i64, scratch_operands = 1 : i64, tpu.core_type = #tpu.core_type<tc>, window_params = [{transform_indices = @transform_0, window_bounds = array<i64: 128, 128>}, {transform_indices = @transform_1, window_bounds = array<i64: 128, 128>}, {transform_indices = @transform_2, window_bounds = array<i64: 1, 128>}, {transform_indices = @transform_3, window_bounds = array<i64: 128, 128>}]} {
    %c0_i32 = arith.constant 0 : i32
    %0 = arith.cmpi eq, %arg2, %c0_i32 : i32
    %1 = arith.extui %0 : i1 to i32
    %c0_i32_0 = arith.constant 0 : i32
    %2 = arith.cmpi ne, %1, %c0_i32_0 : i32
    scf.if %2 {
      %cst_9 = arith.constant 0.000000e+00 : f32
      %12 = vector.broadcast %cst_9 : f32 to vector<128x128xf32>
      %c0_10 = arith.constant 0 : index
      %c0_11 = arith.constant 0 : index
      %13 = vector.load %arg7[%c0_10, %c0_11] : memref<128x128xf32, #tpu.memory_space<vmem>>, vector<128x128xf32>
      tpu.vector_store %arg7[%c0_10, %c0_11], %12 {strides = array<i32>} : memref<128x128xf32, #tpu.memory_space<vmem>>, vector<128x128xf32>,
    } else {
    }
    %c0 = arith.constant 0 : index
    %c0_1 = arith.constant 0 : index
    %3 = vector.load %arg7[%c0, %c0_1] : memref<128x128xf32, #tpu.memory_space<vmem>>, vector<128x128xf32>
    %c0_2 = arith.constant 0 : index
    %c0_3 = arith.constant 0 : index
    %4 = vector.load %arg3[%c0_2, %c0_3] : memref<128x128xbf16, #tpu.memory_space<vmem>>, vector<128x128xbf16>
    %c0_4 = arith.constant 0 : index
    %c0_5 = arith.constant 0 : index
    %5 = vector.load %arg4[%c0_4, %c0_5] : memref<128x128xbf16, #tpu.memory_space<vmem>>, vector<128x128xbf16>
    %cst = arith.constant dense<0.000000e+00> : vector<128x128xf32>
    %6 = tpu.matmul %4, %5, %cst {dimension_numbers = #tpu.dot_dimension_numbers<[1], [0], [0], [1], [0, 0, 1, 1], [], []>} : vector<128x128xbf16>, vector<128x128xbf16>, vector<128x128xf32> -> vector<128x128xf32>
    %7 = arith.addf %3, %6 : vector<128x128xf32>
    %c0_6 = arith.constant 0 : index
    %c0_7 = arith.constant 0 : index
    %8 = vector.load %arg7[%c0_6, %c0_7] : memref<128x128xf32, #tpu.memory_space<vmem>>, vector<128x128xf32>
    tpu.vector_store %arg7[%c0_6, %c0_7], %7 {strides = array<i32>} : memref<128x128xf32, #tpu.memory_space<vmem>>, vector<128x128xf32>,
    %c8_i32 = arith.constant 8 : i32
    %9 = arith.cmpi eq, %arg2, %c8_i32 : i32
    %10 = arith.extui %9 : i1 to i32
    %c0_i32_8 = arith.constant 0 : i32
    %11 = arith.cmpi ne, %10, %c0_i32_8 : i32
    scf.if %11 {
      %c0_9 = arith.constant 0 : index
      %c0_10 = arith.constant 0 : index
      %12 = vector.load %arg7[%c0_9, %c0_10] : memref<128x128xf32, #tpu.memory_space<vmem>>, vector<128x128xf32>
      %c0_11 = arith.constant 0 : index
      %c0_12 = arith.constant 0 : index
      %13 = vector.load %arg5[%c0_11, %c0_12] : memref<1x128xf32, #tpu.memory_space<vmem>>, vector<1x128xf32>
      %14 = vector.broadcast %13 : vector<1x128xf32> to vector<128x128xf32>
      %15 = arith.addf %12, %14 : vector<128x128xf32>
      %cst_13 = arith.constant 0.000000e+00 : f32
      %16 = vector.broadcast %cst_13 : f32 to vector<128x128xf32>
      %17 = arith.maximumf %15, %16 : vector<128x128xf32>
      %18 = arith.truncf %17 : vector<128x128xf32> to vector<128x128xbf16>
      %c0_14 = arith.constant 0 : index
      %c0_15 = arith.constant 0 : index
      %19 = vector.load %arg6[%c0_14, %c0_15] : memref<128x128xbf16, #tpu.memory_space<vmem>>, vector<128x128xbf16>
      tpu.vector_store %arg6[%c0_14, %c0_15], %18 {strides = array<i32>} : memref<128x128xbf16, #tpu.memory_space<vmem>>, vector<128x128xbf16>,
    } else {
    }
    return
  }
  func.func @transform_0(%arg0: i32, %arg1: i32, %arg2: i32) -> (i32, i32) {
    %c0_i32 = arith.constant 0 : i32
    return %arg0, %arg2 : i32, i32
  }
  func.func @transform_1(%arg0: i32, %arg1: i32, %arg2: i32) -> (i32, i32) {
    %c0_i32 = arith.constant 0 : i32
    return %arg2, %arg1 : i32, i32
  }
  func.func @transform_2(%arg0: i32, %arg1: i32, %arg2: i32) -> (i32, i32) {
    %c0_i32 = arith.constant 0 : i32
    %c0_i32_0 = arith.constant 0 : i32
    return %c0_i32, %arg1 : i32, i32
  }
  func.func @transform_3(%arg0: i32, %arg1: i32, %arg2: i32) -> (i32, i32) {
    %c0_i32 = arith.constant 0 : i32
    return %arg0, %arg1 : i32, i32
  }
}

module attributes {stable_mosaic.version = 11 : i64} {
  func.func @_gemm_bn_res_kernel(%arg0: i32, %arg1: i32, %arg2: i32, %arg3: memref<128x128xbf16, #tpu.memory_space<vmem>>, %arg4: memref<128x128xbf16, #tpu.memory_space<vmem>>, %arg5: memref<1x128xf32, #tpu.memory_space<vmem>>, %arg6: memref<128x128xbf16, #tpu.memory_space<vmem>>, %arg7: memref<128x128xbf16, #tpu.memory_space<vmem>>, %arg8: memref<128x128xf32, #tpu.memory_space<vmem>>) attributes {dimension_semantics = [#tpu.dimension_semantics<parallel>, #tpu.dimension_semantics<parallel>, #tpu.dimension_semantics<arbitrary>], iteration_bounds = array<i64: 1, 1, 1>, scalar_prefetch = 0 : i64, scratch_operands = 1 : i64, tpu.core_type = #tpu.core_type<tc>, window_params = [{transform_indices = @transform_0, window_bounds = array<i64: 128, 128>}, {transform_indices = @transform_1, window_bounds = array<i64: 128, 128>}, {transform_indices = @transform_2, window_bounds = array<i64: 1, 128>}, {transform_indices = @transform_3, window_bounds = array<i64: 128, 128>}, {transform_indices = @transform_4, window_bounds = array<i64: 128, 128>}]} {
    %c0_i32 = arith.constant 0 : i32
    %0 = arith.cmpi eq, %arg2, %c0_i32 : i32
    %1 = arith.extui %0 : i1 to i32
    %c0_i32_0 = arith.constant 0 : i32
    %2 = arith.cmpi ne, %1, %c0_i32_0 : i32
    scf.if %2 {
      %cst_10 = arith.constant 0.000000e+00 : f32
      %12 = vector.broadcast %cst_10 : f32 to vector<128x128xf32>
      %c0_11 = arith.constant 0 : index
      %c0_12 = arith.constant 0 : index
      %13 = vector.load %arg8[%c0_11, %c0_12] : memref<128x128xf32, #tpu.memory_space<vmem>>, vector<128x128xf32>
      tpu.vector_store %arg8[%c0_11, %c0_12], %12 {strides = array<i32>} : memref<128x128xf32, #tpu.memory_space<vmem>>, vector<128x128xf32>,
    } else {
    }
    %c0 = arith.constant 0 : index
    %c0_1 = arith.constant 0 : index
    %3 = vector.load %arg8[%c0, %c0_1] : memref<128x128xf32, #tpu.memory_space<vmem>>, vector<128x128xf32>
    %c0_2 = arith.constant 0 : index
    %c0_3 = arith.constant 0 : index
    %4 = vector.load %arg3[%c0_2, %c0_3] : memref<128x128xbf16, #tpu.memory_space<vmem>>, vector<128x128xbf16>
    %c0_4 = arith.constant 0 : index
    %c0_5 = arith.constant 0 : index
    %5 = vector.load %arg4[%c0_4, %c0_5] : memref<128x128xbf16, #tpu.memory_space<vmem>>, vector<128x128xbf16>
    %cst = arith.constant dense<0.000000e+00> : vector<128x128xf32>
    %6 = tpu.matmul %4, %5, %cst {dimension_numbers = #tpu.dot_dimension_numbers<[1], [0], [0], [1], [0, 0, 1, 1], [], []>} : vector<128x128xbf16>, vector<128x128xbf16>, vector<128x128xf32> -> vector<128x128xf32>
    %7 = arith.addf %3, %6 : vector<128x128xf32>
    %c0_6 = arith.constant 0 : index
    %c0_7 = arith.constant 0 : index
    %8 = vector.load %arg8[%c0_6, %c0_7] : memref<128x128xf32, #tpu.memory_space<vmem>>, vector<128x128xf32>
    tpu.vector_store %arg8[%c0_6, %c0_7], %7 {strides = array<i32>} : memref<128x128xf32, #tpu.memory_space<vmem>>, vector<128x128xf32>,
    %c0_i32_8 = arith.constant 0 : i32
    %9 = arith.cmpi eq, %arg2, %c0_i32_8 : i32
    %10 = arith.extui %9 : i1 to i32
    %c0_i32_9 = arith.constant 0 : i32
    %11 = arith.cmpi ne, %10, %c0_i32_9 : i32
    scf.if %11 {
      %c0_10 = arith.constant 0 : index
      %c0_11 = arith.constant 0 : index
      %12 = vector.load %arg8[%c0_10, %c0_11] : memref<128x128xf32, #tpu.memory_space<vmem>>, vector<128x128xf32>
      %c0_12 = arith.constant 0 : index
      %c0_13 = arith.constant 0 : index
      %13 = vector.load %arg5[%c0_12, %c0_13] : memref<1x128xf32, #tpu.memory_space<vmem>>, vector<1x128xf32>
      %14 = vector.broadcast %13 : vector<1x128xf32> to vector<128x128xf32>
      %15 = arith.addf %12, %14 : vector<128x128xf32>
      %c0_14 = arith.constant 0 : index
      %c0_15 = arith.constant 0 : index
      %16 = vector.load %arg6[%c0_14, %c0_15] : memref<128x128xbf16, #tpu.memory_space<vmem>>, vector<128x128xbf16>
      %17 = arith.extf %16 : vector<128x128xbf16> to vector<128x128xf32>
      %18 = arith.addf %15, %17 : vector<128x128xf32>
      %cst_16 = arith.constant 0.000000e+00 : f32
      %19 = vector.broadcast %cst_16 : f32 to vector<128x128xf32>
      %20 = arith.maximumf %18, %19 : vector<128x128xf32>
      %21 = arith.truncf %20 : vector<128x128xf32> to vector<128x128xbf16>
      %c0_17 = arith.constant 0 : index
      %c0_18 = arith.constant 0 : index
      %22 = vector.load %arg7[%c0_17, %c0_18] : memref<128x128xbf16, #tpu.memory_space<vmem>>, vector<128x128xbf16>
      tpu.vector_store %arg7[%c0_17, %c0_18], %21 {strides = array<i32>} : memref<128x128xbf16, #tpu.memory_space<vmem>>, vector<128x128xbf16>,
    } else {
    }
    return
  }
  func.func @transform_0(%arg0: i32, %arg1: i32, %arg2: i32) -> (i32, i32) {
    %c0_i32 = arith.constant 0 : i32
    return %arg0, %arg2 : i32, i32
  }
  func.func @transform_1(%arg0: i32, %arg1: i32, %arg2: i32) -> (i32, i32) {
    %c0_i32 = arith.constant 0 : i32
    return %arg2, %arg1 : i32, i32
  }
  func.func @transform_2(%arg0: i32, %arg1: i32, %arg2: i32) -> (i32, i32) {
    %c0_i32 = arith.constant 0 : i32
    %c0_i32_0 = arith.constant 0 : i32
    return %c0_i32, %arg1 : i32, i32
  }
  func.func @transform_3(%arg0: i32, %arg1: i32, %arg2: i32) -> (i32, i32) {
    %c0_i32 = arith.constant 0 : i32
    return %arg0, %arg1 : i32, i32
  }
  func.func @transform_4(%arg0: i32, %arg1: i32, %arg2: i32) -> (i32, i32) {
    %c0_i32 = arith.constant 0 : i32
    return %arg0, %arg1 : i32, i32
  }
}

module attributes {stable_mosaic.version = 11 : i64} {
  func.func @_gemm_bn_act_kernel(%arg0: i32, %arg1: i32, %arg2: i32, %arg3: memref<128x128xbf16, #tpu.memory_space<vmem>>, %arg4: memref<128x128xbf16, #tpu.memory_space<vmem>>, %arg5: memref<1x128xf32, #tpu.memory_space<vmem>>, %arg6: memref<128x128xbf16, #tpu.memory_space<vmem>>, %arg7: memref<128x128xf32, #tpu.memory_space<vmem>>) attributes {dimension_semantics = [#tpu.dimension_semantics<parallel>, #tpu.dimension_semantics<parallel>, #tpu.dimension_semantics<arbitrary>], iteration_bounds = array<i64: 1, 1, 1>, scalar_prefetch = 0 : i64, scratch_operands = 1 : i64, tpu.core_type = #tpu.core_type<tc>, window_params = [{transform_indices = @transform_0, window_bounds = array<i64: 128, 128>}, {transform_indices = @transform_1, window_bounds = array<i64: 128, 128>}, {transform_indices = @transform_2, window_bounds = array<i64: 1, 128>}, {transform_indices = @transform_3, window_bounds = array<i64: 128, 128>}]} {
    %c0_i32 = arith.constant 0 : i32
    %0 = arith.cmpi eq, %arg2, %c0_i32 : i32
    %1 = arith.extui %0 : i1 to i32
    %c0_i32_0 = arith.constant 0 : i32
    %2 = arith.cmpi ne, %1, %c0_i32_0 : i32
    scf.if %2 {
      %cst_10 = arith.constant 0.000000e+00 : f32
      %12 = vector.broadcast %cst_10 : f32 to vector<128x128xf32>
      %c0_11 = arith.constant 0 : index
      %c0_12 = arith.constant 0 : index
      %13 = vector.load %arg7[%c0_11, %c0_12] : memref<128x128xf32, #tpu.memory_space<vmem>>, vector<128x128xf32>
      tpu.vector_store %arg7[%c0_11, %c0_12], %12 {strides = array<i32>} : memref<128x128xf32, #tpu.memory_space<vmem>>, vector<128x128xf32>,
    } else {
    }
    %c0 = arith.constant 0 : index
    %c0_1 = arith.constant 0 : index
    %3 = vector.load %arg7[%c0, %c0_1] : memref<128x128xf32, #tpu.memory_space<vmem>>, vector<128x128xf32>
    %c0_2 = arith.constant 0 : index
    %c0_3 = arith.constant 0 : index
    %4 = vector.load %arg3[%c0_2, %c0_3] : memref<128x128xbf16, #tpu.memory_space<vmem>>, vector<128x128xbf16>
    %c0_4 = arith.constant 0 : index
    %c0_5 = arith.constant 0 : index
    %5 = vector.load %arg4[%c0_4, %c0_5] : memref<128x128xbf16, #tpu.memory_space<vmem>>, vector<128x128xbf16>
    %cst = arith.constant dense<0.000000e+00> : vector<128x128xf32>
    %6 = tpu.matmul %4, %5, %cst {dimension_numbers = #tpu.dot_dimension_numbers<[1], [0], [0], [1], [0, 0, 1, 1], [], []>} : vector<128x128xbf16>, vector<128x128xbf16>, vector<128x128xf32> -> vector<128x128xf32>
    %7 = arith.addf %3, %6 : vector<128x128xf32>
    %c0_6 = arith.constant 0 : index
    %c0_7 = arith.constant 0 : index
    %8 = vector.load %arg7[%c0_6, %c0_7] : memref<128x128xf32, #tpu.memory_space<vmem>>, vector<128x128xf32>
    tpu.vector_store %arg7[%c0_6, %c0_7], %7 {strides = array<i32>} : memref<128x128xf32, #tpu.memory_space<vmem>>, vector<128x128xf32>,
    %c0_i32_8 = arith.constant 0 : i32
    %9 = arith.cmpi eq, %arg2, %c0_i32_8 : i32
    %10 = arith.extui %9 : i1 to i32
    %c0_i32_9 = arith.constant 0 : i32
    %11 = arith.cmpi ne, %10, %c0_i32_9 : i32
    scf.if %11 {
      %c0_10 = arith.constant 0 : index
      %c0_11 = arith.constant 0 : index
      %12 = vector.load %arg7[%c0_10, %c0_11] : memref<128x128xf32, #tpu.memory_space<vmem>>, vector<128x128xf32>
      %c0_12 = arith.constant 0 : index
      %c0_13 = arith.constant 0 : index
      %13 = vector.load %arg5[%c0_12, %c0_13] : memref<1x128xf32, #tpu.memory_space<vmem>>, vector<1x128xf32>
      %14 = vector.broadcast %13 : vector<1x128xf32> to vector<128x128xf32>
      %15 = arith.addf %12, %14 : vector<128x128xf32>
      %16 = arith.truncf %15 : vector<128x128xf32> to vector<128x128xbf16>
      %c0_14 = arith.constant 0 : index
      %c0_15 = arith.constant 0 : index
      %17 = vector.load %arg6[%c0_14, %c0_15] : memref<128x128xbf16, #tpu.memory_space<vmem>>, vector<128x128xbf16>
      tpu.vector_store %arg6[%c0_14, %c0_15], %16 {strides = array<i32>} : memref<128x128xbf16, #tpu.memory_space<vmem>>, vector<128x128xbf16>,
    } else {
    }
    return
  }
  func.func @transform_0(%arg0: i32, %arg1: i32, %arg2: i32) -> (i32, i32) {
    %c0_i32 = arith.constant 0 : i32
    return %arg0, %arg2 : i32, i32
  }
  func.func @transform_1(%arg0: i32, %arg1: i32, %arg2: i32) -> (i32, i32) {
    %c0_i32 = arith.constant 0 : i32
    return %arg2, %arg1 : i32, i32
  }
  func.func @transform_2(%arg0: i32, %arg1: i32, %arg2: i32) -> (i32, i32) {
    %c0_i32 = arith.constant 0 : i32
    %c0_i32_0 = arith.constant 0 : i32
    return %c0_i32, %arg1 : i32, i32
  }
  func.func @transform_3(%arg0: i32, %arg1: i32, %arg2: i32) -> (i32, i32) {
    %c0_i32 = arith.constant 0 : i32
    return %arg0, %arg1 : i32, i32
  }
}

module attributes {stable_mosaic.version = 11 : i64} {
  func.func @_gemm_bn_act_kernel(%arg0: i32, %arg1: i32, %arg2: i32, %arg3: memref<128x128xbf16, #tpu.memory_space<vmem>>, %arg4: memref<128x128xbf16, #tpu.memory_space<vmem>>, %arg5: memref<1x128xf32, #tpu.memory_space<vmem>>, %arg6: memref<128x128xbf16, #tpu.memory_space<vmem>>, %arg7: memref<128x128xf32, #tpu.memory_space<vmem>>) attributes {dimension_semantics = [#tpu.dimension_semantics<parallel>, #tpu.dimension_semantics<parallel>, #tpu.dimension_semantics<arbitrary>], iteration_bounds = array<i64: 1, 2, 1>, scalar_prefetch = 0 : i64, scratch_operands = 1 : i64, tpu.core_type = #tpu.core_type<tc>, window_params = [{transform_indices = @transform_0, window_bounds = array<i64: 128, 128>}, {transform_indices = @transform_1, window_bounds = array<i64: 128, 128>}, {transform_indices = @transform_2, window_bounds = array<i64: 1, 128>}, {transform_indices = @transform_3, window_bounds = array<i64: 128, 128>}]} {
    %c0_i32 = arith.constant 0 : i32
    %0 = arith.cmpi eq, %arg2, %c0_i32 : i32
    %1 = arith.extui %0 : i1 to i32
    %c0_i32_0 = arith.constant 0 : i32
    %2 = arith.cmpi ne, %1, %c0_i32_0 : i32
    scf.if %2 {
      %cst_10 = arith.constant 0.000000e+00 : f32
      %12 = vector.broadcast %cst_10 : f32 to vector<128x128xf32>
      %c0_11 = arith.constant 0 : index
      %c0_12 = arith.constant 0 : index
      %13 = vector.load %arg7[%c0_11, %c0_12] : memref<128x128xf32, #tpu.memory_space<vmem>>, vector<128x128xf32>
      tpu.vector_store %arg7[%c0_11, %c0_12], %12 {strides = array<i32>} : memref<128x128xf32, #tpu.memory_space<vmem>>, vector<128x128xf32>,
    } else {
    }
    %c0 = arith.constant 0 : index
    %c0_1 = arith.constant 0 : index
    %3 = vector.load %arg7[%c0, %c0_1] : memref<128x128xf32, #tpu.memory_space<vmem>>, vector<128x128xf32>
    %c0_2 = arith.constant 0 : index
    %c0_3 = arith.constant 0 : index
    %4 = vector.load %arg3[%c0_2, %c0_3] : memref<128x128xbf16, #tpu.memory_space<vmem>>, vector<128x128xbf16>
    %c0_4 = arith.constant 0 : index
    %c0_5 = arith.constant 0 : index
    %5 = vector.load %arg4[%c0_4, %c0_5] : memref<128x128xbf16, #tpu.memory_space<vmem>>, vector<128x128xbf16>
    %cst = arith.constant dense<0.000000e+00> : vector<128x128xf32>
    %6 = tpu.matmul %4, %5, %cst {dimension_numbers = #tpu.dot_dimension_numbers<[1], [0], [0], [1], [0, 0, 1, 1], [], []>} : vector<128x128xbf16>, vector<128x128xbf16>, vector<128x128xf32> -> vector<128x128xf32>
    %7 = arith.addf %3, %6 : vector<128x128xf32>
    %c0_6 = arith.constant 0 : index
    %c0_7 = arith.constant 0 : index
    %8 = vector.load %arg7[%c0_6, %c0_7] : memref<128x128xf32, #tpu.memory_space<vmem>>, vector<128x128xf32>
    tpu.vector_store %arg7[%c0_6, %c0_7], %7 {strides = array<i32>} : memref<128x128xf32, #tpu.memory_space<vmem>>, vector<128x128xf32>,
    %c0_i32_8 = arith.constant 0 : i32
    %9 = arith.cmpi eq, %arg2, %c0_i32_8 : i32
    %10 = arith.extui %9 : i1 to i32
    %c0_i32_9 = arith.constant 0 : i32
    %11 = arith.cmpi ne, %10, %c0_i32_9 : i32
    scf.if %11 {
      %c0_10 = arith.constant 0 : index
      %c0_11 = arith.constant 0 : index
      %12 = vector.load %arg7[%c0_10, %c0_11] : memref<128x128xf32, #tpu.memory_space<vmem>>, vector<128x128xf32>
      %c0_12 = arith.constant 0 : index
      %c0_13 = arith.constant 0 : index
      %13 = vector.load %arg5[%c0_12, %c0_13] : memref<1x128xf32, #tpu.memory_space<vmem>>, vector<1x128xf32>
      %14 = vector.broadcast %13 : vector<1x128xf32> to vector<128x128xf32>
      %15 = arith.addf %12, %14 : vector<128x128xf32>
      %16 = arith.truncf %15 : vector<128x128xf32> to vector<128x128xbf16>
      %c0_14 = arith.constant 0 : index
      %c0_15 = arith.constant 0 : index
      %17 = vector.load %arg6[%c0_14, %c0_15] : memref<128x128xbf16, #tpu.memory_space<vmem>>, vector<128x128xbf16>
      tpu.vector_store %arg6[%c0_14, %c0_15], %16 {strides = array<i32>} : memref<128x128xbf16, #tpu.memory_space<vmem>>, vector<128x128xbf16>,
    } else {
    }
    return
  }
  func.func @transform_0(%arg0: i32, %arg1: i32, %arg2: i32) -> (i32, i32) {
    %c0_i32 = arith.constant 0 : i32
    return %arg0, %arg2 : i32, i32
  }
  func.func @transform_1(%arg0: i32, %arg1: i32, %arg2: i32) -> (i32, i32) {
    %c0_i32 = arith.constant 0 : i32
    return %arg2, %arg1 : i32, i32
  }
  func.func @transform_2(%arg0: i32, %arg1: i32, %arg2: i32) -> (i32, i32) {
    %c0_i32 = arith.constant 0 : i32
    %c0_i32_0 = arith.constant 0 : i32
    return %c0_i32, %arg1 : i32, i32
  }
  func.func @transform_3(%arg0: i32, %arg1: i32, %arg2: i32) -> (i32, i32) {
    %c0_i32 = arith.constant 0 : i32
    return %arg0, %arg1 : i32, i32
  }
}

module attributes {stable_mosaic.version = 11 : i64} {
  func.func @_gemm_bn_res_kernel(%arg0: i32, %arg1: i32, %arg2: i32, %arg3: memref<128x128xbf16, #tpu.memory_space<vmem>>, %arg4: memref<128x128xbf16, #tpu.memory_space<vmem>>, %arg5: memref<1x128xf32, #tpu.memory_space<vmem>>, %arg6: memref<128x128xbf16, #tpu.memory_space<vmem>>, %arg7: memref<128x128xbf16, #tpu.memory_space<vmem>>, %arg8: memref<128x128xf32, #tpu.memory_space<vmem>>) attributes {dimension_semantics = [#tpu.dimension_semantics<parallel>, #tpu.dimension_semantics<parallel>, #tpu.dimension_semantics<arbitrary>], iteration_bounds = array<i64: 1, 2, 1>, scalar_prefetch = 0 : i64, scratch_operands = 1 : i64, tpu.core_type = #tpu.core_type<tc>, window_params = [{transform_indices = @transform_0, window_bounds = array<i64: 128, 128>}, {transform_indices = @transform_1, window_bounds = array<i64: 128, 128>}, {transform_indices = @transform_2, window_bounds = array<i64: 1, 128>}, {transform_indices = @transform_3, window_bounds = array<i64: 128, 128>}, {transform_indices = @transform_4, window_bounds = array<i64: 128, 128>}]} {
    %c0_i32 = arith.constant 0 : i32
    %0 = arith.cmpi eq, %arg2, %c0_i32 : i32
    %1 = arith.extui %0 : i1 to i32
    %c0_i32_0 = arith.constant 0 : i32
    %2 = arith.cmpi ne, %1, %c0_i32_0 : i32
    scf.if %2 {
      %cst_10 = arith.constant 0.000000e+00 : f32
      %12 = vector.broadcast %cst_10 : f32 to vector<128x128xf32>
      %c0_11 = arith.constant 0 : index
      %c0_12 = arith.constant 0 : index
      %13 = vector.load %arg8[%c0_11, %c0_12] : memref<128x128xf32, #tpu.memory_space<vmem>>, vector<128x128xf32>
      tpu.vector_store %arg8[%c0_11, %c0_12], %12 {strides = array<i32>} : memref<128x128xf32, #tpu.memory_space<vmem>>, vector<128x128xf32>,
    } else {
    }
    %c0 = arith.constant 0 : index
    %c0_1 = arith.constant 0 : index
    %3 = vector.load %arg8[%c0, %c0_1] : memref<128x128xf32, #tpu.memory_space<vmem>>, vector<128x128xf32>
    %c0_2 = arith.constant 0 : index
    %c0_3 = arith.constant 0 : index
    %4 = vector.load %arg3[%c0_2, %c0_3] : memref<128x128xbf16, #tpu.memory_space<vmem>>, vector<128x128xbf16>
    %c0_4 = arith.constant 0 : index
    %c0_5 = arith.constant 0 : index
    %5 = vector.load %arg4[%c0_4, %c0_5] : memref<128x128xbf16, #tpu.memory_space<vmem>>, vector<128x128xbf16>
    %cst = arith.constant dense<0.000000e+00> : vector<128x128xf32>
    %6 = tpu.matmul %4, %5, %cst {dimension_numbers = #tpu.dot_dimension_numbers<[1], [0], [0], [1], [0, 0, 1, 1], [], []>} : vector<128x128xbf16>, vector<128x128xbf16>, vector<128x128xf32> -> vector<128x128xf32>
    %7 = arith.addf %3, %6 : vector<128x128xf32>
    %c0_6 = arith.constant 0 : index
    %c0_7 = arith.constant 0 : index
    %8 = vector.load %arg8[%c0_6, %c0_7] : memref<128x128xf32, #tpu.memory_space<vmem>>, vector<128x128xf32>
    tpu.vector_store %arg8[%c0_6, %c0_7], %7 {strides = array<i32>} : memref<128x128xf32, #tpu.memory_space<vmem>>, vector<128x128xf32>,
    %c0_i32_8 = arith.constant 0 : i32
    %9 = arith.cmpi eq, %arg2, %c0_i32_8 : i32
    %10 = arith.extui %9 : i1 to i32
    %c0_i32_9 = arith.constant 0 : i32
    %11 = arith.cmpi ne, %10, %c0_i32_9 : i32
    scf.if %11 {
      %c0_10 = arith.constant 0 : index
      %c0_11 = arith.constant 0 : index
      %12 = vector.load %arg8[%c0_10, %c0_11] : memref<128x128xf32, #tpu.memory_space<vmem>>, vector<128x128xf32>
      %c0_12 = arith.constant 0 : index
      %c0_13 = arith.constant 0 : index
      %13 = vector.load %arg5[%c0_12, %c0_13] : memref<1x128xf32, #tpu.memory_space<vmem>>, vector<1x128xf32>
      %14 = vector.broadcast %13 : vector<1x128xf32> to vector<128x128xf32>
      %15 = arith.addf %12, %14 : vector<128x128xf32>
      %c0_14 = arith.constant 0 : index
      %c0_15 = arith.constant 0 : index
      %16 = vector.load %arg6[%c0_14, %c0_15] : memref<128x128xbf16, #tpu.memory_space<vmem>>, vector<128x128xbf16>
      %17 = arith.extf %16 : vector<128x128xbf16> to vector<128x128xf32>
      %18 = arith.addf %15, %17 : vector<128x128xf32>
      %cst_16 = arith.constant 0.000000e+00 : f32
      %19 = vector.broadcast %cst_16 : f32 to vector<128x128xf32>
      %20 = arith.maximumf %18, %19 : vector<128x128xf32>
      %21 = arith.truncf %20 : vector<128x128xf32> to vector<128x128xbf16>
      %c0_17 = arith.constant 0 : index
      %c0_18 = arith.constant 0 : index
      %22 = vector.load %arg7[%c0_17, %c0_18] : memref<128x128xbf16, #tpu.memory_space<vmem>>, vector<128x128xbf16>
      tpu.vector_store %arg7[%c0_17, %c0_18], %21 {strides = array<i32>} : memref<128x128xbf16, #tpu.memory_space<vmem>>, vector<128x128xbf16>,
    } else {
    }
    return
  }
  func.func @transform_0(%arg0: i32, %arg1: i32, %arg2: i32) -> (i32, i32) {
    %c0_i32 = arith.constant 0 : i32
    return %arg0, %arg2 : i32, i32
  }
  func.func @transform_1(%arg0: i32, %arg1: i32, %arg2: i32) -> (i32, i32) {
    %c0_i32 = arith.constant 0 : i32
    return %arg2, %arg1 : i32, i32
  }
  func.func @transform_2(%arg0: i32, %arg1: i32, %arg2: i32) -> (i32, i32) {
    %c0_i32 = arith.constant 0 : i32
    %c0_i32_0 = arith.constant 0 : i32
    return %c0_i32, %arg1 : i32, i32
  }
  func.func @transform_3(%arg0: i32, %arg1: i32, %arg2: i32) -> (i32, i32) {
    %c0_i32 = arith.constant 0 : i32
    return %arg0, %arg1 : i32, i32
  }
  func.func @transform_4(%arg0: i32, %arg1: i32, %arg2: i32) -> (i32, i32) {
    %c0_i32 = arith.constant 0 : i32
    return %arg0, %arg1 : i32, i32
  }
}

module attributes {stable_mosaic.version = 11 : i64} {
  func.func @_gemm_bn_act_kernel(%arg0: i32, %arg1: i32, %arg2: i32, %arg3: memref<128x256xbf16, #tpu.memory_space<vmem>>, %arg4: memref<256x256xbf16, #tpu.memory_space<vmem>>, %arg5: memref<1x256xf32, #tpu.memory_space<vmem>>, %arg6: memref<128x256xbf16, #tpu.memory_space<vmem>>, %arg7: memref<128x256xf32, #tpu.memory_space<vmem>>) attributes {dimension_semantics = [#tpu.dimension_semantics<parallel>, #tpu.dimension_semantics<parallel>, #tpu.dimension_semantics<arbitrary>], iteration_bounds = array<i64: 1, 2, 1>, scalar_prefetch = 0 : i64, scratch_operands = 1 : i64, tpu.core_type = #tpu.core_type<tc>, window_params = [{transform_indices = @transform_0, window_bounds = array<i64: 128, 256>}, {transform_indices = @transform_1, window_bounds = array<i64: 256, 256>}, {transform_indices = @transform_2, window_bounds = array<i64: 1, 256>}, {transform_indices = @transform_3, window_bounds = array<i64: 128, 256>}]} {
    %c0_i32 = arith.constant 0 : i32
    %0 = arith.cmpi eq, %arg2, %c0_i32 : i32
    %1 = arith.extui %0 : i1 to i32
    %c0_i32_0 = arith.constant 0 : i32
    %2 = arith.cmpi ne, %1, %c0_i32_0 : i32
    scf.if %2 {
      %cst_10 = arith.constant 0.000000e+00 : f32
      %12 = vector.broadcast %cst_10 : f32 to vector<128x256xf32>
      %c0_11 = arith.constant 0 : index
      %c0_12 = arith.constant 0 : index
      %13 = vector.load %arg7[%c0_11, %c0_12] : memref<128x256xf32, #tpu.memory_space<vmem>>, vector<128x256xf32>
      tpu.vector_store %arg7[%c0_11, %c0_12], %12 {strides = array<i32>} : memref<128x256xf32, #tpu.memory_space<vmem>>, vector<128x256xf32>,
    } else {
    }
    %c0 = arith.constant 0 : index
    %c0_1 = arith.constant 0 : index
    %3 = vector.load %arg7[%c0, %c0_1] : memref<128x256xf32, #tpu.memory_space<vmem>>, vector<128x256xf32>
    %c0_2 = arith.constant 0 : index
    %c0_3 = arith.constant 0 : index
    %4 = vector.load %arg3[%c0_2, %c0_3] : memref<128x256xbf16, #tpu.memory_space<vmem>>, vector<128x256xbf16>
    %c0_4 = arith.constant 0 : index
    %c0_5 = arith.constant 0 : index
    %5 = vector.load %arg4[%c0_4, %c0_5] : memref<256x256xbf16, #tpu.memory_space<vmem>>, vector<256x256xbf16>
    %cst = arith.constant dense<0.000000e+00> : vector<128x256xf32>
    %6 = tpu.matmul %4, %5, %cst {dimension_numbers = #tpu.dot_dimension_numbers<[1], [0], [0], [1], [0, 0, 1, 1], [], []>} : vector<128x256xbf16>, vector<256x256xbf16>, vector<128x256xf32> -> vector<128x256xf32>
    %7 = arith.addf %3, %6 : vector<128x256xf32>
    %c0_6 = arith.constant 0 : index
    %c0_7 = arith.constant 0 : index
    %8 = vector.load %arg7[%c0_6, %c0_7] : memref<128x256xf32, #tpu.memory_space<vmem>>, vector<128x256xf32>
    tpu.vector_store %arg7[%c0_6, %c0_7], %7 {strides = array<i32>} : memref<128x256xf32, #tpu.memory_space<vmem>>, vector<128x256xf32>,
    %c0_i32_8 = arith.constant 0 : i32
    %9 = arith.cmpi eq, %arg2, %c0_i32_8 : i32
    %10 = arith.extui %9 : i1 to i32
    %c0_i32_9 = arith.constant 0 : i32
    %11 = arith.cmpi ne, %10, %c0_i32_9 : i32
    scf.if %11 {
      %c0_10 = arith.constant 0 : index
      %c0_11 = arith.constant 0 : index
      %12 = vector.load %arg7[%c0_10, %c0_11] : memref<128x256xf32, #tpu.memory_space<vmem>>, vector<128x256xf32>
      %c0_12 = arith.constant 0 : index
      %c0_13 = arith.constant 0 : index
      %13 = vector.load %arg5[%c0_12, %c0_13] : memref<1x256xf32, #tpu.memory_space<vmem>>, vector<1x256xf32>
      %14 = vector.broadcast %13 : vector<1x256xf32> to vector<128x256xf32>
      %15 = arith.addf %12, %14 : vector<128x256xf32>
      %16 = arith.truncf %15 : vector<128x256xf32> to vector<128x256xbf16>
      %c0_14 = arith.constant 0 : index
      %c0_15 = arith.constant 0 : index
      %17 = vector.load %arg6[%c0_14, %c0_15] : memref<128x256xbf16, #tpu.memory_space<vmem>>, vector<128x256xbf16>
      tpu.vector_store %arg6[%c0_14, %c0_15], %16 {strides = array<i32>} : memref<128x256xbf16, #tpu.memory_space<vmem>>, vector<128x256xbf16>,
    } else {
    }
    return
  }
  func.func @transform_0(%arg0: i32, %arg1: i32, %arg2: i32) -> (i32, i32) {
    %c0_i32 = arith.constant 0 : i32
    return %arg0, %arg2 : i32, i32
  }
  func.func @transform_1(%arg0: i32, %arg1: i32, %arg2: i32) -> (i32, i32) {
    %c0_i32 = arith.constant 0 : i32
    return %arg2, %arg1 : i32, i32
  }
  func.func @transform_2(%arg0: i32, %arg1: i32, %arg2: i32) -> (i32, i32) {
    %c0_i32 = arith.constant 0 : i32
    %c0_i32_0 = arith.constant 0 : i32
    return %c0_i32, %arg1 : i32, i32
  }
  func.func @transform_3(%arg0: i32, %arg1: i32, %arg2: i32) -> (i32, i32) {
    %c0_i32 = arith.constant 0 : i32
    return %arg0, %arg1 : i32, i32
  }
}

module attributes {stable_mosaic.version = 11 : i64} {
  func.func @_gemm_bn_act_kernel(%arg0: i32, %arg1: i32, %arg2: i32, %arg3: memref<128x256xbf16, #tpu.memory_space<vmem>>, %arg4: memref<256x128xbf16, #tpu.memory_space<vmem>>, %arg5: memref<1x128xf32, #tpu.memory_space<vmem>>, %arg6: memref<128x128xbf16, #tpu.memory_space<vmem>>, %arg7: memref<128x128xf32, #tpu.memory_space<vmem>>) attributes {dimension_semantics = [#tpu.dimension_semantics<parallel>, #tpu.dimension_semantics<parallel>, #tpu.dimension_semantics<arbitrary>], iteration_bounds = array<i64: 1, 2, 1>, scalar_prefetch = 0 : i64, scratch_operands = 1 : i64, tpu.core_type = #tpu.core_type<tc>, window_params = [{transform_indices = @transform_0, window_bounds = array<i64: 128, 256>}, {transform_indices = @transform_1, window_bounds = array<i64: 256, 128>}, {transform_indices = @transform_2, window_bounds = array<i64: 1, 128>}, {transform_indices = @transform_3, window_bounds = array<i64: 128, 128>}]} {
    %c0_i32 = arith.constant 0 : i32
    %0 = arith.cmpi eq, %arg2, %c0_i32 : i32
    %1 = arith.extui %0 : i1 to i32
    %c0_i32_0 = arith.constant 0 : i32
    %2 = arith.cmpi ne, %1, %c0_i32_0 : i32
    scf.if %2 {
      %cst_10 = arith.constant 0.000000e+00 : f32
      %12 = vector.broadcast %cst_10 : f32 to vector<128x128xf32>
      %c0_11 = arith.constant 0 : index
      %c0_12 = arith.constant 0 : index
      %13 = vector.load %arg7[%c0_11, %c0_12] : memref<128x128xf32, #tpu.memory_space<vmem>>, vector<128x128xf32>
      tpu.vector_store %arg7[%c0_11, %c0_12], %12 {strides = array<i32>} : memref<128x128xf32, #tpu.memory_space<vmem>>, vector<128x128xf32>,
    } else {
    }
    %c0 = arith.constant 0 : index
    %c0_1 = arith.constant 0 : index
    %3 = vector.load %arg7[%c0, %c0_1] : memref<128x128xf32, #tpu.memory_space<vmem>>, vector<128x128xf32>
    %c0_2 = arith.constant 0 : index
    %c0_3 = arith.constant 0 : index
    %4 = vector.load %arg3[%c0_2, %c0_3] : memref<128x256xbf16, #tpu.memory_space<vmem>>, vector<128x256xbf16>
    %c0_4 = arith.constant 0 : index
    %c0_5 = arith.constant 0 : index
    %5 = vector.load %arg4[%c0_4, %c0_5] : memref<256x128xbf16, #tpu.memory_space<vmem>>, vector<256x128xbf16>
    %cst = arith.constant dense<0.000000e+00> : vector<128x128xf32>
    %6 = tpu.matmul %4, %5, %cst {dimension_numbers = #tpu.dot_dimension_numbers<[1], [0], [0], [1], [0, 0, 1, 1], [], []>} : vector<128x256xbf16>, vector<256x128xbf16>, vector<128x128xf32> -> vector<128x128xf32>
    %7 = arith.addf %3, %6 : vector<128x128xf32>
    %c0_6 = arith.constant 0 : index
    %c0_7 = arith.constant 0 : index
    %8 = vector.load %arg7[%c0_6, %c0_7] : memref<128x128xf32, #tpu.memory_space<vmem>>, vector<128x128xf32>
    tpu.vector_store %arg7[%c0_6, %c0_7], %7 {strides = array<i32>} : memref<128x128xf32, #tpu.memory_space<vmem>>, vector<128x128xf32>,
    %c0_i32_8 = arith.constant 0 : i32
    %9 = arith.cmpi eq, %arg2, %c0_i32_8 : i32
    %10 = arith.extui %9 : i1 to i32
    %c0_i32_9 = arith.constant 0 : i32
    %11 = arith.cmpi ne, %10, %c0_i32_9 : i32
    scf.if %11 {
      %c0_10 = arith.constant 0 : index
      %c0_11 = arith.constant 0 : index
      %12 = vector.load %arg7[%c0_10, %c0_11] : memref<128x128xf32, #tpu.memory_space<vmem>>, vector<128x128xf32>
      %c0_12 = arith.constant 0 : index
      %c0_13 = arith.constant 0 : index
      %13 = vector.load %arg5[%c0_12, %c0_13] : memref<1x128xf32, #tpu.memory_space<vmem>>, vector<1x128xf32>
      %14 = vector.broadcast %13 : vector<1x128xf32> to vector<128x128xf32>
      %15 = arith.addf %12, %14 : vector<128x128xf32>
      %16 = arith.truncf %15 : vector<128x128xf32> to vector<128x128xbf16>
      %c0_14 = arith.constant 0 : index
      %c0_15 = arith.constant 0 : index
      %17 = vector.load %arg6[%c0_14, %c0_15] : memref<128x128xbf16, #tpu.memory_space<vmem>>, vector<128x128xbf16>
      tpu.vector_store %arg6[%c0_14, %c0_15], %16 {strides = array<i32>} : memref<128x128xbf16, #tpu.memory_space<vmem>>, vector<128x128xbf16>,
    } else {
    }
    return
  }
  func.func @transform_0(%arg0: i32, %arg1: i32, %arg2: i32) -> (i32, i32) {
    %c0_i32 = arith.constant 0 : i32
    return %arg0, %arg2 : i32, i32
  }
  func.func @transform_1(%arg0: i32, %arg1: i32, %arg2: i32) -> (i32, i32) {
    %c0_i32 = arith.constant 0 : i32
    return %arg2, %arg1 : i32, i32
  }
  func.func @transform_2(%arg0: i32, %arg1: i32, %arg2: i32) -> (i32, i32) {
    %c0_i32 = arith.constant 0 : i32
    %c0_i32_0 = arith.constant 0 : i32
    return %c0_i32, %arg1 : i32, i32
  }
  func.func @transform_3(%arg0: i32, %arg1: i32, %arg2: i32) -> (i32, i32) {
    %c0_i32 = arith.constant 0 : i32
    return %arg0, %arg1 : i32, i32
  }
}

module attributes {stable_mosaic.version = 11 : i64} {
  func.func @_attnpool_attend_kernel(%arg0: i32, %arg1: memref<1x1x256xbf16, #tpu.memory_space<vmem>>, %arg2: memref<1x2x512xbf16, #tpu.memory_space<vmem>>, %arg3: memref<1x1x256xbf16, #tpu.memory_space<vmem>>) attributes {dimension_semantics = [#tpu.dimension_semantics<parallel>], iteration_bounds = array<i64: 2>, scalar_prefetch = 0 : i64, scratch_operands = 0 : i64, tpu.core_type = #tpu.core_type<tc>, window_params = [{transform_indices = @transform_0, window_bounds = array<i64: 1, 1, 256>}, {transform_indices = @transform_1, window_bounds = array<i64: 1, 2, 512>}, {transform_indices = @transform_2, window_bounds = array<i64: 1, 1, 256>}]} {
    %c0 = arith.constant 0 : index
    %c0_0 = arith.constant 0 : index
    %c0_1 = arith.constant 0 : index
    %0 = vector.load %arg1[%c0, %c0_0, %c0_1] : memref<1x1x256xbf16, #tpu.memory_space<vmem>>, vector<1x1x256xbf16>
    %1 = vector.shape_cast %0 : vector<1x1x256xbf16> to vector<1x256xbf16>
    %2 = arith.extf %1 : vector<1x256xbf16> to vector<1x256xf32>
    %cst = arith.constant 1.250000e-01 : f32
    %3 = vector.broadcast %cst : f32 to vector<1x256xf32>
    %4 = arith.mulf %2, %3 : vector<1x256xf32>
    %c0_2 = arith.constant 0 : index
    %c0_3 = arith.constant 0 : index
    %c0_4 = arith.constant 0 : index
    %5 = vector.load %arg2[%c0_2, %c0_3, %c0_4] : memref<1x2x512xbf16, #tpu.memory_space<vmem>>, vector<1x2x512xbf16>
    %6 = vector.shape_cast %5 : vector<1x2x512xbf16> to vector<2x512xbf16>
    %7 = arith.extf %6 : vector<2x512xbf16> to vector<2x512xf32>
    %8 = vector.extract_strided_slice %7 {offsets = [0, 0], sizes = [2, 256], strides = [1, 1]} : vector<2x512xf32> to vector<2x256xf32>
    %9 = vector.extract_strided_slice %7 {offsets = [0, 256], sizes = [2, 256], strides = [1, 1]} : vector<2x512xf32> to vector<2x256xf32>
    %10 = vector.extract_strided_slice %4 {offsets = [0, 0], sizes = [1, 64], strides = [1, 1]} : vector<1x256xf32> to vector<1x64xf32>
    %11 = vector.extract_strided_slice %8 {offsets = [0, 0], sizes = [2, 64], strides = [1, 1]} : vector<2x256xf32> to vector<2x64xf32>
    %12 = vector.extract_strided_slice %9 {offsets = [0, 0], sizes = [2, 64], strides = [1, 1]} : vector<2x256xf32> to vector<2x64xf32>
    %cst_5 = arith.constant dense<0.000000e+00> : vector<1x2xf32>
    %13 = tpu.matmul %10, %11, %cst_5 {dimension_numbers = #tpu.dot_dimension_numbers<[1], [1], [0], [0], [0, 0, 1, 0], [], []>} : vector<1x64xf32>, vector<2x64xf32>, vector<1x2xf32> -> vector<1x2xf32>
    %cst_6 = arith.constant dense<0xFF800000> : vector<1xf32>
    %14 = vector.multi_reduction <maximumf>, %13, %cst_6 [1] : vector<1x2xf32> to vector<1xf32>
    %15 = vector.shape_cast %14 : vector<1xf32> to vector<1x1xf32>
    %16 = vector.broadcast %15 : vector<1x1xf32> to vector<1x2xf32>
    %17 = arith.subf %13, %16 : vector<1x2xf32>
    %18 = math.exp %17 : vector<1x2xf32>
    %cst_7 = arith.constant dense<0.000000e+00> : vector<1xf32>
    %19 = vector.multi_reduction <add>, %18, %cst_7 [1] : vector<1x2xf32> to vector<1xf32>
    %20 = vector.shape_cast %19 : vector<1xf32> to vector<1x1xf32>
    %21 = vector.broadcast %20 : vector<1x1xf32> to vector<1x2xf32>
    %22 = arith.divf %18, %21 : vector<1x2xf32>
    %cst_8 = arith.constant dense<0.000000e+00> : vector<1x64xf32>
    %23 = tpu.matmul %22, %12, %cst_8 {dimension_numbers = #tpu.dot_dimension_numbers<[1], [0], [0], [1], [0, 0, 1, 1], [], []>} : vector<1x2xf32>, vector<2x64xf32>, vector<1x64xf32> -> vector<1x64xf32>
    %24 = vector.extract_strided_slice %4 {offsets = [0, 64], sizes = [1, 64], strides = [1, 1]} : vector<1x256xf32> to vector<1x64xf32>
    %25 = vector.extract_strided_slice %8 {offsets = [0, 64], sizes = [2, 64], strides = [1, 1]} : vector<2x256xf32> to vector<2x64xf32>
    %26 = vector.extract_strided_slice %9 {offsets = [0, 64], sizes = [2, 64], strides = [1, 1]} : vector<2x256xf32> to vector<2x64xf32>
    %cst_9 = arith.constant dense<0.000000e+00> : vector<1x2xf32>
    %27 = tpu.matmul %24, %25, %cst_9 {dimension_numbers = #tpu.dot_dimension_numbers<[1], [1], [0], [0], [0, 0, 1, 0], [], []>} : vector<1x64xf32>, vector<2x64xf32>, vector<1x2xf32> -> vector<1x2xf32>
    %cst_10 = arith.constant dense<0xFF800000> : vector<1xf32>
    %28 = vector.multi_reduction <maximumf>, %27, %cst_10 [1] : vector<1x2xf32> to vector<1xf32>
    %29 = vector.shape_cast %28 : vector<1xf32> to vector<1x1xf32>
    %30 = vector.broadcast %29 : vector<1x1xf32> to vector<1x2xf32>
    %31 = arith.subf %27, %30 : vector<1x2xf32>
    %32 = math.exp %31 : vector<1x2xf32>
    %cst_11 = arith.constant dense<0.000000e+00> : vector<1xf32>
    %33 = vector.multi_reduction <add>, %32, %cst_11 [1] : vector<1x2xf32> to vector<1xf32>
    %34 = vector.shape_cast %33 : vector<1xf32> to vector<1x1xf32>
    %35 = vector.broadcast %34 : vector<1x1xf32> to vector<1x2xf32>
    %36 = arith.divf %32, %35 : vector<1x2xf32>
    %cst_12 = arith.constant dense<0.000000e+00> : vector<1x64xf32>
    %37 = tpu.matmul %36, %26, %cst_12 {dimension_numbers = #tpu.dot_dimension_numbers<[1], [0], [0], [1], [0, 0, 1, 1], [], []>} : vector<1x2xf32>, vector<2x64xf32>, vector<1x64xf32> -> vector<1x64xf32>
    %38 = vector.extract_strided_slice %4 {offsets = [0, 128], sizes = [1, 64], strides = [1, 1]} : vector<1x256xf32> to vector<1x64xf32>
    %39 = vector.extract_strided_slice %8 {offsets = [0, 128], sizes = [2, 64], strides = [1, 1]} : vector<2x256xf32> to vector<2x64xf32>
    %40 = vector.extract_strided_slice %9 {offsets = [0, 128], sizes = [2, 64], strides = [1, 1]} : vector<2x256xf32> to vector<2x64xf32>
    %cst_13 = arith.constant dense<0.000000e+00> : vector<1x2xf32>
    %41 = tpu.matmul %38, %39, %cst_13 {dimension_numbers = #tpu.dot_dimension_numbers<[1], [1], [0], [0], [0, 0, 1, 0], [], []>} : vector<1x64xf32>, vector<2x64xf32>, vector<1x2xf32> -> vector<1x2xf32>
    %cst_14 = arith.constant dense<0xFF800000> : vector<1xf32>
    %42 = vector.multi_reduction <maximumf>, %41, %cst_14 [1] : vector<1x2xf32> to vector<1xf32>
    %43 = vector.shape_cast %42 : vector<1xf32> to vector<1x1xf32>
    %44 = vector.broadcast %43 : vector<1x1xf32> to vector<1x2xf32>
    %45 = arith.subf %41, %44 : vector<1x2xf32>
    %46 = math.exp %45 : vector<1x2xf32>
    %cst_15 = arith.constant dense<0.000000e+00> : vector<1xf32>
    %47 = vector.multi_reduction <add>, %46, %cst_15 [1] : vector<1x2xf32> to vector<1xf32>
    %48 = vector.shape_cast %47 : vector<1xf32> to vector<1x1xf32>
    %49 = vector.broadcast %48 : vector<1x1xf32> to vector<1x2xf32>
    %50 = arith.divf %46, %49 : vector<1x2xf32>
    %cst_16 = arith.constant dense<0.000000e+00> : vector<1x64xf32>
    %51 = tpu.matmul %50, %40, %cst_16 {dimension_numbers = #tpu.dot_dimension_numbers<[1], [0], [0], [1], [0, 0, 1, 1], [], []>} : vector<1x2xf32>, vector<2x64xf32>, vector<1x64xf32> -> vector<1x64xf32>
    %52 = vector.extract_strided_slice %4 {offsets = [0, 192], sizes = [1, 64], strides = [1, 1]} : vector<1x256xf32> to vector<1x64xf32>
    %53 = vector.extract_strided_slice %8 {offsets = [0, 192], sizes = [2, 64], strides = [1, 1]} : vector<2x256xf32> to vector<2x64xf32>
    %54 = vector.extract_strided_slice %9 {offsets = [0, 192], sizes = [2, 64], strides = [1, 1]} : vector<2x256xf32> to vector<2x64xf32>
    %cst_17 = arith.constant dense<0.000000e+00> : vector<1x2xf32>
    %55 = tpu.matmul %52, %53, %cst_17 {dimension_numbers = #tpu.dot_dimension_numbers<[1], [1], [0], [0], [0, 0, 1, 0], [], []>} : vector<1x64xf32>, vector<2x64xf32>, vector<1x2xf32> -> vector<1x2xf32>
    %cst_18 = arith.constant dense<0xFF800000> : vector<1xf32>
    %56 = vector.multi_reduction <maximumf>, %55, %cst_18 [1] : vector<1x2xf32> to vector<1xf32>
    %57 = vector.shape_cast %56 : vector<1xf32> to vector<1x1xf32>
    %58 = vector.broadcast %57 : vector<1x1xf32> to vector<1x2xf32>
    %59 = arith.subf %55, %58 : vector<1x2xf32>
    %60 = math.exp %59 : vector<1x2xf32>
    %cst_19 = arith.constant dense<0.000000e+00> : vector<1xf32>
    %61 = vector.multi_reduction <add>, %60, %cst_19 [1] : vector<1x2xf32> to vector<1xf32>
    %62 = vector.shape_cast %61 : vector<1xf32> to vector<1x1xf32>
    %63 = vector.broadcast %62 : vector<1x1xf32> to vector<1x2xf32>
    %64 = arith.divf %60, %63 : vector<1x2xf32>
    %cst_20 = arith.constant dense<0.000000e+00> : vector<1x64xf32>
    %65 = tpu.matmul %64, %54, %cst_20 {dimension_numbers = #tpu.dot_dimension_numbers<[1], [0], [0], [1], [0, 0, 1, 1], [], []>} : vector<1x2xf32>, vector<2x64xf32>, vector<1x64xf32> -> vector<1x64xf32>
    %66 = tpu.concatenate %23, %37, %51, %65 in 1 : vector<1x64xf32>, vector<1x64xf32>, vector<1x64xf32>, vector<1x64xf32> -> vector<1x256xf32>
    %67 = arith.truncf %66 : vector<1x256xf32> to vector<1x256xbf16>
    %c0_21 = arith.constant 0 : index
    %c0_22 = arith.constant 0 : index
    %c0_23 = arith.constant 0 : index
    %68 = vector.load %arg3[%c0_21, %c0_22, %c0_23] : memref<1x1x256xbf16, #tpu.memory_space<vmem>>, vector<1x1x256xbf16>
    %69 = vector.shape_cast %68 : vector<1x1x256xbf16> to vector<1x256xbf16>
    %70 = vector.shape_cast %67 : vector<1x256xbf16> to vector<1x1x256xbf16>
    tpu.vector_store %arg3[%c0_21, %c0_22, %c0_23], %70 {strides = array<i32>} : memref<1x1x256xbf16, #tpu.memory_space<vmem>>, vector<1x1x256xbf16>,
    return
  }
  func.func @transform_0(%arg0: i32) -> (i32, i32, i32) {
    %c0_i32 = arith.constant 0 : i32
    %c0_i32_0 = arith.constant 0 : i32
    %c0_i32_1 = arith.constant 0 : i32
    return %arg0, %c0_i32, %c0_i32_0 : i32, i32, i32
  }
  func.func @transform_1(%arg0: i32) -> (i32, i32, i32) {
    %c0_i32 = arith.constant 0 : i32
    %c0_i32_0 = arith.constant 0 : i32
    %c0_i32_1 = arith.constant 0 : i32
    return %arg0, %c0_i32, %c0_i32_0 : i32, i32, i32
  }
  func.func @transform_2(%arg0: i32) -> (i32, i32, i32) {
    %c0_i32 = arith.constant 0 : i32
    %c0_i32_0 = arith.constant 0 : i32
    %c0_i32_1 = arith.constant 0 : i32
    return %arg0, %c0_i32, %c0_i32_0 : i32, i32, i32
  }
}

module attributes {stable_mosaic.version = 11 : i64} {
  func.func @_gemm_bn_act_kernel(%arg0: i32, %arg1: i32, %arg2: i32, %arg3: memref<128x256xbf16, #tpu.memory_space<vmem>>, %arg4: memref<256x128xbf16, #tpu.memory_space<vmem>>, %arg5: memref<1x128xf32, #tpu.memory_space<vmem>>, %arg6: memref<128x128xf32, #tpu.memory_space<vmem>>, %arg7: memref<128x128xf32, #tpu.memory_space<vmem>>) attributes {dimension_semantics = [#tpu.dimension_semantics<parallel>, #tpu.dimension_semantics<parallel>, #tpu.dimension_semantics<arbitrary>], iteration_bounds = array<i64: 1, 1, 1>, scalar_prefetch = 0 : i64, scratch_operands = 1 : i64, tpu.core_type = #tpu.core_type<tc>, window_params = [{transform_indices = @transform_0, window_bounds = array<i64: 128, 256>}, {transform_indices = @transform_1, window_bounds = array<i64: 256, 128>}, {transform_indices = @transform_2, window_bounds = array<i64: 1, 128>}, {transform_indices = @transform_3, window_bounds = array<i64: 128, 128>}]} {
    %c0_i32 = arith.constant 0 : i32
    %0 = arith.cmpi eq, %arg2, %c0_i32 : i32
    %1 = arith.extui %0 : i1 to i32
    %c0_i32_0 = arith.constant 0 : i32
    %2 = arith.cmpi ne, %1, %c0_i32_0 : i32
    scf.if %2 {
      %cst_10 = arith.constant 0.000000e+00 : f32
      %12 = vector.broadcast %cst_10 : f32 to vector<128x128xf32>
      %c0_11 = arith.constant 0 : index
      %c0_12 = arith.constant 0 : index
      %13 = vector.load %arg7[%c0_11, %c0_12] : memref<128x128xf32, #tpu.memory_space<vmem>>, vector<128x128xf32>
      tpu.vector_store %arg7[%c0_11, %c0_12], %12 {strides = array<i32>} : memref<128x128xf32, #tpu.memory_space<vmem>>, vector<128x128xf32>,
    } else {
    }
    %c0 = arith.constant 0 : index
    %c0_1 = arith.constant 0 : index
    %3 = vector.load %arg7[%c0, %c0_1] : memref<128x128xf32, #tpu.memory_space<vmem>>, vector<128x128xf32>
    %c0_2 = arith.constant 0 : index
    %c0_3 = arith.constant 0 : index
    %4 = vector.load %arg3[%c0_2, %c0_3] : memref<128x256xbf16, #tpu.memory_space<vmem>>, vector<128x256xbf16>
    %c0_4 = arith.constant 0 : index
    %c0_5 = arith.constant 0 : index
    %5 = vector.load %arg4[%c0_4, %c0_5] : memref<256x128xbf16, #tpu.memory_space<vmem>>, vector<256x128xbf16>
    %cst = arith.constant dense<0.000000e+00> : vector<128x128xf32>
    %6 = tpu.matmul %4, %5, %cst {dimension_numbers = #tpu.dot_dimension_numbers<[1], [0], [0], [1], [0, 0, 1, 1], [], []>} : vector<128x256xbf16>, vector<256x128xbf16>, vector<128x128xf32> -> vector<128x128xf32>
    %7 = arith.addf %3, %6 : vector<128x128xf32>
    %c0_6 = arith.constant 0 : index
    %c0_7 = arith.constant 0 : index
    %8 = vector.load %arg7[%c0_6, %c0_7] : memref<128x128xf32, #tpu.memory_space<vmem>>, vector<128x128xf32>
    tpu.vector_store %arg7[%c0_6, %c0_7], %7 {strides = array<i32>} : memref<128x128xf32, #tpu.memory_space<vmem>>, vector<128x128xf32>,
    %c0_i32_8 = arith.constant 0 : i32
    %9 = arith.cmpi eq, %arg2, %c0_i32_8 : i32
    %10 = arith.extui %9 : i1 to i32
    %c0_i32_9 = arith.constant 0 : i32
    %11 = arith.cmpi ne, %10, %c0_i32_9 : i32
    scf.if %11 {
      %c0_10 = arith.constant 0 : index
      %c0_11 = arith.constant 0 : index
      %12 = vector.load %arg7[%c0_10, %c0_11] : memref<128x128xf32, #tpu.memory_space<vmem>>, vector<128x128xf32>
      %c0_12 = arith.constant 0 : index
      %c0_13 = arith.constant 0 : index
      %13 = vector.load %arg5[%c0_12, %c0_13] : memref<1x128xf32, #tpu.memory_space<vmem>>, vector<1x128xf32>
      %14 = vector.broadcast %13 : vector<1x128xf32> to vector<128x128xf32>
      %15 = arith.addf %12, %14 : vector<128x128xf32>
      %c0_14 = arith.constant 0 : index
      %c0_15 = arith.constant 0 : index
      %16 = vector.load %arg6[%c0_14, %c0_15] : memref<128x128xf32, #tpu.memory_space<vmem>>, vector<128x128xf32>
      tpu.vector_store %arg6[%c0_14, %c0_15], %15 {strides = array<i32>} : memref<128x128xf32, #tpu.memory_space<vmem>>, vector<128x128xf32>,
    } else {
    }
    return
  }
  func.func @transform_0(%arg0: i32, %arg1: i32, %arg2: i32) -> (i32, i32) {
    %c0_i32 = arith.constant 0 : i32
    return %arg0, %arg2 : i32, i32
  }
  func.func @transform_1(%arg0: i32, %arg1: i32, %arg2: i32) -> (i32, i32) {
    %c0_i32 = arith.constant 0 : i32
    return %arg2, %arg1 : i32, i32
  }
  func.func @transform_2(%arg0: i32, %arg1: i32, %arg2: i32) -> (i32, i32) {
    %c0_i32 = arith.constant 0 : i32
    %c0_i32_0 = arith.constant 0 : i32
    return %c0_i32, %arg1 : i32, i32
  }
  func.func @transform_3(%arg0: i32, %arg1: i32, %arg2: i32) -> (i32, i32) {
    %c0_i32 = arith.constant 0 : i32
    return %arg0, %arg1 : i32, i32
  }
}

</mosaic_0001>

<bundles_post_ra>
// kernel: _lambda_.23
= control target key start
LH: loop header
LB: loop body
LE: loop exit
PB: predicated region body
PF: predicated region fallthrough
CT: control target
= control target key end

     0   :  { %s1458_s12 = smov 0   ;;  %s1460_s13 = smov 0   ;;  %s1593_s0 = inlined_call_operand.vmem [shape: bf16[512,32], index: 0, kind: input, shape index: {}]   ;;  %s1594_s1 = inlined_call_operand.vmem [shape: bf16[32,128], index: 1, kind: input, shape index: {}]   ;;  %s1595_s2 = inlined_call_operand.vmem [shape: f32[1,128], index: 2, kind: input, shape index: {}]   ;;  %s1596_s3 = inlined_call_operand.vmem [shape: bf16[512,128], index: 3, kind: output, shape index: {}]  }
   0x1   :  { %s1462_s14 = smov 0  }
   0x2 LB: > { %s32_s15 = sadd.s32 1, %s1432_s13  ;;  %p1113_p0 = scmp.ge.s32.totalorder %s1436_s14, 1  ;;  %s1436_s14 = sphi %s1462_s14, %s13_s14   ;;  %s1432_s13 = sphi %s1460_s13, %s1598_s13   ;;  %s1428_s12 = sphi %s1458_s12, %s1597_s12  }
   0x3   : > { %p34_p1 = scmp.ge.s32.totalorder %s32_s15, 2  ;;  %p188_p2 = scmp.lt.s32.totalorder %s1436_s14, 3 }
   0x5   : > { %s1600_s15 = smov (%p34_p1, %s32_s15), 0  ;;  %p189_p3 = pnand %p1113_p0, %p188_p2 }
   0x6   : > { %v1396_v0 = vld [vmem:[%s1594_s1] sm:$0xff] (!%p189_p3)   ;;  %s1114_s18 = sshll.u32 (!%p189_p3), %s1428_s12, 5  ;;  %v1397_v1 = vld [vmem:[%s1594_s1 + $0x8] sm:$0xff] (!%p189_p3)   ;;  %vm456_vm0 = vcmask (!%p189_p3), 261120  }
   0x7   : > { %192 = sbr.rel (%p189_p3) target bundleno = 266 (0x10a), region = 32  ;;  %p230_p4 = scmp.lt.s32.totalorder (!%p189_p3), %s1114_s18, 63  ;;  %1332 = vmatprep.subr.bf16.mxu0 (!%p189_p3), %v1396_v0  ;;  %1368 = vmatprep.subr.bf16.mxu1 (!%p189_p3), %v1396_v0  ;;  %v1527_v18 = vld [vmem:[%s1595_s2] ss:$0 sm:$0xff] (!%p189_p3) }
   0x8   : > { %1333 = vmatpush3.bf16.msra.mxu0 (!%p189_p3), %v1396_v0  ;;  %1370 = vmatpush3.bf16.msra.mxu1 (!%p189_p3), %v1396_v0 }
   0x9   : > { %1334 = vmatprep.subr.bf16.mxu0 (!%p189_p3), %v1397_v1  ;;  %1369 = vmatprep.subr.bf16.mxu1 (!%p189_p3), %v1397_v1 }
   0xc   : > { %1335 = vmatpush3.bf16.msra.mxu0 (!%p189_p3), %v1397_v1  ;;  %1371 = vmatpush3.bf16.msra.mxu1 (!%p189_p3), %v1397_v1 }
   0xe   : > { %s1602_s18 = smov (!%p230_p4, %s1114_s18), 63 }
   0xf   : > { %s1115_s21 = sshll.u32 %s1602_s18, 2 }
  0x10   : > { %s1490_s24 = scalar_lea.vmem %s1593_s0, %s1115_s21  ;;  %s1542_s29 = scalar_lea.vmem %s1596_s3, %s1115_s21 }
  0x11   : > { %v1398_v2 = vld [vmem:[%s1490_s24] sm:$0xff]   ;;  %v1400_v4 = vld [vmem:[%s1490_s24 + $0x8] sm:$0xff]   ;;  %v1402_v6 = vld [vmem:[%s1490_s24 + $0x10] sm:$0xff]  }
  0x12   : > { %v1399_v3 = vld [vmem:[%s1490_s24 + $0x40] sm:$0xff]   ;;  %1336 = vmatprep.mubr.msk.bf16.mxu0 %vm456_vm0, %v1398_v2  ;;  %v1401_v5 = vld [vmem:[%s1490_s24 + $0x48] sm:$0xff]   ;;  %v1403_v7 = vld [vmem:[%s1490_s24 + $0x50] sm:$0xff]  }
  0x13   : > { %1352 = vmatprep.mubr.msk.bf16.mxu1 %vm456_vm0, %v1399_v3  ;;  %1337 = vmatmul.mubr.msk.bf16.vlgmr.msra.gmra.mrb[0].mxu0 %vm456_vm0, %v1400_v4  ;;  %v1404_v8 = vld [vmem:[%s1490_s24 + $0x18] sm:$0xff]   ;;  %v1406_v10 = vld [vmem:[%s1490_s24 + $0x20] sm:$0xff]   ;;  %v1408_v12 = vld [vmem:[%s1490_s24 + $0x28] sm:$0xff]  }
  0x14   : > { %1353 = vmatmul.mubr.msk.bf16.vlgmr.msra.gmra.mrb[0].mxu1 %vm456_vm0, %v1401_v5  ;;  %1340 = vmatprep.mubr.msk.bf16.mxu0 %vm456_vm0, %v1402_v6  ;;  %v1405_v9 = vld [vmem:[%s1490_s24 + $0x58] sm:$0xff]   ;;  %v1407_v11 = vld [vmem:[%s1490_s24 + $0x60] sm:$0xff]   ;;  %v1409_v13 = vld [vmem:[%s1490_s24 + $0x68] sm:$0xff]  }
  0x15   : > { %1356 = vmatprep.mubr.msk.bf16.mxu1 %vm456_vm0, %v1403_v7  ;;  %v1410_v14 = vld [vmem:[%s1490_s24 + $0x30] sm:$0xff]   ;;  %v1412_v16 = vld [vmem:[%s1490_s24 + $0x38] sm:$0xff]  }
  0x16   : > { %v1411_v15 = vld [vmem:[%s1490_s24 + $0x70] sm:$0xff]   ;;  %v1413_v17 = vld [vmem:[%s1490_s24 + $0x78] sm:$0xff]  }
  0x1b   : > { %1341 = vmatmul.mubr.msk.bf16.gmra.mrb[4].mxu0 %vm456_vm0, %v1404_v8 }
  0x1c   : > { %1357 = vmatmul.mubr.msk.bf16.gmra.mrb[4].mxu1 %vm456_vm0, %v1405_v9  ;;  %1344 = vmatprep.mubr.msk.bf16.mxu0 %vm456_vm0, %v1406_v10 }
  0x1d   : > { %1360 = vmatprep.mubr.msk.bf16.mxu1 %vm456_vm0, %v1407_v11 }
  0x23   : > { %1345 = vmatmul.mubr.msk.bf16.gmra.mrb[8].mxu0 %vm456_vm0, %v1408_v12 }
  0x24   : > { %1361 = vmatmul.mubr.msk.bf16.gmra.mrb[8].mxu1 %vm456_vm0, %v1409_v13  ;;  %1348 = vmatprep.mubr.msk.bf16.mxu0 %vm456_vm0, %v1410_v14 }
  0x25   : > { %1364 = vmatprep.mubr.msk.bf16.mxu1 %vm456_vm0, %v1411_v15 }
  0x2b   : > { %1349 = vmatmul.mubr.msk.bf16.gmra.mrb[12].mxu0 %vm456_vm0, %v1412_v16 }
  0x2c   : > { %1365 = vmatmul.mubr.msk.bf16.gmra.mrb[12].mxu1 %vm456_vm0, %v1413_v17 }
  0xe6   : > { %v1338_v19 = vpop.f32.mrb[0].mxu0 }
  0xe7   : > { %v774_v20 = vadd.f32 %v1338_v19, %v1527_v18  ;;  %v1354_v21 = vpop.f32.mrb[0].mxu1  ;;  %v539_v22 = vpop.f32.mrb[1].mxu0 }
  0xe8   : > { %v790_v23 = vadd.f32 %v1354_v21, %v1527_v18  ;;  %v772_v24 = vadd.f32 %v1527_v18, %v539_v22  ;;  %v603_v25 = vpop.f32.mrb[1].mxu1  ;;  %v1339_v26 = vpop.f32.mrb[2].mxu0 }
  0xe9   : > { %v788_v27 = vadd.f32 %v1527_v18, %v603_v25  ;;  %v775_v28 = vadd.f32 %v1339_v26, %v1527_v18  ;;  %v1355_v29 = vpop.f32.mrb[2].mxu1  ;;  %v542_v30 = vpop.f32.mrb[3].mxu0  ;;  %v806_v34 = vmax.f32 %v774_v20, 0.0 }
  0xea   : > { %v791_v31 = vadd.f32 %v1355_v29, %v1527_v18  ;;  %v773_v32 = vadd.f32 %v1527_v18, %v542_v30  ;;  %v606_v33 = vpop.f32.mrb[3].mxu1  ;;  %v822_v37 = vmax.f32 %v790_v23, 0.0  ;;  %v804_v38 = vmax.f32 %v772_v24, 0.0 }
  0xeb   : > { %v807_v35 = vmax.f32 %v775_v28, 0.0  ;;  %v789_v36 = vadd.f32 %v1527_v18, %v606_v33  ;;  %v820_v41 = vmax.f32 %v788_v27, 0.0 }
  0xec   : > { %v823_v39 = vmax.f32 %v791_v31, 0.0  ;;  %v805_v40 = vmax.f32 %v773_v32, 0.0 }
  0xed   : > { %v1227_v42 = vpack.c.bf16 %v807_v35, %v806_v34  ;;  %v821_v43 = vmax.f32 %v789_v36, 0.0 }
  0xee   : > { %v1267_v44 = vpack.c.bf16 %v823_v39, %v822_v37  ;;  %v1222_v45 = vpack.c.bf16 %v805_v40, %v804_v38  ;;  %v1342_v46 = vpop.f32.mrb[4].mxu0 }
  0xef   : > { %1299 = vst [vmem:[%s1542_s29 + $0x8] sm:$0xff] %v1227_v42   ;;  %v1262_v47 = vpack.c.bf16 %v821_v43, %v820_v41  ;;  %v778_v48 = vadd.f32 %v1342_v46, %v1527_v18  ;;  %v1358_v49 = vpop.f32.mrb[4].mxu1  ;;  %v555_v50 = vpop.f32.mrb[5].mxu0 }
  0xf0   : > { %1307 = vst [vmem:[%s1542_s29 + $0x48] sm:$0xff] %v1267_v44   ;;  %1223 = vst [vmem:[%s1542_s29] sm:$0xff] %v1222_v45   ;;  %v794_v51 = vadd.f32 %v1358_v49, %v1527_v18  ;;  %v776_v52 = vadd.f32 %v1527_v18, %v555_v50  ;;  %v619_v53 = vpop.f32.mrb[5].mxu1  ;;  %v1343_v54 = vpop.f32.mrb[6].mxu0 }
  0xf1   : > { %1306 = vst [vmem:[%s1542_s29 + $0x40] sm:$0xff] %v1262_v47   ;;  %v792_v55 = vadd.f32 %v1527_v18, %v619_v53  ;;  %v779_v56 = vadd.f32 %v1343_v54, %v1527_v18  ;;  %v1359_v57 = vpop.f32.mrb[6].mxu1  ;;  %v558_v58 = vpop.f32.mrb[7].mxu0  ;;  %v810_v62 = vmax.f32 %v778_v48, 0.0 }
  0xf2   : > { %v795_v59 = vadd.f32 %v1359_v57, %v1527_v18  ;;  %v777_v60 = vadd.f32 %v1527_v18, %v558_v58  ;;  %v622_v61 = vpop.f32.mrb[7].mxu1  ;;  %v826_v1 = vmax.f32 %v794_v51, 0.0  ;;  %v808_v2 = vmax.f32 %v776_v52, 0.0 }
  0xf3   : > { %v811_v63 = vmax.f32 %v779_v56, 0.0  ;;  %v793_v0 = vadd.f32 %v1527_v18, %v622_v61  ;;  %v824_v5 = vmax.f32 %v792_v55, 0.0 }
  0xf4   : > { %v827_v3 = vmax.f32 %v795_v59, 0.0  ;;  %v809_v4 = vmax.f32 %v777_v60, 0.0 }
  0xf5   : > { %v1237_v6 = vpack.c.bf16 %v811_v63, %v810_v62  ;;  %v825_v7 = vmax.f32 %v793_v0, 0.0 }
  0xf6   : > { %v1277_v8 = vpack.c.bf16 %v827_v3, %v826_v1  ;;  %v1232_v9 = vpack.c.bf16 %v809_v4, %v808_v2  ;;  %v1346_v10 = vpop.f32.mrb[8].mxu0 }
  0xf7   : > { %1301 = vst [vmem:[%s1542_s29 + $0x18] sm:$0xff] %v1237_v6   ;;  %v1272_v11 = vpack.c.bf16 %v825_v7, %v824_v5  ;;  %v782_v12 = vadd.f32 %v1346_v10, %v1527_v18  ;;  %v1362_v13 = vpop.f32.mrb[8].mxu1  ;;  %v571_v14 = vpop.f32.mrb[9].mxu0 }
  0xf8   : > { %1309 = vst [vmem:[%s1542_s29 + $0x58] sm:$0xff] %v1277_v8   ;;  %1300 = vst [vmem:[%s1542_s29 + $0x10] sm:$0xff] %v1232_v9   ;;  %v798_v15 = vadd.f32 %v1362_v13, %v1527_v18  ;;  %v780_v16 = vadd.f32 %v1527_v18, %v571_v14  ;;  %v635_v17 = vpop.f32.mrb[9].mxu1  ;;  %v1347_v19 = vpop.f32.mrb[10].mxu0 }
  0xf9   : > { %1308 = vst [vmem:[%s1542_s29 + $0x50] sm:$0xff] %v1272_v11   ;;  %v796_v20 = vadd.f32 %v1527_v18, %v635_v17  ;;  %v783_v21 = vadd.f32 %v1347_v19, %v1527_v18  ;;  %v1363_v22 = vpop.f32.mrb[10].mxu1  ;;  %v574_v23 = vpop.f32.mrb[11].mxu0  ;;  %v814_v27 = vmax.f32 %v782_v12, 0.0 }
  0xfa   : > { %v799_v24 = vadd.f32 %v1363_v22, %v1527_v18  ;;  %v781_v25 = vadd.f32 %v1527_v18, %v574_v23  ;;  %v638_v26 = vpop.f32.mrb[11].mxu1  ;;  %v830_v30 = vmax.f32 %v798_v15, 0.0  ;;  %v812_v31 = vmax.f32 %v780_v16, 0.0 }
  0xfb   : > { %v815_v28 = vmax.f32 %v783_v21, 0.0  ;;  %v797_v29 = vadd.f32 %v1527_v18, %v638_v26  ;;  %v828_v34 = vmax.f32 %v796_v20, 0.0 }
  0xfc   : > { %v831_v32 = vmax.f32 %v799_v24, 0.0  ;;  %v813_v33 = vmax.f32 %v781_v25, 0.0 }
  0xfd   : > { %v1247_v35 = vpack.c.bf16 %v815_v28, %v814_v27  ;;  %v829_v36 = vmax.f32 %v797_v29, 0.0 }
  0xfe   : > { %v1287_v37 = vpack.c.bf16 %v831_v32, %v830_v30  ;;  %v1242_v38 = vpack.c.bf16 %v813_v33, %v812_v31  ;;  %v1350_v39 = vpop.f32.mrb[12].mxu0 }
  0xff   : > { %1303 = vst [vmem:[%s1542_s29 + $0x28] sm:$0xff] %v1247_v35   ;;  %v1282_v40 = vpack.c.bf16 %v829_v36, %v828_v34  ;;  %v786_v41 = vadd.f32 %v1350_v39, %v1527_v18  ;;  %v1366_v42 = vpop.f32.mrb[12].mxu1  ;;  %v587_v43 = vpop.f32.mrb[13].mxu0 }
 0x100   : > { %1311 = vst [vmem:[%s1542_s29 + $0x68] sm:$0xff] %v1287_v37   ;;  %1302 = vst [vmem:[%s1542_s29 + $0x20] sm:$0xff] %v1242_v38   ;;  %v802_v44 = vadd.f32 %v1366_v42, %v1527_v18  ;;  %v784_v45 = vadd.f32 %v1527_v18, %v587_v43  ;;  %v651_v46 = vpop.f32.mrb[13].mxu1  ;;  %v1351_v47 = vpop.f32.mrb[14].mxu0 }
 0x101   : > { %1310 = vst [vmem:[%s1542_s29 + $0x60] sm:$0xff] %v1282_v40   ;;  %v800_v48 = vadd.f32 %v1527_v18, %v651_v46  ;;  %v787_v49 = vadd.f32 %v1351_v47, %v1527_v18  ;;  %v1367_v50 = vpop.f32.mrb[14].mxu1  ;;  %v590_v51 = vpop.f32.mrb[15].mxu0  ;;  %v818_v55 = vmax.f32 %v786_v41, 0.0 }
 0x102   : > { %v803_v52 = vadd.f32 %v1367_v50, %v1527_v18  ;;  %v785_v53 = vadd.f32 %v1527_v18, %v590_v51  ;;  %v654_v54 = vpop.f32.mrb[15].mxu1  ;;  %v834_v58 = vmax.f32 %v802_v44, 0.0  ;;  %v816_v59 = vmax.f32 %v784_v45, 0.0 }
 0x103   : > { %v819_v56 = vmax.f32 %v787_v49, 0.0  ;;  %v801_v57 = vadd.f32 %v1527_v18, %v654_v54  ;;  %v832_v62 = vmax.f32 %v800_v48, 0.0 }
 0x104   : > { %v835_v60 = vmax.f32 %v803_v52, 0.0  ;;  %v817_v61 = vmax.f32 %v785_v53, 0.0 }
 0x105   : > { %v1257_v63 = vpack.c.bf16 %v819_v56, %v818_v55  ;;  %v833_v0 = vmax.f32 %v801_v57, 0.0 }
 0x106   : > { %v1297_v1 = vpack.c.bf16 %v835_v60, %v834_v58  ;;  %v1252_v2 = vpack.c.bf16 %v817_v61, %v816_v59 }
 0x107   : > { %1305 = vst [vmem:[%s1542_s29 + $0x38] sm:$0xff] %v1257_v63   ;;  %v1292_v3 = vpack.c.bf16 %v833_v0, %v832_v62 }
 0x108   : > { %1313 = vst [vmem:[%s1542_s29 + $0x78] sm:$0xff] %v1297_v1   ;;  %1304 = vst [vmem:[%s1542_s29 + $0x30] sm:$0xff] %v1252_v2  }
 0x109   : > { %1312 = vst [vmem:[%s1542_s29 + $0x70] sm:$0xff] %v1292_v3  }
 0x10a PF: > { %s13_s14 = sadd.s32 1, %s1436_s14   ;;  %s1597_s12 = smov %s1432_s13 }
 0x10b   : > { %p10_p5 = scmp.ge.s32.totalorder %s13_s14, 4   ;;  %s1598_s13 = smov %s1600_s15 }
 0x10d   :  { %12 = sbr.rel (!%p10_p5) target bundleno = 2 (0x2), region = 76 }

// kernel: _lambda_.24
= control target key start
LH: loop header
LB: loop body
LE: loop exit
PB: predicated region body
PF: predicated region fallthrough
CT: control target
= control target key end

     0   :  { %s1736_s12 = smov 0   ;;  %s1738_s13 = smov 0   ;;  %s1981_s0 = inlined_call_operand.vmem [shape: bf16[512,1152], index: 0, kind: input, shape index: {}]   ;;  %s1982_s1 = inlined_call_operand.vmem [shape: bf16[1152,128], index: 1, kind: input, shape index: {}]   ;;  %s1983_s2 = inlined_call_operand.vmem [shape: f32[1,128], index: 2, kind: input, shape index: {}]   ;;  %s1984_s3 = inlined_call_operand.vmem [shape: bf16[512,128], index: 3, kind: output, shape index: {}]  }
   0x1   :  { %s1740_s14 = smov 0   ;;  %s1742_s15 = smov 0  }
   0x2   :  { %s1744_s16 = smov 0   ;;  %s1746_s17 = smov 0  }
   0x3   :  { %s1748_s18 = smov 0  }
   0x4 LB: > { %s25_s19 = sadd.s32 1, %s1705_s16  ;;  %s32_s20 = sadd.s32 1, %s1709_s17  ;;  %s1713_s18 = sphi %s1748_s18, %s13_s18   ;;  %s1709_s17 = sphi %s1746_s17, %s1990_s17   ;;  %s1705_s16 = sphi %s1744_s16, %s1989_s16   ;;  %s1701_s15 = sphi %s1742_s15, %s1988_s15   ;;  %s1697_s14 = sphi %s1740_s14, %s1987_s14   ;;  %s1693_s13 = sphi %s1738_s13, %s1986_s13   ;;  %s1689_s12 = sphi %s1736_s12, %s1985_s12  }
   0x5   : > { %p26_p0 = scmp.ge.s32.totalorder %s25_s19, 9  ;;  %p48_p1 = scmp.ne.s32.totalorder %s1693_s13, %s1689_s12 }
   0x6   : > { %p49_p2 = scmp.eq.s32.totalorder %s1713_s18, 0  ;;  %s41_s24 = sadd.s32 1, %s1693_s13 }
   0x7   : > { %s1992_s19 = smov (%p26_p0, %s25_s19), 0  ;;  %s1994_s20 = smov (!%p26_p0, %s32_s20), %s1709_s17 }
   0x8   : > { %p50_p3 = por %p49_p2, %p48_p1  ;;  %p34_p4 = scmp.ge.s32.totalorder %s1994_s20, 2 }
   0x9   : > { %s37_s21 = ssub.s32 %s1705_s16, %s1992_s19  ;;  %p1290_p6 = scmp.ge.s32.totalorder %s1713_s18, 18 }
   0xa   : > { %s1996_s20 = smov (%p34_p4, %s1994_s20), 0 }
   0xb   : > { %s36_s22 = ssub.s32 %s1709_s17, %s1996_s20  ;;  %162 = sbr.rel (%p1290_p6) target bundleno = 46 (0x2e), region = 20 }
   0xc   : > { %s38_s23 = sor.u32 %s37_s21, %s36_s22 }
   0xd   : > { %p39_p5 = scmp.eq.s32.totalorder %s38_s23, 0 }
   0xf   : > { %s1787_s25 = scalar_select %p39_p5, %s1693_s13, %s41_s24  }
  0x12   : > { %165 = sbr.rel (!%p50_p3) target bundleno = 46 (0x2e), region = 24  ;;  %s167_s26 = sand.u32 (%p50_p3), 1, %s1693_s13  }
  0x13   : > { %s1577_s27 = smul.u32 (%p50_p3), 288, %s1709_s17  ;;  %s1291_s28 = sshll.u32 (%p50_p3), %s167_s26, 7 }
  0x14   : > { %s1801_s7 = scalar_lea.vmem (%p50_p3), [#allocation3], %s1291_s28 }
  0x15   : > { %s172_s29 = sadd.s32 (%p50_p3), %s1705_s16, %s1577_s27 }
  0x16   : > { %s1294_s30 = sshll.u32 (%p50_p3), %s172_s29, 2 }
  0x17   : > { %s1796_s6 = scalar_lea.vmem (%p50_p3), %s1981_s0, %s1294_s30 }
  0x18   : > { %v190_v0 = vld [vmem:[%s1796_s6] sm:$0xf] (%p50_p3)  ;;  %v192_v1 = vld [vmem:[%s1796_s6 + $0x24] sm:$0xf] (%p50_p3)  ;;  %v194_v2 = vld [vmem:[%s1796_s6 + $0x48] sm:$0xf] (%p50_p3) }
  0x19   : > { %191 = vst [vmem:[%s1801_s7] sm:$0xf] %v190_v0  ;;  %193 = vst [vmem:[%s1801_s7 + $0x4] sm:$0xf] %v192_v1  ;;  %v196_v3 = vld [vmem:[%s1796_s6 + $0x6c] sm:$0xf] }
  0x1a   : > { %195 = vst [vmem:[%s1801_s7 + $0x8] sm:$0xf] %v194_v2  ;;  %v198_v4 = vld [vmem:[%s1796_s6 + $0x90] sm:$0xf]  ;;  %v200_v5 = vld [vmem:[%s1796_s6 + $0xb4] sm:$0xf] }
  0x1b   : > { %197 = vst [vmem:[%s1801_s7 + $0xc] sm:$0xf] %v196_v3  ;;  %199 = vst [vmem:[%s1801_s7 + $0x10] sm:$0xf] %v198_v4  ;;  %v202_v6 = vld [vmem:[%s1796_s6 + $0xd8] sm:$0xf] }
  0x1c   : > { %201 = vst [vmem:[%s1801_s7 + $0x14] sm:$0xf] %v200_v5  ;;  %v204_v7 = vld [vmem:[%s1796_s6 + $0xfc] sm:$0xf]  ;;  %v206_v8 = vld [vmem:[%s1796_s6 + $0x120] sm:$0xf] }
  0x1d   : > { %203 = vst [vmem:[%s1801_s7 + $0x18] sm:$0xf] %v202_v6  ;;  %205 = vst [vmem:[%s1801_s7 + $0x1c] sm:$0xf] %v204_v7  ;;  %v208_v9 = vld [vmem:[%s1796_s6 + $0x144] sm:$0xf] }
  0x1e   : > { %207 = vst [vmem:[%s1801_s7 + $0x20] sm:$0xf] %v206_v8  ;;  %v210_v10 = vld [vmem:[%s1796_s6 + $0x168] sm:$0xf]  ;;  %v212_v11 = vld [vmem:[%s1796_s6 + $0x18c] sm:$0xf] }
  0x1f   : > { %209 = vst [vmem:[%s1801_s7 + $0x24] sm:$0xf] %v208_v9  ;;  %211 = vst [vmem:[%s1801_s7 + $0x28] sm:$0xf] %v210_v10  ;;  %v214_v12 = vld [vmem:[%s1796_s6 + $0x1b0] sm:$0xf] }
  0x20   : > { %213 = vst [vmem:[%s1801_s7 + $0x2c] sm:$0xf] %v212_v11  ;;  %v216_v13 = vld [vmem:[%s1796_s6 + $0x1d4] sm:$0xf]  ;;  %v218_v14 = vld [vmem:[%s1796_s6 + $0x1f8] sm:$0xf] }
  0x21   : > { %215 = vst [vmem:[%s1801_s7 + $0x30] sm:$0xf] %v214_v12  ;;  %217 = vst [vmem:[%s1801_s7 + $0x34] sm:$0xf] %v216_v13  ;;  %v220_v15 = vld [vmem:[%s1796_s6 + $0x21c] sm:$0xf] }
  0x22   : > { %219 = vst [vmem:[%s1801_s7 + $0x38] sm:$0xf] %v218_v14  ;;  %v222_v16 = vld [vmem:[%s1796_s6 + $0x240] sm:$0xf]  ;;  %v224_v17 = vld [vmem:[%s1796_s6 + $0x264] sm:$0xf] }
  0x23   : > { %221 = vst [vmem:[%s1801_s7 + $0x3c] sm:$0xf] %v220_v15  ;;  %223 = vst [vmem:[%s1801_s7 + $0x40] sm:$0xf] %v222_v16  ;;  %v226_v18 = vld [vmem:[%s1796_s6 + $0x288] sm:$0xf] }
  0x24   : > { %225 = vst [vmem:[%s1801_s7 + $0x44] sm:$0xf] %v224_v17  ;;  %v228_v19 = vld [vmem:[%s1796_s6 + $0x2ac] sm:$0xf]  ;;  %v230_v20 = vld [vmem:[%s1796_s6 + $0x2d0] sm:$0xf] }
  0x25   : > { %227 = vst [vmem:[%s1801_s7 + $0x48] sm:$0xf] %v226_v18  ;;  %229 = vst [vmem:[%s1801_s7 + $0x4c] sm:$0xf] %v228_v19  ;;  %v232_v21 = vld [vmem:[%s1796_s6 + $0x2f4] sm:$0xf] }
  0x26   : > { %231 = vst [vmem:[%s1801_s7 + $0x50] sm:$0xf] %v230_v20  ;;  %v234_v22 = vld [vmem:[%s1796_s6 + $0x318] sm:$0xf]  ;;  %v236_v23 = vld [vmem:[%s1796_s6 + $0x33c] sm:$0xf] }
  0x27   : > { %233 = vst [vmem:[%s1801_s7 + $0x54] sm:$0xf] %v232_v21  ;;  %235 = vst [vmem:[%s1801_s7 + $0x58] sm:$0xf] %v234_v22  ;;  %v238_v24 = vld [vmem:[%s1796_s6 + $0x360] sm:$0xf] }
  0x28   : > { %237 = vst [vmem:[%s1801_s7 + $0x5c] sm:$0xf] %v236_v23  ;;  %v240_v25 = vld [vmem:[%s1796_s6 + $0x384] sm:$0xf]  ;;  %v242_v26 = vld [vmem:[%s1796_s6 + $0x3a8] sm:$0xf] }
  0x29   : > { %239 = vst [vmem:[%s1801_s7 + $0x60] sm:$0xf] %v238_v24  ;;  %241 = vst [vmem:[%s1801_s7 + $0x64] sm:$0xf] %v240_v25  ;;  %v244_v27 = vld [vmem:[%s1796_s6 + $0x3cc] sm:$0xf] }
  0x2a   : > { %243 = vst [vmem:[%s1801_s7 + $0x68] sm:$0xf] %v242_v26  ;;  %v246_v28 = vld [vmem:[%s1796_s6 + $0x3f0] sm:$0xf]  ;;  %v248_v29 = vld [vmem:[%s1796_s6 + $0x414] sm:$0xf] }
  0x2b   : > { %245 = vst [vmem:[%s1801_s7 + $0x6c] sm:$0xf] %v244_v27  ;;  %247 = vst [vmem:[%s1801_s7 + $0x70] sm:$0xf] %v246_v28  ;;  %v250_v30 = vld [vmem:[%s1796_s6 + $0x438] sm:$0xf] }
  0x2c   : > { %249 = vst [vmem:[%s1801_s7 + $0x74] sm:$0xf] %v248_v29  ;;  %v252_v31 = vld [vmem:[%s1796_s6 + $0x45c] sm:$0xf]  ;;  %251 = vst [vmem:[%s1801_s7 + $0x78] sm:$0xf] %v250_v30 }
  0x2d   : > { %253 = vst [vmem:[%s1801_s7 + $0x7c] sm:$0xf] %v252_v31 }
  0x2e PF: > { %p1295_p7 = scmp.ge.s32.totalorder %s1713_s18, 1  ;;  %p351_p8 = scmp.lt.s32.totalorder %s1713_s18, 19 }
  0x30   : > { %p352_p9 = pnand %p1295_p7, %p351_p8 }
  0x31   : > { %s358_s8 = sand.u32 (!%p352_p9), 1, %s1689_s12   ;;  %s1297_s9 = sshll.u32 (!%p352_p9), %s1697_s14, 4 }
  0x32   : > { %355 = sbr.rel (%p352_p9) target bundleno = 366 (0x16e), region = 69  ;;  %s1296_s10 = sshll.u32 (!%p352_p9), %s358_s8, 7 }
  0x33   : > { %p397_p10 = scmp.lt.s32.totalorder (!%p352_p9), %s1297_s9, 143  ;;  %s1299_s11 = sshll.u32 (!%p352_p9), %s1701_s15, 5 }
  0x34   : > { %p409_p11 = scmp.lt.s32.totalorder (!%p352_p9), %s1299_s11, 63  ;;  %s1879_s12 = scalar_lea.vmem (!%p352_p9), [#allocation3], %s1296_s10 }
  0x35   : > { %p1301_p12 = scmp.ne.s32.totalorder (!%p352_p9), %s1697_s14, 0 }
  0x39   : > { %s1998_s9 = smov (!%p397_p10, %s1297_s9), 143  ;;  %s2000_s11 = smov (!%p409_p11, %s1299_s11), 63 }
  0x3a   : > { %s1298_s21 = sshll.u32 %s1998_s9, 2  ;;  %s1300_s26 = sshll.u32 %s2000_s11, 2  ;;  %v1715_v32 = vmov (!%p1301_p12), 0.0  }
  0x3b   : > { %s1872_s24 = scalar_lea.vmem %s1982_s1, %s1298_s21  ;;  %s1877_s29 = scalar_lea.vmem %s1984_s3, %s1300_s26  ;;  %422 = vst [vmem:[#allocation2] sm:$0xff] (!%p1301_p12), %v1715_v32  ;;  %423 = vst [vmem:[#allocation2 + $0x8] sm:$0xff] (!%p1301_p12), %v1715_v32 }
  0x3c   : > { %421 = sbr.rel (%p1301_p12) target bundleno = 75 (0x4b), region = 77  ;;  %424 = vst [vmem:[#allocation2 + $0x10] sm:$0xff] (!%p1301_p12), %v1715_v32  ;;  %425 = vst [vmem:[#allocation2 + $0x18] sm:$0xff] (!%p1301_p12), %v1715_v32 }
  0x3d   : > { %426 = vst [vmem:[#allocation2 + $0x20] sm:$0xff] (!%p1301_p12), %v1715_v32  ;;  %427 = vst [vmem:[#allocation2 + $0x28] sm:$0xff] (!%p1301_p12), %v1715_v32 }
  0x3e   : > { %428 = vst [vmem:[#allocation2 + $0x30] sm:$0xff] (!%p1301_p12), %v1715_v32  ;;  %429 = vst [vmem:[#allocation2 + $0x38] sm:$0xff] (!%p1301_p12), %v1715_v32 }
  0x3f   : > { %430 = vst [vmem:[#allocation2 + $0x40] sm:$0xff] (!%p1301_p12), %v1715_v32  ;;  %431 = vst [vmem:[#allocation2 + $0x48] sm:$0xff] (!%p1301_p12), %v1715_v32 }
  0x40   : > { %432 = vst [vmem:[#allocation2 + $0x50] sm:$0xff] (!%p1301_p12), %v1715_v32  ;;  %433 = vst [vmem:[#allocation2 + $0x58] sm:$0xff] (!%p1301_p12), %v1715_v32 }
  0x41   : > { %434 = vst [vmem:[#allocation2 + $0x60] sm:$0xff] (!%p1301_p12), %v1715_v32  ;;  %435 = vst [vmem:[#allocation2 + $0x68] sm:$0xff] (!%p1301_p12), %v1715_v32 }
  0x42   : > { %436 = vst [vmem:[#allocation2 + $0x70] sm:$0xff] (!%p1301_p12), %v1715_v32  ;;  %437 = vst [vmem:[#allocation2 + $0x78] sm:$0xff] (!%p1301_p12), %v1715_v32 }
  0x43   : > { %438 = vst [vmem:[#allocation2 + $0x80] sm:$0xff] %v1715_v32  ;;  %439 = vst [vmem:[#allocation2 + $0x88] sm:$0xff] %v1715_v32 }
  0x44   : > { %440 = vst [vmem:[#allocation2 + $0x90] sm:$0xff] %v1715_v32  ;;  %441 = vst [vmem:[#allocation2 + $0x98] sm:$0xff] %v1715_v32 }
  0x45   : > { %442 = vst [vmem:[#allocation2 + $0xa0] sm:$0xff] %v1715_v32  ;;  %443 = vst [vmem:[#allocation2 + $0xa8] sm:$0xff] %v1715_v32 }
  0x46   : > { %444 = vst [vmem:[#allocation2 + $0xb0] sm:$0xff] %v1715_v32  ;;  %445 = vst [vmem:[#allocation2 + $0xb8] sm:$0xff] %v1715_v32 }
  0x47   : > { %446 = vst [vmem:[#allocation2 + $0xc0] sm:$0xff] %v1715_v32  ;;  %447 = vst [vmem:[#allocation2 + $0xc8] sm:$0xff] %v1715_v32 }
  0x48   : > { %448 = vst [vmem:[#allocation2 + $0xd0] sm:$0xff] %v1715_v32  ;;  %449 = vst [vmem:[#allocation2 + $0xd8] sm:$0xff] %v1715_v32 }
  0x49   : > { %450 = vst [vmem:[#allocation2 + $0xe0] sm:$0xff] %v1715_v32  ;;  %451 = vst [vmem:[#allocation2 + $0xe8] sm:$0xff] %v1715_v32 }
  0x4a   : > { %452 = vst [vmem:[#allocation2 + $0xf0] sm:$0xff] %v1715_v32  ;;  %453 = vst [vmem:[#allocation2 + $0xf8] sm:$0xff] %v1715_v32 }
  0x4b PF: > { %v1635_v33 = vld [vmem:[%s1872_s24] sm:$0xff]   ;;  %v1636_v34 = vld [vmem:[%s1872_s24 + $0x8] sm:$0xff]   ;;  %v1637_v35 = vld [vmem:[%s1872_s24 + $0x10] sm:$0xff]   ;;  %p1326_p13 = scmp.ne.s32.totalorder %s1697_s14, 8 }
  0x4c   : > { %1513 = vmatprep.subr.bf16.mxu0 %v1635_v33  ;;  %1561 = vmatprep.subr.bf16.mxu1 %v1635_v33  ;;  %v1638_v36 = vld [vmem:[%s1872_s24 + $0x18] sm:$0xff]   ;;  %v1643_v37 = vld [vmem:[%s1879_s12] sm:$0xff]   ;;  %v1640_v40 = vld [vmem:[%s1872_s24 + $0x28] sm:$0xff]  }
  0x4d   : > { %1514 = vmatpush3.bf16.msra.mxu0 %v1635_v33  ;;  %1569 = vmatpush3.bf16.msra.mxu1 %v1635_v33  ;;  %v1644_v38 = vld [vmem:[%s1879_s12 + $0x40] sm:$0xff]   ;;  %v1641_v41 = vld [vmem:[%s1872_s24 + $0x30] sm:$0xff]   ;;  %v1642_v42 = vld [vmem:[%s1872_s24 + $0x38] sm:$0xff]  }
  0x4e   : > { %1515 = vmatprep.subr.bf16.mxu0 %v1636_v34  ;;  %1562 = vmatprep.subr.bf16.mxu1 %v1636_v34  ;;  %v1639_v39 = vld [vmem:[%s1872_s24 + $0x20] sm:$0xff]   ;;  %v1645_v43 = vld [vmem:[%s1879_s12 + $0x8] sm:$0xff]   ;;  %v1647_v45 = vld [vmem:[%s1879_s12 + $0x10] sm:$0xff]  }
  0x4f   : > { %1529 = vmatprep.mubr.bf16.mxu0 %v1643_v37  ;;  %1545 = vmatprep.mubr.bf16.mxu1 %v1644_v38  ;;  %v1646_v44 = vld [vmem:[%s1879_s12 + $0x48] sm:$0xff]   ;;  %v1648_v46 = vld [vmem:[%s1879_s12 + $0x50] sm:$0xff]   ;;  %v1649_v47 = vld [vmem:[%s1879_s12 + $0x18] sm:$0xff]  }
  0x50   : > { %v1650_v48 = vld [vmem:[%s1879_s12 + $0x58] sm:$0xff]   ;;  %v1651_v49 = vld [vmem:[%s1879_s12 + $0x20] sm:$0xff]   ;;  %v1653_v51 = vld [vmem:[%s1879_s12 + $0x28] sm:$0xff]  }
  0x51   : > { %1516 = vmatpush3.bf16.msra.mxu0 %v1636_v34  ;;  %1570 = vmatpush3.bf16.msra.mxu1 %v1636_v34  ;;  %v1652_v50 = vld [vmem:[%s1879_s12 + $0x60] sm:$0xff]   ;;  %v1654_v52 = vld [vmem:[%s1879_s12 + $0x68] sm:$0xff]   ;;  %v1655_v53 = vld [vmem:[%s1879_s12 + $0x30] sm:$0xff]  }
  0x52   : > { %1517 = vmatprep.subr.bf16.mxu0 %v1637_v35  ;;  %1563 = vmatprep.subr.bf16.mxu1 %v1637_v35  ;;  %v1656_v54 = vld [vmem:[%s1879_s12 + $0x70] sm:$0xff]   ;;  %v1657_v55 = vld [vmem:[%s1879_s12 + $0x38] sm:$0xff]   ;;  %v454_v59 = vld [vmem:[#allocation2] sm:$0xff] }
  0x53   : > { %v1658_v56 = vld [vmem:[%s1879_s12 + $0x78] sm:$0xff]   ;;  %v456_v57 = vld [vmem:[#allocation2 + $0x10] sm:$0xff]  ;;  %v470_v60 = vld [vmem:[#allocation2 + $0x80] sm:$0xff] }
  0x54   : > { %v472_v58 = vld [vmem:[#allocation2 + $0x90] sm:$0xff]  ;;  %v457_v63 = vld [vmem:[#allocation2 + $0x18] sm:$0xff]  ;;  %v455_v5 = vld [vmem:[#allocation2 + $0x8] sm:$0xff] }
  0x55   : > { %1518 = vmatpush3.bf16.msra.mxu0 %v1637_v35  ;;  %1571 = vmatpush3.bf16.msra.mxu1 %v1637_v35  ;;  %v473_v0 = vld [vmem:[#allocation2 + $0x98] sm:$0xff]  ;;  %v471_v6 = vld [vmem:[#allocation2 + $0x88] sm:$0xff]  ;;  %v460_v17 = vld [vmem:[#allocation2 + $0x30] sm:$0xff] }
  0x56   : > { %1519 = vmatprep.subr.bf16.mxu0 %v1638_v36  ;;  %1564 = vmatprep.subr.bf16.mxu1 %v1638_v36  ;;  %v476_v18 = vld [vmem:[#allocation2 + $0xb0] sm:$0xff]  ;;  %v458_v19 = vld [vmem:[#allocation2 + $0x20] sm:$0xff]  ;;  %v461_v23 = vld [vmem:[#allocation2 + $0x38] sm:$0xff] }
  0x57   : > { %v474_v20 = vld [vmem:[#allocation2 + $0xa0] sm:$0xff]  ;;  %v477_v24 = vld [vmem:[#allocation2 + $0xb8] sm:$0xff]  ;;  %v459_v29 = vld [vmem:[#allocation2 + $0x28] sm:$0xff] }
  0x58   : > { %v475_v30 = vld [vmem:[#allocation2 + $0xa8] sm:$0xff] }
  0x59   : > { %1520 = vmatpush3.bf16.msra.mxu0 %v1638_v36  ;;  %1572 = vmatpush3.bf16.msra.mxu1 %v1638_v36 }
  0x5a   : > { %1521 = vmatprep.subr.bf16.mxu0 %v1639_v39  ;;  %1565 = vmatprep.subr.bf16.mxu1 %v1639_v39 }
  0x5d   : > { %1522 = vmatpush3.bf16.msra.mxu0 %v1639_v39  ;;  %1573 = vmatpush3.bf16.msra.mxu1 %v1639_v39 }
  0x5e   : > { %1523 = vmatprep.subr.bf16.mxu0 %v1640_v40  ;;  %1566 = vmatprep.subr.bf16.mxu1 %v1640_v40 }
  0x61   : > { %1524 = vmatpush3.bf16.msra.mxu0 %v1640_v40  ;;  %1574 = vmatpush3.bf16.msra.mxu1 %v1640_v40 }
  0x62   : > { %1525 = vmatprep.subr.bf16.mxu0 %v1641_v41  ;;  %1567 = vmatprep.subr.bf16.mxu1 %v1641_v41 }
  0x65   : > { %1526 = vmatpush3.bf16.msra.mxu0 %v1641_v41  ;;  %1575 = vmatpush3.bf16.msra.mxu1 %v1641_v41  ;;  %v464_v41 = vld [vmem:[#allocation2 + $0x50] sm:$0xff] }
  0x66   : > { %1527 = vmatprep.subr.bf16.mxu0 %v1642_v42  ;;  %1568 = vmatprep.subr.bf16.mxu1 %v1642_v42 }
  0x69   : > { %1528 = vmatpush3.bf16.msra.mxu0 %v1642_v42  ;;  %1576 = vmatpush3.bf16.msra.mxu1 %v1642_v42  ;;  %v480_v42 = vld [vmem:[#allocation2 + $0xd0] sm:$0xff] }
  0x6c   : > { %1530 = vmatmul.mubr.bf16.vlgmr.msra.gmra.mrb[0].mxu0 %v1645_v43  ;;  %1546 = vmatmul.mubr.bf16.vlgmr.msra.gmra.mrb[0].mxu1 %v1646_v44  ;;  %v462_v43 = vld [vmem:[#allocation2 + $0x40] sm:$0xff] }
  0x6d   : > { %1533 = vmatprep.mubr.bf16.mxu0 %v1647_v45  ;;  %1549 = vmatprep.mubr.bf16.mxu1 %v1648_v46  ;;  %v478_v44 = vld [vmem:[#allocation2 + $0xc0] sm:$0xff] }
  0x74   : > { %1534 = vmatmul.mubr.bf16.gmra.mrb[4].mxu0 %v1649_v47  ;;  %1550 = vmatmul.mubr.bf16.gmra.mrb[4].mxu1 %v1650_v48  ;;  %v465_v47 = vld [vmem:[#allocation2 + $0x58] sm:$0xff] }
  0x75   : > { %1537 = vmatprep.mubr.bf16.mxu0 %v1651_v49  ;;  %1553 = vmatprep.mubr.bf16.mxu1 %v1652_v50  ;;  %v481_v48 = vld [vmem:[#allocation2 + $0xd8] sm:$0xff] }
  0x7c   : > { %1538 = vmatmul.mubr.bf16.gmra.mrb[8].mxu0 %v1653_v51  ;;  %1554 = vmatmul.mubr.bf16.gmra.mrb[8].mxu1 %v1654_v52 }
  0x7d   : > { %1541 = vmatprep.mubr.bf16.mxu0 %v1655_v53  ;;  %1557 = vmatprep.mubr.bf16.mxu1 %v1656_v54  ;;  %v463_v53 = vld [vmem:[#allocation2 + $0x48] sm:$0xff] }
  0x7e   : > { %v479_v54 = vld [vmem:[#allocation2 + $0xc8] sm:$0xff] }
  0x84   : > { %1542 = vmatmul.mubr.bf16.gmra.mrb[12].mxu0 %v1657_v55  ;;  %1558 = vmatmul.mubr.bf16.gmra.mrb[12].mxu1 %v1658_v56 }
 0x13f   : > { %v1531_v61 = vpop.f32.mrb[0].mxu0  ;;  %v1547_v62 = vpop.f32.mrb[0].mxu1 }
 0x140   : > { %v841_v1 = vadd.f32 %v1531_v61, %v456_v57  ;;  %v857_v2 = vadd.f32 %v1547_v62, %v472_v58  ;;  %v712_v3 = vpop.f32.mrb[1].mxu0  ;;  %v776_v4 = vpop.f32.mrb[1].mxu1 }
 0x141   : > { %v839_v7 = vadd.f32 %v712_v3, %v454_v59  ;;  %v855_v8 = vadd.f32 %v776_v4, %v470_v60  ;;  %v1532_v9 = vpop.f32.mrb[2].mxu0  ;;  %v1548_v10 = vpop.f32.mrb[2].mxu1  ;;  %v466_v3 = vld [vmem:[#allocation2 + $0x60] sm:$0xff] }
 0x142   : > { %873 = vst [vmem:[#allocation2 + $0x10] sm:$0xff] %v841_v1  ;;  %889 = vst [vmem:[#allocation2 + $0x90] sm:$0xff] %v857_v2  ;;  %v842_v11 = vadd.f32 %v1532_v9, %v457_v63  ;;  %v858_v12 = vadd.f32 %v1548_v10, %v473_v0  ;;  %v715_v13 = vpop.f32.mrb[3].mxu0  ;;  %v779_v14 = vpop.f32.mrb[3].mxu1  ;;  %v468_v1 = vld [vmem:[#allocation2 + $0x70] sm:$0xff]  ;;  %v482_v4 = vld [vmem:[#allocation2 + $0xe0] sm:$0xff] }
 0x143   : > { %871 = vst [vmem:[#allocation2] sm:$0xff] %v839_v7  ;;  %887 = vst [vmem:[#allocation2 + $0x80] sm:$0xff] %v855_v8  ;;  %v840_v15 = vadd.f32 %v715_v13, %v455_v5  ;;  %v856_v16 = vadd.f32 %v779_v14, %v471_v6  ;;  %v484_v2 = vld [vmem:[#allocation2 + $0xf0] sm:$0xff]  ;;  %v469_v7 = vld [vmem:[#allocation2 + $0x78] sm:$0xff] }
 0x144   : > { %874 = vst [vmem:[#allocation2 + $0x18] sm:$0xff] %v842_v11  ;;  %890 = vst [vmem:[#allocation2 + $0x98] sm:$0xff] %v858_v12  ;;  %v485_v8 = vld [vmem:[#allocation2 + $0xf8] sm:$0xff]  ;;  %v467_v13 = vld [vmem:[#allocation2 + $0x68] sm:$0xff] }
 0x145   : > { %872 = vst [vmem:[#allocation2 + $0x8] sm:$0xff] %v840_v15  ;;  %888 = vst [vmem:[#allocation2 + $0x88] sm:$0xff] %v856_v16  ;;  %v483_v14 = vld [vmem:[#allocation2 + $0xe8] sm:$0xff] }
 0x147   : > { %v1535_v21 = vpop.f32.mrb[4].mxu0  ;;  %v1551_v22 = vpop.f32.mrb[4].mxu1 }
 0x148   : > { %v845_v25 = vadd.f32 %v1535_v21, %v460_v17  ;;  %v861_v26 = vadd.f32 %v1551_v22, %v476_v18  ;;  %v728_v27 = vpop.f32.mrb[5].mxu0  ;;  %v792_v28 = vpop.f32.mrb[5].mxu1 }
 0x149   : > { %v843_v31 = vadd.f32 %v728_v27, %v458_v19  ;;  %v859_v32 = vadd.f32 %v792_v28, %v474_v20  ;;  %v1536_v33 = vpop.f32.mrb[6].mxu0  ;;  %v1552_v34 = vpop.f32.mrb[6].mxu1  ;;  %v1910_v27 = vld [vmem:[%s1983_s2] ss:$0 sm:$0xff] (!%p1326_p13) }
 0x14a   : > { %877 = vst [vmem:[#allocation2 + $0x30] sm:$0xff] %v845_v25  ;;  %893 = vst [vmem:[#allocation2 + $0xb0] sm:$0xff] %v861_v26  ;;  %v846_v35 = vadd.f32 %v1536_v33, %v461_v23  ;;  %v862_v36 = vadd.f32 %v1552_v34, %v477_v24  ;;  %v731_v37 = vpop.f32.mrb[7].mxu0  ;;  %v795_v38 = vpop.f32.mrb[7].mxu1  ;;  %v907_v25 = vld [vmem:[#allocation2] sm:$0xff] (!%p1326_p13) }
 0x14b   : > { %875 = vst [vmem:[#allocation2 + $0x20] sm:$0xff] %v843_v31  ;;  %891 = vst [vmem:[#allocation2 + $0xa0] sm:$0xff] %v859_v32  ;;  %v844_v39 = vadd.f32 %v731_v37, %v459_v29  ;;  %v860_v40 = vadd.f32 %v795_v38, %v475_v30  ;;  %v946_v28 = vadd.f32 (!%p1326_p13), %v1910_v27, %v907_v25  ;;  %v909_v30 = vld [vmem:[#allocation2 + $0x10] sm:$0xff] (!%p1326_p13)  ;;  %v910_v31 = vld [vmem:[#allocation2 + $0x18] sm:$0xff] (!%p1326_p13) }
 0x14c   : > { %878 = vst [vmem:[#allocation2 + $0x38] sm:$0xff] %v846_v35  ;;  %894 = vst [vmem:[#allocation2 + $0xb8] sm:$0xff] %v862_v36  ;;  %v908_v26 = vld [vmem:[#allocation2 + $0x8] sm:$0xff] (!%p1326_p13)  ;;  %v948_v33 = vadd.f32 (!%p1326_p13), %v1910_v27, %v909_v30  ;;  %v949_v34 = vadd.f32 (!%p1326_p13), %v1910_v27, %v910_v31 }
 0x14d   : > { %876 = vst [vmem:[#allocation2 + $0x28] sm:$0xff] %v844_v39  ;;  %892 = vst [vmem:[#allocation2 + $0xa8] sm:$0xff] %v860_v40  ;;  %v947_v29 = vadd.f32 (!%p1326_p13), %v1910_v27, %v908_v26  ;;  %v978_v39 = vmax.f32 (!%p1326_p13), %v946_v28, 0.0 }
 0x14f   : > { %v1539_v45 = vpop.f32.mrb[8].mxu0  ;;  %v1555_v46 = vpop.f32.mrb[8].mxu1  ;;  %v979_v40 = vmax.f32 (!%p1326_p13), %v947_v29, 0.0 }
 0x150   : > { %v849_v49 = vadd.f32 %v1539_v45, %v464_v41  ;;  %v865_v50 = vadd.f32 %v1555_v46, %v480_v42  ;;  %v744_v51 = vpop.f32.mrb[9].mxu0  ;;  %v808_v52 = vpop.f32.mrb[9].mxu1  ;;  %v980_v46 = vmax.f32 (!%p1326_p13), %v948_v33, 0.0 }
 0x151   : > { %v847_v55 = vadd.f32 %v744_v51, %v462_v43  ;;  %v863_v56 = vadd.f32 %v808_v52, %v478_v44  ;;  %v1540_v57 = vpop.f32.mrb[10].mxu0  ;;  %v1556_v58 = vpop.f32.mrb[10].mxu1  ;;  %v913_v37 = vld [vmem:[#allocation2 + $0x30] sm:$0xff] (!%p1326_p13)  ;;  %v1397_v52 = vpack.c.bf16 (!%p1326_p13), %v979_v40, %v978_v39 }
 0x152   : > { %881 = vst [vmem:[#allocation2 + $0x50] sm:$0xff] %v849_v49  ;;  %897 = vst [vmem:[#allocation2 + $0xd0] sm:$0xff] %v865_v50  ;;  %v850_v59 = vadd.f32 %v1540_v57, %v465_v47  ;;  %v866_v60 = vadd.f32 %v1556_v58, %v481_v48  ;;  %v747_v61 = vpop.f32.mrb[11].mxu0  ;;  %v811_v62 = vpop.f32.mrb[11].mxu1  ;;  %v911_v32 = vld [vmem:[#allocation2 + $0x20] sm:$0xff] (!%p1326_p13)  ;;  %v952_v42 = vadd.f32 (!%p1326_p13), %v1910_v27, %v913_v37  ;;  %v981_v47 = vmax.f32 (!%p1326_p13), %v949_v34, 0.0 }
 0x153   : > { %879 = vst [vmem:[#allocation2 + $0x40] sm:$0xff] %v847_v55  ;;  %895 = vst [vmem:[#allocation2 + $0xc0] sm:$0xff] %v863_v56  ;;  %v848_v63 = vadd.f32 %v747_v61, %v463_v53  ;;  %v864_v0 = vadd.f32 %v811_v62, %v479_v54  ;;  %v950_v36 = vadd.f32 (!%p1326_p13), %v1910_v27, %v911_v32  ;;  %v914_v38 = vld [vmem:[#allocation2 + $0x38] sm:$0xff] (!%p1326_p13)  ;;  %v929_v25 = vld [vmem:[#allocation2 + $0xb0] sm:$0xff] (!%p1326_p13) }
 0x154   : > { %882 = vst [vmem:[#allocation2 + $0x58] sm:$0xff] %v850_v59  ;;  %898 = vst [vmem:[#allocation2 + $0xd8] sm:$0xff] %v866_v60  ;;  %v912_v35 = vld [vmem:[#allocation2 + $0x28] sm:$0xff] (!%p1326_p13)  ;;  %v953_v49 = vadd.f32 (!%p1326_p13), %v1910_v27, %v914_v38  ;;  %v984_v54 = vmax.f32 (!%p1326_p13), %v952_v42, 0.0  ;;  %v1402_v57 = vpack.c.bf16 (!%p1326_p13), %v981_v47, %v980_v46  ;;  %v930_v26 = vld [vmem:[#allocation2 + $0xb8] sm:$0xff] (!%p1326_p13) }
 0x155   : > { %880 = vst [vmem:[#allocation2 + $0x48] sm:$0xff] %v848_v63  ;;  %896 = vst [vmem:[#allocation2 + $0xc8] sm:$0xff] %v864_v0  ;;  %v951_v41 = vadd.f32 (!%p1326_p13), %v1910_v27, %v912_v35  ;;  %v982_v48 = vmax.f32 (!%p1326_p13), %v950_v36, 0.0  ;;  %v969_v42 = vadd.f32 (!%p1326_p13), %v1910_v27, %v930_v26 }
 0x156   : > { %v985_v58 = vmax.f32 (!%p1326_p13), %v953_v49, 0.0  ;;  %1398 = vst [vmem:[%s1877_s29] sm:$0xff] (!%p1326_p13), %v1397_v52   ;;  %1474 = vst [vmem:[%s1877_s29 + $0x8] sm:$0xff] (!%p1326_p13), %v1402_v57  }
 0x157   : > { %v1543_v5 = vpop.f32.mrb[12].mxu0  ;;  %v1559_v6 = vpop.f32.mrb[12].mxu1  ;;  %906 = sbr.rel (%p1326_p13) target bundleno = 366 (0x16e), region = 81  ;;  %v983_v53 = vmax.f32 (!%p1326_p13), %v951_v41, 0.0  ;;  %v968_v41 = vadd.f32 (!%p1326_p13), %v1910_v27, %v929_v25  ;;  %v1001_v52 = vmax.f32 (!%p1326_p13), %v969_v42, 0.0 }
 0x158   : > { %v853_v9 = vadd.f32 %v1543_v5, %v468_v1  ;;  %v869_v10 = vadd.f32 %v1559_v6, %v484_v2  ;;  %v760_v11 = vpop.f32.mrb[13].mxu0  ;;  %v824_v12 = vpop.f32.mrb[13].mxu1  ;;  %v1412_v5 = vpack.c.bf16 (!%p1326_p13), %v985_v58, %v984_v54 }
 0x159   : > { %v851_v15 = vadd.f32 %v760_v11, %v466_v3  ;;  %v867_v16 = vadd.f32 %v824_v12, %v482_v4  ;;  %v1544_v17 = vpop.f32.mrb[14].mxu0  ;;  %v1560_v18 = vpop.f32.mrb[14].mxu1  ;;  %v917_v45 = vld [vmem:[#allocation2 + $0x50] sm:$0xff] (!%p1326_p13)  ;;  %v1407_v63 = vpack.c.bf16 (!%p1326_p13), %v983_v53, %v982_v48  ;;  %v923_v3 = vld [vmem:[#allocation2 + $0x80] sm:$0xff] (!%p1326_p13)  ;;  %v924_v4 = vld [vmem:[#allocation2 + $0x88] sm:$0xff] (!%p1326_p13) }
 0x15a   : > { %885 = vst [vmem:[#allocation2 + $0x70] sm:$0xff] %v853_v9  ;;  %901 = vst [vmem:[#allocation2 + $0xf0] sm:$0xff] %v869_v10  ;;  %v854_v19 = vadd.f32 %v1544_v17, %v469_v7  ;;  %v870_v20 = vadd.f32 %v1560_v18, %v485_v8  ;;  %v763_v21 = vpop.f32.mrb[15].mxu0  ;;  %v827_v22 = vpop.f32.mrb[15].mxu1  ;;  %v915_v43 = vld [vmem:[#allocation2 + $0x40] sm:$0xff] (!%p1326_p13)  ;;  %v956_v60 = vadd.f32 (!%p1326_p13), %v1910_v27, %v917_v45  ;;  %v925_v9 = vld [vmem:[#allocation2 + $0x90] sm:$0xff] (!%p1326_p13) }
 0x15b   : > { %883 = vst [vmem:[#allocation2 + $0x60] sm:$0xff] %v851_v15  ;;  %899 = vst [vmem:[#allocation2 + $0xe0] sm:$0xff] %v867_v16  ;;  %v852_v23 = vadd.f32 %v763_v21, %v467_v13  ;;  %v868_v24 = vadd.f32 %v827_v22, %v483_v14  ;;  %v918_v50 = vld [vmem:[#allocation2 + $0x58] sm:$0xff] (!%p1326_p13)  ;;  %v954_v55 = vadd.f32 (!%p1326_p13), %v1910_v27, %v915_v43  ;;  %v931_v32 = vld [vmem:[#allocation2 + $0xc0] sm:$0xff] (!%p1326_p13) }
 0x15c   : > { %886 = vst [vmem:[#allocation2 + $0x78] sm:$0xff] %v854_v19  ;;  %902 = vst [vmem:[#allocation2 + $0xf8] sm:$0xff] %v870_v20  ;;  %v916_v44 = vld [vmem:[#allocation2 + $0x48] sm:$0xff] (!%p1326_p13)  ;;  %v957_v1 = vadd.f32 (!%p1326_p13), %v1910_v27, %v918_v50  ;;  %v988_v7 = vmax.f32 (!%p1326_p13), %v956_v60, 0.0  ;;  %v926_v14 = vld [vmem:[#allocation2 + $0x98] sm:$0xff] (!%p1326_p13)  ;;  %v962_v17 = vadd.f32 (!%p1326_p13), %v1910_v27, %v923_v3  ;;  %v963_v18 = vadd.f32 (!%p1326_p13), %v1910_v27, %v924_v4 }
 0x15d   : > { %884 = vst [vmem:[#allocation2 + $0x68] sm:$0xff] %v852_v23  ;;  %900 = vst [vmem:[#allocation2 + $0xe8] sm:$0xff] %v868_v24  ;;  %v955_v59 = vadd.f32 (!%p1326_p13), %v1910_v27, %v916_v44  ;;  %v986_v0 = vmax.f32 (!%p1326_p13), %v954_v55, 0.0  ;;  %v927_v19 = vld [vmem:[#allocation2 + $0xa0] sm:$0xff] (!%p1326_p13)  ;;  %v928_v20 = vld [vmem:[#allocation2 + $0xa8] sm:$0xff] (!%p1326_p13)  ;;  %v964_v24 = vadd.f32 (!%p1326_p13), %v1910_v27, %v925_v9  ;;  %v965_v31 = vadd.f32 (!%p1326_p13), %v1910_v27, %v926_v14 }
 0x15e   : > { %1475 = vst [vmem:[%s1877_s29 + $0x10] sm:$0xff] %v1407_v63   ;;  %v989_v10 = vmax.f32 %v957_v1, 0.0  ;;  %1476 = vst [vmem:[%s1877_s29 + $0x18] sm:$0xff] %v1412_v5   ;;  %v994_v29 = vmax.f32 %v962_v17, 0.0  ;;  %v995_v30 = vmax.f32 %v963_v18, 0.0  ;;  %v932_v33 = vld [vmem:[#allocation2 + $0xc8] sm:$0xff]  ;;  %v966_v36 = vadd.f32 %v1910_v27, %v927_v19 }
 0x15f   : > { %v987_v6 = vmax.f32 %v955_v59, 0.0  ;;  %v996_v35 = vmax.f32 %v964_v24, 0.0  ;;  %v967_v37 = vadd.f32 %v1910_v27, %v928_v20  ;;  %v933_v38 = vld [vmem:[#allocation2 + $0xd0] sm:$0xff]  ;;  %v997_v40 = vmax.f32 %v965_v31, 0.0  ;;  %v934_v43 = vld [vmem:[#allocation2 + $0xd8] sm:$0xff] }
 0x160   : > { %v1422_v21 = vpack.c.bf16 %v989_v10, %v988_v7  ;;  %v1437_v39 = vpack.c.bf16 %v995_v30, %v994_v29  ;;  %v998_v44 = vmax.f32 %v966_v36, 0.0  ;;  %v970_v46 = vadd.f32 %v1910_v27, %v931_v32 }
 0x161   : > { %v921_v61 = vld [vmem:[#allocation2 + $0x70] sm:$0xff]  ;;  %v1417_v15 = vpack.c.bf16 %v987_v6, %v986_v0  ;;  %v999_v45 = vmax.f32 %v967_v37, 0.0  ;;  %v971_v47 = vadd.f32 %v1910_v27, %v932_v33  ;;  %v1442_v50 = vpack.c.bf16 %v997_v40, %v996_v35 }
 0x162   : > { %v919_v51 = vld [vmem:[#allocation2 + $0x60] sm:$0xff]  ;;  %v960_v12 = vadd.f32 %v1910_v27, %v921_v61  ;;  %1478 = vst [vmem:[%s1877_s29 + $0x28] sm:$0xff] %v1422_v21   ;;  %1481 = vst [vmem:[%s1877_s29 + $0x40] sm:$0xff] %v1437_v39   ;;  %v972_v53 = vadd.f32 %v1910_v27, %v933_v38  ;;  %v937_v54 = vld [vmem:[#allocation2 + $0xf0] sm:$0xff]  ;;  %v1002_v57 = vmax.f32 %v970_v46, 0.0  ;;  %v973_v59 = vadd.f32 %v1910_v27, %v934_v43 }
 0x163   : > { %v922_v62 = vld [vmem:[#allocation2 + $0x78] sm:$0xff]  ;;  %v958_v2 = vadd.f32 %v1910_v27, %v919_v51  ;;  %1477 = vst [vmem:[%s1877_s29 + $0x20] sm:$0xff] %v1417_v15   ;;  %v935_v48 = vld [vmem:[#allocation2 + $0xe0] sm:$0xff]  ;;  %v1000_v51 = vmax.f32 %v968_v41, 0.0  ;;  %v1003_v58 = vmax.f32 %v971_v47, 0.0  ;;  %1482 = vst [vmem:[%s1877_s29 + $0x48] sm:$0xff] %v1442_v50  }
 0x164   : > { %v920_v56 = vld [vmem:[#allocation2 + $0x68] sm:$0xff]  ;;  %v961_v13 = vadd.f32 %v1910_v27, %v922_v62  ;;  %v992_v22 = vmax.f32 %v960_v12, 0.0  ;;  %v938_v55 = vld [vmem:[#allocation2 + $0xf8] sm:$0xff]  ;;  %v1004_v61 = vmax.f32 %v972_v53, 0.0  ;;  %v974_v62 = vadd.f32 %v1910_v27, %v935_v48 }
 0x165   : > { %v959_v8 = vadd.f32 %v1910_v27, %v920_v56  ;;  %v990_v11 = vmax.f32 %v958_v2, 0.0  ;;  %v936_v49 = vld [vmem:[#allocation2 + $0xe8] sm:$0xff]  ;;  %v1447_v56 = vpack.c.bf16 %v999_v45, %v998_v44  ;;  %v1452_v60 = vpack.c.bf16 %v1001_v52, %v1000_v51 }
 0x166   : > { %v993_v23 = vmax.f32 %v961_v13, 0.0  ;;  %v975_v63 = vadd.f32 %v1910_v27, %v936_v49  ;;  %v1457_v0 = vpack.c.bf16 %v1003_v58, %v1002_v57  ;;  %v1005_v1 = vmax.f32 %v973_v59, 0.0 }
 0x167   : > { %v991_v16 = vmax.f32 %v959_v8, 0.0  ;;  %1483 = vst [vmem:[%s1877_s29 + $0x50] sm:$0xff] %v1447_v56   ;;  %v976_v2 = vadd.f32 %v1910_v27, %v937_v54  ;;  %v977_v3 = vadd.f32 %v1910_v27, %v938_v55  ;;  %1484 = vst [vmem:[%s1877_s29 + $0x58] sm:$0xff] %v1452_v60   ;;  %v1006_v4 = vmax.f32 %v974_v62, 0.0 }
 0x168   : > { %v1432_v34 = vpack.c.bf16 %v993_v23, %v992_v22  ;;  %v1007_v5 = vmax.f32 %v975_v63, 0.0  ;;  %1485 = vst [vmem:[%s1877_s29 + $0x60] sm:$0xff] %v1457_v0   ;;  %v1462_v6 = vpack.c.bf16 %v1005_v1, %v1004_v61 }
 0x169   : > { %v1427_v28 = vpack.c.bf16 %v991_v16, %v990_v11  ;;  %v1008_v7 = vmax.f32 %v976_v2, 0.0  ;;  %v1009_v8 = vmax.f32 %v977_v3, 0.0 }
 0x16a   : > { %1480 = vst [vmem:[%s1877_s29 + $0x38] sm:$0xff] %v1432_v34   ;;  %v1467_v9 = vpack.c.bf16 %v1007_v5, %v1006_v4  ;;  %1486 = vst [vmem:[%s1877_s29 + $0x68] sm:$0xff] %v1462_v6  }
 0x16b   : > { %1479 = vst [vmem:[%s1877_s29 + $0x30] sm:$0xff] %v1427_v28   ;;  %v1472_v10 = vpack.c.bf16 %v1009_v8, %v1008_v7 }
 0x16c   : > { %1487 = vst [vmem:[%s1877_s29 + $0x70] sm:$0xff] %v1467_v9  }
 0x16d   : > { %1488 = vst [vmem:[%s1877_s29 + $0x78] sm:$0xff] %v1472_v10  }
 0x16e PF: > { %s13_s18 = sadd.s32 1, %s1713_s18   ;;  %s1985_s12 = smov %s1693_s13 }
 0x16f   : > { %p10_p0 = scmp.ge.s32.totalorder %s13_s18, 20   ;;  %s1986_s13 = smov %s1787_s25 }
 0x170   : > { %s1987_s14 = smov %s1705_s16  ;;  %s1988_s15 = smov %s1709_s17 }
 0x171   : > { %s1989_s16 = smov %s1992_s19  ;;  %s1990_s17 = smov %s1996_s20 }
 0x172   :  { %12 = sbr.rel (!%p10_p0) target bundleno = 4 (0x4), region = 122 }

// kernel: _lambda_.26
= control target key start
LH: loop header
LB: loop body
LE: loop exit
PB: predicated region body
PF: predicated region fallthrough
CT: control target
= control target key end

     0   :  { %s721_s1 = inlined_call_operand.vmem [shape: bf16[128,128], index: 1, kind: input, shape index: {}]   ;;  %s722_s0 = inlined_call_operand.vmem [shape: bf16[128,128], index: 0, kind: input, shape index: {}]   ;;  %s723_s2 = inlined_call_operand.vmem [shape: f32[1,128], index: 2, kind: input, shape index: {}]   ;;  %s724_s3 = inlined_call_operand.vmem [shape: bf16[128,128], index: 3, kind: output, shape index: {}]  }
   0x1   :  { %v610_v0 = vld [vmem:[%s721_s1] sm:$0xff]   ;;  %v611_v1 = vld [vmem:[%s721_s1 + $0x8] sm:$0xff]   ;;  %v612_v2 = vld [vmem:[%s721_s1 + $0x10] sm:$0xff]  }
   0x2   :  { %562 = vmatprep.subr.bf16.mxu0 %v610_v0  ;;  %594 = vmatprep.subr.bf16.mxu1 %v610_v0  ;;  %v613_v3 = vld [vmem:[%s721_s1 + $0x18] sm:$0xff]   ;;  %v618_v4 = vld [vmem:[%s722_s0] sm:$0xff]   ;;  %v615_v7 = vld [vmem:[%s721_s1 + $0x28] sm:$0xff]  }
   0x3   :  { %563 = vmatpush3.bf16.msra.mxu0 %v610_v0  ;;  %602 = vmatpush3.bf16.msra.mxu1 %v610_v0  ;;  %v619_v5 = vld [vmem:[%s722_s0 + $0x20] sm:$0xff]   ;;  %v616_v8 = vld [vmem:[%s721_s1 + $0x30] sm:$0xff]   ;;  %v617_v9 = vld [vmem:[%s721_s1 + $0x38] sm:$0xff]  }
   0x4   :  { %564 = vmatprep.subr.bf16.mxu0 %v611_v1  ;;  %595 = vmatprep.subr.bf16.mxu1 %v611_v1  ;;  %v614_v6 = vld [vmem:[%s721_s1 + $0x20] sm:$0xff]   ;;  %v620_v10 = vld [vmem:[%s722_s0 + $0x8] sm:$0xff]   ;;  %v622_v12 = vld [vmem:[%s722_s0 + $0x10] sm:$0xff]  }
   0x5   :  { %578 = vmatprep.mubr.bf16.mxu0 %v618_v4  ;;  %586 = vmatprep.mubr.bf16.mxu1 %v619_v5  ;;  %v621_v11 = vld [vmem:[%s722_s0 + $0x28] sm:$0xff]   ;;  %v623_v13 = vld [vmem:[%s722_s0 + $0x30] sm:$0xff]   ;;  %v624_v14 = vld [vmem:[%s722_s0 + $0x18] sm:$0xff]  }
   0x6   :  { %v625_v15 = vld [vmem:[%s722_s0 + $0x38] sm:$0xff]   ;;  %v466_v16 = vld [vmem:[%s723_s2] ss:$0 sm:$0xff] }
   0x7   :  { %565 = vmatpush3.bf16.msra.mxu0 %v611_v1  ;;  %603 = vmatpush3.bf16.msra.mxu1 %v611_v1 }
   0x8   :  { %566 = vmatprep.subr.bf16.mxu0 %v612_v2  ;;  %596 = vmatprep.subr.bf16.mxu1 %v612_v2 }
   0xb   :  { %567 = vmatpush3.bf16.msra.mxu0 %v612_v2  ;;  %604 = vmatpush3.bf16.msra.mxu1 %v612_v2 }
   0xc   :  { %568 = vmatprep.subr.bf16.mxu0 %v613_v3  ;;  %597 = vmatprep.subr.bf16.mxu1 %v613_v3 }
   0xf   :  { %569 = vmatpush3.bf16.msra.mxu0 %v613_v3  ;;  %605 = vmatpush3.bf16.msra.mxu1 %v613_v3 }
  0x10   :  { %570 = vmatprep.subr.bf16.mxu0 %v614_v6  ;;  %598 = vmatprep.subr.bf16.mxu1 %v614_v6 }
  0x13   :  { %571 = vmatpush3.bf16.msra.mxu0 %v614_v6  ;;  %606 = vmatpush3.bf16.msra.mxu1 %v614_v6 }
  0x14   :  { %572 = vmatprep.subr.bf16.mxu0 %v615_v7  ;;  %599 = vmatprep.subr.bf16.mxu1 %v615_v7 }
  0x17   :  { %573 = vmatpush3.bf16.msra.mxu0 %v615_v7  ;;  %607 = vmatpush3.bf16.msra.mxu1 %v615_v7 }
  0x18   :  { %574 = vmatprep.subr.bf16.mxu0 %v616_v8  ;;  %600 = vmatprep.subr.bf16.mxu1 %v616_v8 }
  0x1b   :  { %575 = vmatpush3.bf16.msra.mxu0 %v616_v8  ;;  %608 = vmatpush3.bf16.msra.mxu1 %v616_v8 }
  0x1c   :  { %576 = vmatprep.subr.bf16.mxu0 %v617_v9  ;;  %601 = vmatprep.subr.bf16.mxu1 %v617_v9 }
  0x1f   :  { %577 = vmatpush3.bf16.msra.mxu0 %v617_v9  ;;  %609 = vmatpush3.bf16.msra.mxu1 %v617_v9 }
  0x22   :  { %579 = vmatmul.mubr.bf16.vlgmr.msra.gmra.mrb[0].mxu0 %v620_v10  ;;  %587 = vmatmul.mubr.bf16.vlgmr.msra.gmra.mrb[0].mxu1 %v621_v11 }
  0x23   :  { %582 = vmatprep.mubr.bf16.mxu0 %v622_v12  ;;  %590 = vmatprep.mubr.bf16.mxu1 %v623_v13 }
  0x2a   :  { %583 = vmatmul.mubr.bf16.gmra.mrb[4].mxu0 %v624_v14  ;;  %591 = vmatmul.mubr.bf16.gmra.mrb[4].mxu1 %v625_v15 }
  0xf5   :  { %v580_v17 = vpop.f32.mrb[0].mxu0  ;;  %v588_v18 = vpop.f32.mrb[0].mxu1 }
  0xf6   :  { %v336_v19 = vadd.f32 %v580_v17, %v466_v16  ;;  %v344_v20 = vadd.f32 %v588_v18, %v466_v16  ;;  %v213_v21 = vpop.f32.mrb[1].mxu0  ;;  %v245_v22 = vpop.f32.mrb[1].mxu1 }
  0xf7   :  { %v334_v23 = vadd.f32 %v466_v16, %v213_v21  ;;  %v342_v24 = vadd.f32 %v466_v16, %v245_v22  ;;  %v581_v25 = vpop.f32.mrb[2].mxu0  ;;  %v589_v26 = vpop.f32.mrb[2].mxu1 }
  0xf8   :  { %v337_v27 = vadd.f32 %v581_v25, %v466_v16  ;;  %v345_v28 = vadd.f32 %v589_v26, %v466_v16  ;;  %v216_v29 = vpop.f32.mrb[3].mxu0  ;;  %v248_v30 = vpop.f32.mrb[3].mxu1  ;;  %v352_v33 = vmax.f32 %v336_v19, 0.0  ;;  %v360_v34 = vmax.f32 %v344_v20, 0.0 }
  0xf9   :  { %v335_v31 = vadd.f32 %v466_v16, %v216_v29  ;;  %v343_v32 = vadd.f32 %v466_v16, %v248_v30  ;;  %v350_v37 = vmax.f32 %v334_v23, 0.0  ;;  %v358_v38 = vmax.f32 %v342_v24, 0.0 }
  0xfa   :  { %v353_v35 = vmax.f32 %v337_v27, 0.0  ;;  %v361_v36 = vmax.f32 %v345_v28, 0.0 }
  0xfb   :  { %v351_v39 = vmax.f32 %v335_v31, 0.0  ;;  %v359_v40 = vmax.f32 %v343_v32, 0.0 }
  0xfc   :  { %v507_v41 = vpack.c.bf16 %v353_v35, %v352_v33  ;;  %v527_v42 = vpack.c.bf16 %v361_v36, %v360_v34 }
  0xfd   :  { %v502_v43 = vpack.c.bf16 %v351_v39, %v350_v37  ;;  %v522_v44 = vpack.c.bf16 %v359_v40, %v358_v38  ;;  %v584_v45 = vpop.f32.mrb[4].mxu0  ;;  %v592_v46 = vpop.f32.mrb[4].mxu1 }
  0xfe   :  { %539 = vst [vmem:[%s724_s3 + $0x8] sm:$0xff] %v507_v41   ;;  %543 = vst [vmem:[%s724_s3 + $0x28] sm:$0xff] %v527_v42   ;;  %v340_v47 = vadd.f32 %v584_v45, %v466_v16  ;;  %v348_v48 = vadd.f32 %v592_v46, %v466_v16  ;;  %v229_v49 = vpop.f32.mrb[5].mxu0  ;;  %v261_v50 = vpop.f32.mrb[5].mxu1 }
  0xff   :  { %503 = vst [vmem:[%s724_s3] sm:$0xff] %v502_v43   ;;  %542 = vst [vmem:[%s724_s3 + $0x20] sm:$0xff] %v522_v44   ;;  %v338_v51 = vadd.f32 %v466_v16, %v229_v49  ;;  %v346_v52 = vadd.f32 %v466_v16, %v261_v50  ;;  %v585_v53 = vpop.f32.mrb[6].mxu0  ;;  %v593_v54 = vpop.f32.mrb[6].mxu1 }
 0x100   :  { %v341_v55 = vadd.f32 %v585_v53, %v466_v16  ;;  %v349_v56 = vadd.f32 %v593_v54, %v466_v16  ;;  %v232_v57 = vpop.f32.mrb[7].mxu0  ;;  %v264_v58 = vpop.f32.mrb[7].mxu1  ;;  %v356_v61 = vmax.f32 %v340_v47, 0.0  ;;  %v364_v62 = vmax.f32 %v348_v48, 0.0 }
 0x101   :  { %v339_v59 = vadd.f32 %v466_v16, %v232_v57  ;;  %v347_v60 = vadd.f32 %v466_v16, %v264_v58  ;;  %v354_v1 = vmax.f32 %v338_v51, 0.0  ;;  %v362_v2 = vmax.f32 %v346_v52, 0.0 }
 0x102   :  { %v357_v63 = vmax.f32 %v341_v55, 0.0  ;;  %v365_v0 = vmax.f32 %v349_v56, 0.0 }
 0x103   :  { %v355_v3 = vmax.f32 %v339_v59, 0.0  ;;  %v363_v4 = vmax.f32 %v347_v60, 0.0 }
 0x104   :  { %v517_v5 = vpack.c.bf16 %v357_v63, %v356_v61  ;;  %v537_v6 = vpack.c.bf16 %v365_v0, %v364_v62 }
 0x105   :  { %v512_v7 = vpack.c.bf16 %v355_v3, %v354_v1  ;;  %v532_v8 = vpack.c.bf16 %v363_v4, %v362_v2 }
 0x106   :  { %541 = vst [vmem:[%s724_s3 + $0x18] sm:$0xff] %v517_v5   ;;  %545 = vst [vmem:[%s724_s3 + $0x38] sm:$0xff] %v537_v6  }
 0x107   :  { %540 = vst [vmem:[%s724_s3 + $0x10] sm:$0xff] %v512_v7   ;;  %544 = vst [vmem:[%s724_s3 + $0x30] sm:$0xff] %v532_v8  }

// kernel: _lambda_.27
= control target key start
LH: loop header
LB: loop body
LE: loop exit
PB: predicated region body
PF: predicated region fallthrough
CT: control target
= control target key end

     0   :  { %s1190_s12 = smov 0   ;;  %s1192_s13 = smov 0   ;;  %s1322_s0 = inlined_call_operand.vmem [shape: bf16[128,1152], index: 0, kind: input, shape index: {}]   ;;  %s1323_s1 = inlined_call_operand.vmem [shape: bf16[1152,128], index: 1, kind: input, shape index: {}]   ;;  %s1324_s2 = inlined_call_operand.vmem [shape: f32[1,128], index: 2, kind: input, shape index: {}]   ;;  %s1325_s3 = inlined_call_operand.vmem [shape: bf16[128,128], index: 3, kind: output, shape index: {}]  }
   0x1   :  { %s1194_s14 = smov 0   ;;  %s1196_s15 = smov 0  }
   0x2   :  { %s1198_s16 = smov 0  }
   0x3 LB: > { %s25_s17 = sadd.s32 1, %s1163_s15  ;;  %p48_p1 = scmp.ne.s32.totalorder %s1155_s13, %s1151_s12  ;;  %s1167_s16 = sphi %s1198_s16, %s13_s16   ;;  %s1163_s15 = sphi %s1196_s15, %s1329_s15   ;;  %s1159_s14 = sphi %s1194_s14, %s1328_s14   ;;  %s1155_s13 = sphi %s1192_s13, %s1327_s13   ;;  %s1151_s12 = sphi %s1190_s12, %s1326_s12  }
   0x4   : > { %p26_p0 = scmp.ge.s32.totalorder %s25_s17, 9  ;;  %p49_p2 = scmp.eq.s32.totalorder %s1167_s16, 0 }
   0x5   : > { %s41_s19 = sadd.s32 1, %s1155_s13  ;;  %p899_p5 = scmp.ge.s32.totalorder %s1167_s16, 9 }
   0x6   : > { %s1331_s17 = smov (%p26_p0, %s25_s17), 0  ;;  %p50_p3 = por %p49_p2, %p48_p1 }
   0x7   : > { %s37_s18 = ssub.s32 %s1163_s15, %s1331_s17  ;;  %162 = sbr.rel (%p899_p5) target bundleno = 28 (0x1c), region = 20 }
   0x8   : > { %p39_p4 = scmp.eq.s32.totalorder %s37_s18, 0 }
   0xa   : > { %s1225_s20 = scalar_select %p39_p4, %s1155_s13, %s41_s19  }
   0xe   : > { %165 = sbr.rel (!%p50_p3) target bundleno = 28 (0x1c), region = 24  ;;  %s167_s21 = sand.u32 (%p50_p3), 1, %s1155_s13  }
   0xf   : > { %s901_s22 = sshll.u32 (%p50_p3), %s1163_s15, 2  ;;  %s900_s23 = sshll.u32 (%p50_p3), %s167_s21, 6 }
  0x10   : > { %s1233_s26 = scalar_lea.vmem (%p50_p3), %s1322_s0, %s901_s22  ;;  %s169_s27 = scalar_lea.vmem (%p50_p3), [#allocation3], %s900_s23 }
  0x11   : > { %v190_v0 = vld [vmem:[%s1233_s26] sm:$0xf] (%p50_p3)  ;;  %v192_v1 = vld [vmem:[%s1233_s26 + $0x24] sm:$0xf] (%p50_p3)  ;;  %v194_v2 = vld [vmem:[%s1233_s26 + $0x48] sm:$0xf] (%p50_p3) }
  0x12   : > { %191 = vst [vmem:[%s169_s27] sm:$0xf] (%p50_p3), %v190_v0  ;;  %193 = vst [vmem:[%s169_s27 + $0x4] sm:$0xf] (%p50_p3), %v192_v1  ;;  %v196_v3 = vld [vmem:[%s1233_s26 + $0x6c] sm:$0xf] (%p50_p3) }
  0x13   : > { %v198_v4 = vld [vmem:[%s1233_s26 + $0x90] sm:$0xf] (%p50_p3)  ;;  %195 = vst [vmem:[%s169_s27 + $0x8] sm:$0xf] (%p50_p3), %v194_v2  ;;  %197 = vst [vmem:[%s169_s27 + $0xc] sm:$0xf] (%p50_p3), %v196_v3 }
  0x14   : > { %199 = vst [vmem:[%s169_s27 + $0x10] sm:$0xf] (%p50_p3), %v198_v4  ;;  %v200_v5 = vld [vmem:[%s1233_s26 + $0xb4] sm:$0xf] (%p50_p3)  ;;  %v202_v6 = vld [vmem:[%s1233_s26 + $0xd8] sm:$0xf] (%p50_p3) }
  0x15   : > { %v204_v7 = vld [vmem:[%s1233_s26 + $0xfc] sm:$0xf]  ;;  %201 = vst [vmem:[%s169_s27 + $0x14] sm:$0xf] %v200_v5  ;;  %203 = vst [vmem:[%s169_s27 + $0x18] sm:$0xf] %v202_v6 }
  0x16   : > { %205 = vst [vmem:[%s169_s27 + $0x1c] sm:$0xf] %v204_v7  ;;  %v206_v8 = vld [vmem:[%s1233_s26 + $0x120] sm:$0xf]  ;;  %v208_v9 = vld [vmem:[%s1233_s26 + $0x144] sm:$0xf] }
  0x17   : > { %v210_v10 = vld [vmem:[%s1233_s26 + $0x168] sm:$0xf]  ;;  %207 = vst [vmem:[%s169_s27 + $0x20] sm:$0xf] %v206_v8  ;;  %209 = vst [vmem:[%s169_s27 + $0x24] sm:$0xf] %v208_v9 }
  0x18   : > { %211 = vst [vmem:[%s169_s27 + $0x28] sm:$0xf] %v210_v10  ;;  %v212_v11 = vld [vmem:[%s1233_s26 + $0x18c] sm:$0xf]  ;;  %v214_v12 = vld [vmem:[%s1233_s26 + $0x1b0] sm:$0xf] }
  0x19   : > { %v216_v13 = vld [vmem:[%s1233_s26 + $0x1d4] sm:$0xf]  ;;  %213 = vst [vmem:[%s169_s27 + $0x2c] sm:$0xf] %v212_v11  ;;  %215 = vst [vmem:[%s169_s27 + $0x30] sm:$0xf] %v214_v12 }
  0x1a   : > { %217 = vst [vmem:[%s169_s27 + $0x34] sm:$0xf] %v216_v13  ;;  %v218_v14 = vld [vmem:[%s1233_s26 + $0x1f8] sm:$0xf]  ;;  %v220_v15 = vld [vmem:[%s1233_s26 + $0x21c] sm:$0xf] }
  0x1b   : > { %219 = vst [vmem:[%s169_s27 + $0x38] sm:$0xf] %v218_v14  ;;  %221 = vst [vmem:[%s169_s27 + $0x3c] sm:$0xf] %v220_v15 }
  0x1c PF: > { %p902_p6 = scmp.ge.s32.totalorder %s1167_s16, 1  ;;  %p287_p7 = scmp.lt.s32.totalorder %s1167_s16, 10 }
  0x1e   : > { %p288_p8 = pnand %p902_p6, %p287_p7 }
  0x1f   : > { %s294_s28 = sand.u32 (!%p288_p8), 1, %s1151_s12   ;;  %s904_s29 = sshll.u32 (!%p288_p8), %s1159_s14, 4 }
  0x20   : > { %291 = sbr.rel (%p288_p8) target bundleno = 323 (0x143), region = 69  ;;  %s903_s30 = sshll.u32 (!%p288_p8), %s294_s28, 6 }
  0x21   : > { %p333_p9 = scmp.lt.s32.totalorder (!%p288_p8), %s904_s29, 143  ;;  %s1260_s8 = scalar_lea.vmem (!%p288_p8), [#allocation3], %s903_s30 }
  0x22   : > { %p906_p10 = scmp.ne.s32.totalorder (!%p288_p8), %s1159_s14, 0 }
  0x27   : > { %s1333_s29 = smov (!%p333_p9, %s904_s29), 143  ;;  %357 = sbr.rel (%p906_p10) target bundleno = 49 (0x31), region = 77 }
  0x28   : > { %s905_s4 = sshll.u32 %s1333_s29, 2  ;;  %v1169_v16 = vmov (!%p906_p10), 0.0  }
  0x29   : > { %s1258_s7 = scalar_lea.vmem %s1323_s1, %s905_s4  ;;  %358 = vst [vmem:[#allocation2] sm:$0xff] (!%p906_p10), %v1169_v16  ;;  %359 = vst [vmem:[#allocation2 + $0x8] sm:$0xff] (!%p906_p10), %v1169_v16 }
  0x2a   : > { %360 = vst [vmem:[#allocation2 + $0x10] sm:$0xff] (!%p906_p10), %v1169_v16  ;;  %361 = vst [vmem:[#allocation2 + $0x18] sm:$0xff] (!%p906_p10), %v1169_v16 }
  0x2b   : > { %362 = vst [vmem:[#allocation2 + $0x20] sm:$0xff] (!%p906_p10), %v1169_v16  ;;  %363 = vst [vmem:[#allocation2 + $0x28] sm:$0xff] (!%p906_p10), %v1169_v16 }
  0x2c   : > { %364 = vst [vmem:[#allocation2 + $0x30] sm:$0xff] (!%p906_p10), %v1169_v16  ;;  %365 = vst [vmem:[#allocation2 + $0x38] sm:$0xff] (!%p906_p10), %v1169_v16 }
  0x2d   : > { %366 = vst [vmem:[#allocation2 + $0x40] sm:$0xff] (!%p906_p10), %v1169_v16  ;;  %367 = vst [vmem:[#allocation2 + $0x48] sm:$0xff] (!%p906_p10), %v1169_v16 }
  0x2e   : > { %368 = vst [vmem:[#allocation2 + $0x50] sm:$0xff] %v1169_v16  ;;  %369 = vst [vmem:[#allocation2 + $0x58] sm:$0xff] %v1169_v16 }
  0x2f   : > { %370 = vst [vmem:[#allocation2 + $0x60] sm:$0xff] %v1169_v16  ;;  %371 = vst [vmem:[#allocation2 + $0x68] sm:$0xff] %v1169_v16 }
  0x30   : > { %372 = vst [vmem:[#allocation2 + $0x70] sm:$0xff] %v1169_v16  ;;  %373 = vst [vmem:[#allocation2 + $0x78] sm:$0xff] %v1169_v16 }
  0x31 PF: > { %v1113_v17 = vld [vmem:[%s1258_s7] sm:$0xff]   ;;  %v1114_v18 = vld [vmem:[%s1258_s7 + $0x8] sm:$0xff]   ;;  %v1115_v19 = vld [vmem:[%s1258_s7 + $0x10] sm:$0xff]   ;;  %p923_p11 = scmp.ne.s32.totalorder %s1159_s14, 8 }
  0x32   : > { %1024 = vmatprep.subr.bf16.mxu0 %v1113_v17  ;;  %1056 = vmatprep.subr.bf16.mxu1 %v1113_v17  ;;  %v1116_v20 = vld [vmem:[%s1258_s7 + $0x18] sm:$0xff]   ;;  %v1121_v21 = vld [vmem:[%s1260_s8] sm:$0xff]   ;;  %v1118_v24 = vld [vmem:[%s1258_s7 + $0x28] sm:$0xff]  }
  0x33   : > { %1025 = vmatpush3.bf16.msra.mxu0 %v1113_v17  ;;  %1064 = vmatpush3.bf16.msra.mxu1 %v1113_v17  ;;  %v1122_v22 = vld [vmem:[%s1260_s8 + $0x20] sm:$0xff]   ;;  %v1119_v25 = vld [vmem:[%s1258_s7 + $0x30] sm:$0xff]   ;;  %v1120_v26 = vld [vmem:[%s1258_s7 + $0x38] sm:$0xff]  }
  0x34   : > { %1026 = vmatprep.subr.bf16.mxu0 %v1114_v18  ;;  %1057 = vmatprep.subr.bf16.mxu1 %v1114_v18  ;;  %v1117_v23 = vld [vmem:[%s1258_s7 + $0x20] sm:$0xff]   ;;  %v1123_v27 = vld [vmem:[%s1260_s8 + $0x8] sm:$0xff]   ;;  %v1125_v29 = vld [vmem:[%s1260_s8 + $0x10] sm:$0xff]  }
  0x35   : > { %1040 = vmatprep.mubr.bf16.mxu0 %v1121_v21  ;;  %1048 = vmatprep.mubr.bf16.mxu1 %v1122_v22  ;;  %v1124_v28 = vld [vmem:[%s1260_s8 + $0x28] sm:$0xff]   ;;  %v1126_v30 = vld [vmem:[%s1260_s8 + $0x30] sm:$0xff]   ;;  %v1127_v31 = vld [vmem:[%s1260_s8 + $0x18] sm:$0xff]  }
  0x36   : > { %v1128_v32 = vld [vmem:[%s1260_s8 + $0x38] sm:$0xff]   ;;  %v376_v33 = vld [vmem:[#allocation2 + $0x10] sm:$0xff]  ;;  %v374_v35 = vld [vmem:[#allocation2] sm:$0xff] }
  0x37   : > { %1027 = vmatpush3.bf16.msra.mxu0 %v1114_v18  ;;  %1065 = vmatpush3.bf16.msra.mxu1 %v1114_v18  ;;  %v384_v34 = vld [vmem:[#allocation2 + $0x50] sm:$0xff]  ;;  %v382_v36 = vld [vmem:[#allocation2 + $0x40] sm:$0xff]  ;;  %v377_v39 = vld [vmem:[#allocation2 + $0x18] sm:$0xff] }
  0x38   : > { %1028 = vmatprep.subr.bf16.mxu0 %v1115_v19  ;;  %1058 = vmatprep.subr.bf16.mxu1 %v1115_v19  ;;  %v385_v40 = vld [vmem:[#allocation2 + $0x58] sm:$0xff]  ;;  %v375_v45 = vld [vmem:[#allocation2 + $0x8] sm:$0xff]  ;;  %v380_v57 = vld [vmem:[#allocation2 + $0x30] sm:$0xff] }
  0x39   : > { %v383_v46 = vld [vmem:[#allocation2 + $0x48] sm:$0xff]  ;;  %v388_v58 = vld [vmem:[#allocation2 + $0x70] sm:$0xff]  ;;  %v378_v59 = vld [vmem:[#allocation2 + $0x20] sm:$0xff] }
  0x3a   : > { %v386_v60 = vld [vmem:[#allocation2 + $0x60] sm:$0xff]  ;;  %v381_v63 = vld [vmem:[#allocation2 + $0x38] sm:$0xff]  ;;  %v379_v5 = vld [vmem:[#allocation2 + $0x28] sm:$0xff] }
  0x3b   : > { %1029 = vmatpush3.bf16.msra.mxu0 %v1115_v19  ;;  %1066 = vmatpush3.bf16.msra.mxu1 %v1115_v19  ;;  %v389_v0 = vld [vmem:[#allocation2 + $0x78] sm:$0xff]  ;;  %v387_v6 = vld [vmem:[#allocation2 + $0x68] sm:$0xff]  ;;  %v924_v19 = vld [vmem:[%s1324_s2] ss:$0 sm:$0xff] (!%p923_p11) }
  0x3c   : > { %1030 = vmatprep.subr.bf16.mxu0 %v1116_v20  ;;  %1059 = vmatprep.subr.bf16.mxu1 %v1116_v20 }
  0x3f   : > { %1031 = vmatpush3.bf16.msra.mxu0 %v1116_v20  ;;  %1067 = vmatpush3.bf16.msra.mxu1 %v1116_v20 }
  0x40   : > { %1032 = vmatprep.subr.bf16.mxu0 %v1117_v23  ;;  %1060 = vmatprep.subr.bf16.mxu1 %v1117_v23 }
  0x43   : > { %1033 = vmatpush3.bf16.msra.mxu0 %v1117_v23  ;;  %1068 = vmatpush3.bf16.msra.mxu1 %v1117_v23 }
  0x44   : > { %1034 = vmatprep.subr.bf16.mxu0 %v1118_v24  ;;  %1061 = vmatprep.subr.bf16.mxu1 %v1118_v24 }
  0x47   : > { %1035 = vmatpush3.bf16.msra.mxu0 %v1118_v24  ;;  %1069 = vmatpush3.bf16.msra.mxu1 %v1118_v24 }
  0x48   : > { %1036 = vmatprep.subr.bf16.mxu0 %v1119_v25  ;;  %1062 = vmatprep.subr.bf16.mxu1 %v1119_v25 }
  0x4b   : > { %1037 = vmatpush3.bf16.msra.mxu0 %v1119_v25  ;;  %1070 = vmatpush3.bf16.msra.mxu1 %v1119_v25 }
  0x4c   : > { %1038 = vmatprep.subr.bf16.mxu0 %v1120_v26  ;;  %1063 = vmatprep.subr.bf16.mxu1 %v1120_v26 }
  0x4f   : > { %1039 = vmatpush3.bf16.msra.mxu0 %v1120_v26  ;;  %1071 = vmatpush3.bf16.msra.mxu1 %v1120_v26 }
  0x52   : > { %1041 = vmatmul.mubr.bf16.vlgmr.msra.gmra.mrb[0].mxu0 %v1123_v27  ;;  %1049 = vmatmul.mubr.bf16.vlgmr.msra.gmra.mrb[0].mxu1 %v1124_v28 }
  0x53   : > { %1044 = vmatprep.mubr.bf16.mxu0 %v1125_v29  ;;  %1052 = vmatprep.mubr.bf16.mxu1 %v1126_v30 }
  0x5a   : > { %1045 = vmatmul.mubr.bf16.gmra.mrb[4].mxu0 %v1127_v31  ;;  %1053 = vmatmul.mubr.bf16.gmra.mrb[4].mxu1 %v1128_v32 }
 0x125   : > { %v1042_v37 = vpop.f32.mrb[0].mxu0  ;;  %v1050_v38 = vpop.f32.mrb[0].mxu1 }
 0x126   : > { %v617_v41 = vadd.f32 %v1042_v37, %v376_v33  ;;  %v625_v42 = vadd.f32 %v1050_v38, %v384_v34  ;;  %v552_v43 = vpop.f32.mrb[1].mxu0  ;;  %v584_v44 = vpop.f32.mrb[1].mxu1 }
 0x127   : > { %v615_v47 = vadd.f32 %v552_v43, %v374_v35  ;;  %v623_v48 = vadd.f32 %v584_v44, %v382_v36  ;;  %v1043_v49 = vpop.f32.mrb[2].mxu0  ;;  %v1051_v50 = vpop.f32.mrb[2].mxu1 }
 0x128   : > { %633 = vst [vmem:[#allocation2 + $0x10] sm:$0xff] %v617_v41  ;;  %641 = vst [vmem:[#allocation2 + $0x50] sm:$0xff] %v625_v42  ;;  %v618_v51 = vadd.f32 %v1043_v49, %v377_v39  ;;  %v626_v52 = vadd.f32 %v1051_v50, %v385_v40  ;;  %v555_v53 = vpop.f32.mrb[3].mxu0  ;;  %v587_v54 = vpop.f32.mrb[3].mxu1 }
 0x129   : > { %631 = vst [vmem:[#allocation2] sm:$0xff] %v615_v47  ;;  %639 = vst [vmem:[#allocation2 + $0x40] sm:$0xff] %v623_v48  ;;  %v616_v55 = vadd.f32 %v555_v53, %v375_v45  ;;  %v624_v56 = vadd.f32 %v587_v54, %v383_v46 }
 0x12a   : > { %634 = vst [vmem:[#allocation2 + $0x18] sm:$0xff] %v618_v51  ;;  %642 = vst [vmem:[#allocation2 + $0x58] sm:$0xff] %v626_v52 }
 0x12b   : > { %632 = vst [vmem:[#allocation2 + $0x8] sm:$0xff] %v616_v55  ;;  %640 = vst [vmem:[#allocation2 + $0x48] sm:$0xff] %v624_v56 }
 0x12d   : > { %v1046_v61 = vpop.f32.mrb[4].mxu0  ;;  %v1054_v62 = vpop.f32.mrb[4].mxu1  ;;  %650 = sbr.rel (%p923_p11) target bundleno = 323 (0x143), region = 81 }
 0x12e   : > { %v621_v1 = vadd.f32 %v1046_v61, %v380_v57  ;;  %v629_v2 = vadd.f32 %v1054_v62, %v388_v58  ;;  %v568_v3 = vpop.f32.mrb[5].mxu0  ;;  %v600_v4 = vpop.f32.mrb[5].mxu1 }
 0x12f   : > { %v619_v7 = vadd.f32 %v568_v3, %v378_v59  ;;  %v627_v8 = vadd.f32 %v600_v4, %v386_v60  ;;  %v1047_v9 = vpop.f32.mrb[6].mxu0  ;;  %v1055_v10 = vpop.f32.mrb[6].mxu1  ;;  %v653_v22 = vld [vmem:[#allocation2 + $0x10] sm:$0xff] (!%p923_p11) }
 0x130   : > { %637 = vst [vmem:[#allocation2 + $0x30] sm:$0xff] %v621_v1  ;;  %645 = vst [vmem:[#allocation2 + $0x70] sm:$0xff] %v629_v2  ;;  %v622_v11 = vadd.f32 %v1047_v9, %v381_v63  ;;  %v630_v12 = vadd.f32 %v1055_v10, %v389_v0  ;;  %v571_v13 = vpop.f32.mrb[7].mxu0  ;;  %v603_v14 = vpop.f32.mrb[7].mxu1  ;;  %v651_v17 = vld [vmem:[#allocation2] sm:$0xff] (!%p923_p11)  ;;  %v676_v25 = vadd.f32 (!%p923_p11), %v924_v19, %v653_v22  ;;  %v661_v37 = vld [vmem:[#allocation2 + $0x50] sm:$0xff] (!%p923_p11) }
 0x131   : > { %635 = vst [vmem:[#allocation2 + $0x20] sm:$0xff] %v619_v7  ;;  %643 = vst [vmem:[#allocation2 + $0x60] sm:$0xff] %v627_v8  ;;  %v620_v15 = vadd.f32 %v571_v13, %v379_v5  ;;  %v628_v16 = vadd.f32 %v603_v14, %v387_v6  ;;  %v674_v20 = vadd.f32 (!%p923_p11), %v924_v19, %v651_v17  ;;  %v654_v23 = vld [vmem:[#allocation2 + $0x18] sm:$0xff] (!%p923_p11)  ;;  %v659_v35 = vld [vmem:[#allocation2 + $0x40] sm:$0xff] (!%p923_p11) }
 0x132   : > { %638 = vst [vmem:[#allocation2 + $0x38] sm:$0xff] %v622_v11  ;;  %646 = vst [vmem:[#allocation2 + $0x78] sm:$0xff] %v630_v12  ;;  %v652_v18 = vld [vmem:[#allocation2 + $0x8] sm:$0xff] (!%p923_p11)  ;;  %v677_v26 = vadd.f32 (!%p923_p11), %v924_v19, %v654_v23  ;;  %v692_v38 = vmax.f32 (!%p923_p11), %v676_v25, 0.0  ;;  %v662_v42 = vld [vmem:[#allocation2 + $0x58] sm:$0xff] (!%p923_p11)  ;;  %v682_v47 = vadd.f32 (!%p923_p11), %v924_v19, %v659_v35  ;;  %v684_v52 = vadd.f32 (!%p923_p11), %v924_v19, %v661_v37 }
 0x133   : > { %636 = vst [vmem:[#allocation2 + $0x28] sm:$0xff] %v620_v15  ;;  %644 = vst [vmem:[#allocation2 + $0x68] sm:$0xff] %v628_v16  ;;  %v675_v21 = vadd.f32 (!%p923_p11), %v924_v19, %v652_v18  ;;  %v690_v31 = vmax.f32 (!%p923_p11), %v674_v20, 0.0  ;;  %v660_v36 = vld [vmem:[#allocation2 + $0x48] sm:$0xff] (!%p923_p11)  ;;  %v685_v57 = vadd.f32 (!%p923_p11), %v924_v19, %v662_v42 }
 0x134   : > { %v693_v39 = vmax.f32 %v677_v26, 0.0  ;;  %v683_v51 = vadd.f32 %v924_v19, %v660_v36  ;;  %v698_v56 = vmax.f32 %v682_v47, 0.0  ;;  %v700_v61 = vmax.f32 %v684_v52, 0.0 }
 0x135   : > { %v691_v32 = vmax.f32 %v675_v21, 0.0  ;;  %v701_v63 = vmax.f32 %v685_v57, 0.0 }
 0x136   : > { %v969_v49 = vpack.c.bf16 %v693_v39, %v692_v38  ;;  %v699_v60 = vmax.f32 %v683_v51, 0.0 }
 0x137   : > { %v657_v29 = vld [vmem:[#allocation2 + $0x30] sm:$0xff]  ;;  %v964_v44 = vpack.c.bf16 %v691_v32, %v690_v31  ;;  %v989_v5 = vpack.c.bf16 %v701_v63, %v700_v61 }
 0x138   : > { %v655_v24 = vld [vmem:[#allocation2 + $0x20] sm:$0xff]  ;;  %v680_v34 = vadd.f32 %v924_v19, %v657_v29  ;;  %v665_v53 = vld [vmem:[#allocation2 + $0x70] sm:$0xff]  ;;  %1001 = vst [vmem:[%s1325_s3 + $0x8] sm:$0xff] %v969_v49   ;;  %v984_v3 = vpack.c.bf16 %v699_v60, %v698_v56 }
 0x139   : > { %v678_v28 = vadd.f32 %v924_v19, %v655_v24  ;;  %v658_v30 = vld [vmem:[#allocation2 + $0x38] sm:$0xff]  ;;  %v663_v43 = vld [vmem:[#allocation2 + $0x60] sm:$0xff]  ;;  %965 = vst [vmem:[%s1325_s3] sm:$0xff] %v964_v44   ;;  %v688_v1 = vadd.f32 %v924_v19, %v665_v53  ;;  %1005 = vst [vmem:[%s1325_s3 + $0x28] sm:$0xff] %v989_v5  }
 0x13a   : > { %v656_v27 = vld [vmem:[#allocation2 + $0x28] sm:$0xff]  ;;  %v681_v41 = vadd.f32 %v924_v19, %v658_v30  ;;  %v696_v46 = vmax.f32 %v680_v34, 0.0  ;;  %v666_v54 = vld [vmem:[#allocation2 + $0x78] sm:$0xff]  ;;  %v686_v58 = vadd.f32 %v924_v19, %v663_v43  ;;  %1004 = vst [vmem:[%s1325_s3 + $0x20] sm:$0xff] %v984_v3  }
 0x13b   : > { %v679_v33 = vadd.f32 %v924_v19, %v656_v27  ;;  %v694_v40 = vmax.f32 %v678_v28, 0.0  ;;  %v664_v48 = vld [vmem:[#allocation2 + $0x68] sm:$0xff]  ;;  %v689_v2 = vadd.f32 %v924_v19, %v666_v54  ;;  %v704_v6 = vmax.f32 %v688_v1, 0.0 }
 0x13c   : > { %v697_v50 = vmax.f32 %v681_v41, 0.0  ;;  %v687_v62 = vadd.f32 %v924_v19, %v664_v48  ;;  %v702_v0 = vmax.f32 %v686_v58, 0.0 }
 0x13d   : > { %v695_v45 = vmax.f32 %v679_v33, 0.0  ;;  %v705_v7 = vmax.f32 %v689_v2, 0.0 }
 0x13e   : > { %v979_v59 = vpack.c.bf16 %v697_v50, %v696_v46  ;;  %v703_v4 = vmax.f32 %v687_v62, 0.0 }
 0x13f   : > { %v974_v55 = vpack.c.bf16 %v695_v45, %v694_v40  ;;  %v999_v9 = vpack.c.bf16 %v705_v7, %v704_v6 }
 0x140   : > { %1003 = vst [vmem:[%s1325_s3 + $0x18] sm:$0xff] %v979_v59   ;;  %v994_v8 = vpack.c.bf16 %v703_v4, %v702_v0 }
 0x141   : > { %1002 = vst [vmem:[%s1325_s3 + $0x10] sm:$0xff] %v974_v55   ;;  %1007 = vst [vmem:[%s1325_s3 + $0x38] sm:$0xff] %v999_v9  }
 0x142   : > { %1006 = vst [vmem:[%s1325_s3 + $0x30] sm:$0xff] %v994_v8  }
 0x143 PF: > { %s13_s16 = sadd.s32 1, %s1167_s16   ;;  %s1326_s12 = smov %s1155_s13 }
 0x144   : > { %p10_p12 = scmp.ge.s32.totalorder %s13_s16, 11   ;;  %s1327_s13 = smov %s1225_s20 }
 0x145   : > { %s1328_s14 = smov %s1163_s15  ;;  %s1329_s15 = smov %s1331_s17 }
 0x146   :  { %12 = sbr.rel (!%p10_p12) target bundleno = 3 (0x3), region = 122 }

// kernel: _lambda_.29
= control target key start
LH: loop header
LB: loop body
LE: loop exit
PB: predicated region body
PF: predicated region fallthrough
CT: control target
= control target key end

     0   :  { %s874_s1 = inlined_call_operand.vmem [shape: bf16[128,128], index: 1, kind: input, shape index: {}]   ;;  %s875_s0 = inlined_call_operand.vmem [shape: bf16[128,128], index: 0, kind: input, shape index: {}]   ;;  %s876_s3 = inlined_call_operand.vmem [shape: bf16[128,128], index: 3, kind: input, shape index: {}]   ;;  %s877_s2 = inlined_call_operand.vmem [shape: f32[1,128], index: 2, kind: input, shape index: {}]   ;;  %s878_s4 = inlined_call_operand.vmem [shape: bf16[128,128], index: 4, kind: output, shape index: {}]  }
   0x1   :  { %v700_v0 = vld [vmem:[%s874_s1] sm:$0xff]   ;;  %v701_v1 = vld [vmem:[%s874_s1 + $0x8] sm:$0xff]   ;;  %v702_v2 = vld [vmem:[%s874_s1 + $0x10] sm:$0xff]  }
   0x2   :  { %652 = vmatprep.subr.bf16.mxu0 %v700_v0  ;;  %684 = vmatprep.subr.bf16.mxu1 %v700_v0  ;;  %v703_v3 = vld [vmem:[%s874_s1 + $0x18] sm:$0xff]   ;;  %v708_v4 = vld [vmem:[%s875_s0] sm:$0xff]   ;;  %v705_v7 = vld [vmem:[%s874_s1 + $0x28] sm:$0xff]  }
   0x3   :  { %653 = vmatpush3.bf16.msra.mxu0 %v700_v0  ;;  %692 = vmatpush3.bf16.msra.mxu1 %v700_v0  ;;  %v709_v5 = vld [vmem:[%s875_s0 + $0x20] sm:$0xff]   ;;  %v706_v8 = vld [vmem:[%s874_s1 + $0x30] sm:$0xff]   ;;  %v707_v9 = vld [vmem:[%s874_s1 + $0x38] sm:$0xff]  }
   0x4   :  { %654 = vmatprep.subr.bf16.mxu0 %v701_v1  ;;  %685 = vmatprep.subr.bf16.mxu1 %v701_v1  ;;  %v704_v6 = vld [vmem:[%s874_s1 + $0x20] sm:$0xff]   ;;  %v710_v10 = vld [vmem:[%s875_s0 + $0x8] sm:$0xff]   ;;  %v712_v12 = vld [vmem:[%s875_s0 + $0x10] sm:$0xff]  }
   0x5   :  { %668 = vmatprep.mubr.bf16.mxu0 %v708_v4  ;;  %676 = vmatprep.mubr.bf16.mxu1 %v709_v5  ;;  %v711_v11 = vld [vmem:[%s875_s0 + $0x28] sm:$0xff]   ;;  %v713_v13 = vld [vmem:[%s875_s0 + $0x30] sm:$0xff]   ;;  %v714_v14 = vld [vmem:[%s875_s0 + $0x18] sm:$0xff]  }
   0x6   :  { %v715_v15 = vld [vmem:[%s875_s0 + $0x38] sm:$0xff]   ;;  %v622_v16 = vld [vmem:[%s876_s3 + $0x8] sm:$0xff]   ;;  %v551_v18 = vld [vmem:[%s876_s3] sm:$0xff]  }
   0x7   :  { %655 = vmatpush3.bf16.msra.mxu0 %v701_v1  ;;  %693 = vmatpush3.bf16.msra.mxu1 %v701_v1  ;;  %v626_v17 = vld [vmem:[%s876_s3 + $0x28] sm:$0xff]   ;;  %v625_v19 = vld [vmem:[%s876_s3 + $0x20] sm:$0xff]   ;;  %v809_v21 = vld [vmem:[%s876_s3 + $0x18] sm:$0xff]   ;;  %v556_v23 = vunpack.c.l.bf16 %v622_v16  ;;  %v552_v25 = vunpack.c.l.bf16 %v551_v18  ;;  %v557_v31 = vunpack.c.h.bf16 %v622_v16  ;;  %v553_v33 = vunpack.c.h.bf16 %v551_v18 }
   0x8   :  { %656 = vmatprep.subr.bf16.mxu0 %v702_v2  ;;  %686 = vmatprep.subr.bf16.mxu1 %v702_v2  ;;  %v804_v20 = vld [vmem:[%s877_s2] ss:$0 sm:$0xff]  ;;  %v814_v22 = vld [vmem:[%s876_s3 + $0x38] sm:$0xff]   ;;  %v572_v24 = vunpack.c.l.bf16 %v626_v17  ;;  %v568_v26 = vunpack.c.l.bf16 %v625_v19  ;;  %v819_v27 = vld [vmem:[%s876_s3 + $0x10] sm:$0xff]   ;;  %v573_v32 = vunpack.c.h.bf16 %v626_v17  ;;  %v569_v34 = vunpack.c.h.bf16 %v625_v19 }
   0x9   :  { %v824_v28 = vld [vmem:[%s876_s3 + $0x30] sm:$0xff]   ;;  %v564_v39 = vunpack.c.l.bf16 %v809_v21  ;;  %v580_v40 = vunpack.c.l.bf16 %v814_v22  ;;  %v560_v45 = vunpack.c.l.bf16 %v819_v27  ;;  %v565_v59 = vunpack.c.h.bf16 %v809_v21 }
   0xa   :  { %v576_v46 = vunpack.c.l.bf16 %v824_v28  ;;  %v581_v60 = vunpack.c.h.bf16 %v814_v22  ;;  %v561_v63 = vunpack.c.h.bf16 %v819_v27  ;;  %v577_v0 = vunpack.c.h.bf16 %v824_v28 }
   0xb   :  { %657 = vmatpush3.bf16.msra.mxu0 %v702_v2  ;;  %694 = vmatpush3.bf16.msra.mxu1 %v702_v2 }
   0xc   :  { %658 = vmatprep.subr.bf16.mxu0 %v703_v3  ;;  %687 = vmatprep.subr.bf16.mxu1 %v703_v3 }
   0xf   :  { %659 = vmatpush3.bf16.msra.mxu0 %v703_v3  ;;  %695 = vmatpush3.bf16.msra.mxu1 %v703_v3 }
  0x10   :  { %660 = vmatprep.subr.bf16.mxu0 %v704_v6  ;;  %688 = vmatprep.subr.bf16.mxu1 %v704_v6 }
  0x13   :  { %661 = vmatpush3.bf16.msra.mxu0 %v704_v6  ;;  %696 = vmatpush3.bf16.msra.mxu1 %v704_v6 }
  0x14   :  { %662 = vmatprep.subr.bf16.mxu0 %v705_v7  ;;  %689 = vmatprep.subr.bf16.mxu1 %v705_v7 }
  0x17   :  { %663 = vmatpush3.bf16.msra.mxu0 %v705_v7  ;;  %697 = vmatpush3.bf16.msra.mxu1 %v705_v7 }
  0x18   :  { %664 = vmatprep.subr.bf16.mxu0 %v706_v8  ;;  %690 = vmatprep.subr.bf16.mxu1 %v706_v8 }
  0x1b   :  { %665 = vmatpush3.bf16.msra.mxu0 %v706_v8  ;;  %698 = vmatpush3.bf16.msra.mxu1 %v706_v8 }
  0x1c   :  { %666 = vmatprep.subr.bf16.mxu0 %v707_v9  ;;  %691 = vmatprep.subr.bf16.mxu1 %v707_v9 }
  0x1f   :  { %667 = vmatpush3.bf16.msra.mxu0 %v707_v9  ;;  %699 = vmatpush3.bf16.msra.mxu1 %v707_v9 }
  0x22   :  { %669 = vmatmul.mubr.bf16.vlgmr.msra.gmra.mrb[0].mxu0 %v710_v10  ;;  %677 = vmatmul.mubr.bf16.vlgmr.msra.gmra.mrb[0].mxu1 %v711_v11 }
  0x23   :  { %672 = vmatprep.mubr.bf16.mxu0 %v712_v12  ;;  %680 = vmatprep.mubr.bf16.mxu1 %v713_v13 }
  0x2a   :  { %673 = vmatmul.mubr.bf16.gmra.mrb[4].mxu0 %v714_v14  ;;  %681 = vmatmul.mubr.bf16.gmra.mrb[4].mxu1 %v715_v15 }
  0xf5   :  { %v670_v29 = vpop.f32.mrb[0].mxu0  ;;  %v678_v30 = vpop.f32.mrb[0].mxu1 }
  0xf6   :  { %v339_v35 = vadd.f32 %v670_v29, %v804_v20  ;;  %v347_v36 = vadd.f32 %v678_v30, %v804_v20  ;;  %v216_v37 = vpop.f32.mrb[1].mxu0  ;;  %v248_v38 = vpop.f32.mrb[1].mxu1 }
  0xf7   :  { %v337_v41 = vadd.f32 %v804_v20, %v216_v37  ;;  %v345_v42 = vadd.f32 %v804_v20, %v248_v38  ;;  %v671_v43 = vpop.f32.mrb[2].mxu0  ;;  %v679_v44 = vpop.f32.mrb[2].mxu1 }
  0xf8   :  { %v387_v47 = vadd.f32 %v556_v23, %v339_v35  ;;  %v395_v48 = vadd.f32 %v572_v24, %v347_v36  ;;  %v340_v49 = vadd.f32 %v671_v43, %v804_v20  ;;  %v348_v50 = vadd.f32 %v679_v44, %v804_v20  ;;  %v219_v51 = vpop.f32.mrb[3].mxu0  ;;  %v251_v52 = vpop.f32.mrb[3].mxu1 }
  0xf9   :  { %v385_v53 = vadd.f32 %v552_v25, %v337_v41  ;;  %v393_v54 = vadd.f32 %v568_v26, %v345_v42  ;;  %v338_v55 = vadd.f32 %v804_v20, %v219_v51  ;;  %v346_v56 = vadd.f32 %v804_v20, %v251_v52 }
  0xfa   :  { %v388_v57 = vadd.f32 %v557_v31, %v340_v49  ;;  %v396_v58 = vadd.f32 %v573_v32, %v348_v50  ;;  %v403_v1 = vmax.f32 %v387_v47, 0.0  ;;  %v411_v2 = vmax.f32 %v395_v48, 0.0 }
  0xfb   :  { %v386_v61 = vadd.f32 %v553_v33, %v338_v55  ;;  %v394_v62 = vadd.f32 %v569_v34, %v346_v56  ;;  %v401_v5 = vmax.f32 %v385_v53, 0.0  ;;  %v409_v6 = vmax.f32 %v393_v54, 0.0 }
  0xfc   :  { %v404_v3 = vmax.f32 %v388_v57, 0.0  ;;  %v412_v4 = vmax.f32 %v396_v58, 0.0 }
  0xfd   :  { %v402_v7 = vmax.f32 %v386_v61, 0.0  ;;  %v410_v8 = vmax.f32 %v394_v62, 0.0  ;;  %v674_v9 = vpop.f32.mrb[4].mxu0  ;;  %v682_v10 = vpop.f32.mrb[4].mxu1 }
  0xfe   :  { %v590_v11 = vpack.c.bf16 %v404_v3, %v403_v1  ;;  %v610_v12 = vpack.c.bf16 %v412_v4, %v411_v2  ;;  %v343_v13 = vadd.f32 %v674_v9, %v804_v20  ;;  %v351_v14 = vadd.f32 %v682_v10, %v804_v20  ;;  %v232_v15 = vpop.f32.mrb[5].mxu0  ;;  %v264_v16 = vpop.f32.mrb[5].mxu1 }
  0xff   :  { %v585_v17 = vpack.c.bf16 %v402_v7, %v401_v5  ;;  %v605_v18 = vpack.c.bf16 %v410_v8, %v409_v6  ;;  %v341_v19 = vadd.f32 %v804_v20, %v232_v15  ;;  %v349_v21 = vadd.f32 %v804_v20, %v264_v16  ;;  %v675_v22 = vpop.f32.mrb[6].mxu0  ;;  %v683_v23 = vpop.f32.mrb[6].mxu1 }
 0x100   :  { %629 = vst [vmem:[%s878_s4 + $0x8] sm:$0xff] %v590_v11   ;;  %633 = vst [vmem:[%s878_s4 + $0x28] sm:$0xff] %v610_v12   ;;  %v391_v24 = vadd.f32 %v564_v39, %v343_v13  ;;  %v399_v25 = vadd.f32 %v580_v40, %v351_v14  ;;  %v344_v26 = vadd.f32 %v675_v22, %v804_v20  ;;  %v235_v28 = vpop.f32.mrb[7].mxu0  ;;  %v267_v29 = vpop.f32.mrb[7].mxu1 }
 0x101   :  { %v352_v27 = vadd.f32 %v683_v23, %v804_v20  ;;  %586 = vst [vmem:[%s878_s4] sm:$0xff] %v585_v17   ;;  %632 = vst [vmem:[%s878_s4 + $0x20] sm:$0xff] %v605_v18   ;;  %v389_v30 = vadd.f32 %v560_v45, %v341_v19  ;;  %v397_v31 = vadd.f32 %v576_v46, %v349_v21 }
 0x102   :  { %v342_v32 = vadd.f32 %v804_v20, %v235_v28  ;;  %v350_v33 = vadd.f32 %v804_v20, %v267_v29  ;;  %v392_v34 = vadd.f32 %v565_v59, %v344_v26  ;;  %v407_v38 = vmax.f32 %v391_v24, 0.0 }
 0x103   :  { %v400_v35 = vadd.f32 %v581_v60, %v352_v27  ;;  %v415_v39 = vmax.f32 %v399_v25, 0.0  ;;  %v405_v42 = vmax.f32 %v389_v30, 0.0  ;;  %v413_v43 = vmax.f32 %v397_v31, 0.0 }
 0x104   :  { %v390_v36 = vadd.f32 %v561_v63, %v342_v32  ;;  %v398_v37 = vadd.f32 %v577_v0, %v350_v33  ;;  %v408_v40 = vmax.f32 %v392_v34, 0.0 }
 0x105   :  { %v416_v41 = vmax.f32 %v400_v35, 0.0 }
 0x106   :  { %v406_v44 = vmax.f32 %v390_v36, 0.0  ;;  %v414_v47 = vmax.f32 %v398_v37, 0.0  ;;  %v600_v48 = vpack.c.bf16 %v408_v40, %v407_v38 }
 0x107   :  { %v620_v49 = vpack.c.bf16 %v416_v41, %v415_v39 }
 0x108   :  { %v595_v45 = vpack.c.bf16 %v406_v44, %v405_v42  ;;  %v615_v46 = vpack.c.bf16 %v414_v47, %v413_v43  ;;  %631 = vst [vmem:[%s878_s4 + $0x18] sm:$0xff] %v600_v48  }
 0x109   :  { %635 = vst [vmem:[%s878_s4 + $0x38] sm:$0xff] %v620_v49  }
 0x10a   :  { %630 = vst [vmem:[%s878_s4 + $0x10] sm:$0xff] %v595_v45   ;;  %634 = vst [vmem:[%s878_s4 + $0x30] sm:$0xff] %v615_v46  }

// kernel: _lambda_.28
= control target key start
LH: loop header
LB: loop body
LE: loop exit
PB: predicated region body
PF: predicated region fallthrough
CT: control target
= control target key end

     0   :  { %s705_s1 = inlined_call_operand.vmem [shape: bf16[128,128], index: 1, kind: input, shape index: {}]   ;;  %s706_s0 = inlined_call_operand.vmem [shape: bf16[128,128], index: 0, kind: input, shape index: {}]   ;;  %s707_s2 = inlined_call_operand.vmem [shape: f32[1,128], index: 2, kind: input, shape index: {}]   ;;  %s708_s3 = inlined_call_operand.vmem [shape: bf16[128,128], index: 3, kind: output, shape index: {}]  }
   0x1   :  { %v594_v0 = vld [vmem:[%s705_s1] sm:$0xff]   ;;  %v595_v1 = vld [vmem:[%s705_s1 + $0x8] sm:$0xff]   ;;  %v596_v2 = vld [vmem:[%s705_s1 + $0x10] sm:$0xff]  }
   0x2   :  { %546 = vmatprep.subr.bf16.mxu0 %v594_v0  ;;  %578 = vmatprep.subr.bf16.mxu1 %v594_v0  ;;  %v597_v3 = vld [vmem:[%s705_s1 + $0x18] sm:$0xff]   ;;  %v602_v4 = vld [vmem:[%s706_s0] sm:$0xff]   ;;  %v599_v7 = vld [vmem:[%s705_s1 + $0x28] sm:$0xff]  }
   0x3   :  { %547 = vmatpush3.bf16.msra.mxu0 %v594_v0  ;;  %586 = vmatpush3.bf16.msra.mxu1 %v594_v0  ;;  %v603_v5 = vld [vmem:[%s706_s0 + $0x20] sm:$0xff]   ;;  %v600_v8 = vld [vmem:[%s705_s1 + $0x30] sm:$0xff]   ;;  %v601_v9 = vld [vmem:[%s705_s1 + $0x38] sm:$0xff]  }
   0x4   :  { %548 = vmatprep.subr.bf16.mxu0 %v595_v1  ;;  %579 = vmatprep.subr.bf16.mxu1 %v595_v1  ;;  %v598_v6 = vld [vmem:[%s705_s1 + $0x20] sm:$0xff]   ;;  %v604_v10 = vld [vmem:[%s706_s0 + $0x8] sm:$0xff]   ;;  %v606_v12 = vld [vmem:[%s706_s0 + $0x10] sm:$0xff]  }
   0x5   :  { %562 = vmatprep.mubr.bf16.mxu0 %v602_v4  ;;  %570 = vmatprep.mubr.bf16.mxu1 %v603_v5  ;;  %v605_v11 = vld [vmem:[%s706_s0 + $0x28] sm:$0xff]   ;;  %v607_v13 = vld [vmem:[%s706_s0 + $0x30] sm:$0xff]   ;;  %v608_v14 = vld [vmem:[%s706_s0 + $0x18] sm:$0xff]  }
   0x6   :  { %v609_v15 = vld [vmem:[%s706_s0 + $0x38] sm:$0xff]   ;;  %v450_v17 = vld [vmem:[%s707_s2] ss:$0 sm:$0xff] }
   0x7   :  { %549 = vmatpush3.bf16.msra.mxu0 %v595_v1  ;;  %587 = vmatpush3.bf16.msra.mxu1 %v595_v1 }
   0x8   :  { %550 = vmatprep.subr.bf16.mxu0 %v596_v2  ;;  %580 = vmatprep.subr.bf16.mxu1 %v596_v2 }
   0xb   :  { %551 = vmatpush3.bf16.msra.mxu0 %v596_v2  ;;  %588 = vmatpush3.bf16.msra.mxu1 %v596_v2 }
   0xc   :  { %552 = vmatprep.subr.bf16.mxu0 %v597_v3  ;;  %581 = vmatprep.subr.bf16.mxu1 %v597_v3 }
   0xf   :  { %553 = vmatpush3.bf16.msra.mxu0 %v597_v3  ;;  %589 = vmatpush3.bf16.msra.mxu1 %v597_v3 }
  0x10   :  { %554 = vmatprep.subr.bf16.mxu0 %v598_v6  ;;  %582 = vmatprep.subr.bf16.mxu1 %v598_v6 }
  0x13   :  { %555 = vmatpush3.bf16.msra.mxu0 %v598_v6  ;;  %590 = vmatpush3.bf16.msra.mxu1 %v598_v6 }
  0x14   :  { %556 = vmatprep.subr.bf16.mxu0 %v599_v7  ;;  %583 = vmatprep.subr.bf16.mxu1 %v599_v7 }
  0x17   :  { %557 = vmatpush3.bf16.msra.mxu0 %v599_v7  ;;  %591 = vmatpush3.bf16.msra.mxu1 %v599_v7 }
  0x18   :  { %558 = vmatprep.subr.bf16.mxu0 %v600_v8  ;;  %584 = vmatprep.subr.bf16.mxu1 %v600_v8 }
  0x1b   :  { %559 = vmatpush3.bf16.msra.mxu0 %v600_v8  ;;  %592 = vmatpush3.bf16.msra.mxu1 %v600_v8 }
  0x1c   :  { %560 = vmatprep.subr.bf16.mxu0 %v601_v9  ;;  %585 = vmatprep.subr.bf16.mxu1 %v601_v9 }
  0x1f   :  { %561 = vmatpush3.bf16.msra.mxu0 %v601_v9  ;;  %593 = vmatpush3.bf16.msra.mxu1 %v601_v9 }
  0x22   :  { %563 = vmatmul.mubr.bf16.vlgmr.msra.gmra.mrb[0].mxu0 %v604_v10  ;;  %571 = vmatmul.mubr.bf16.vlgmr.msra.gmra.mrb[0].mxu1 %v605_v11 }
  0x23   :  { %566 = vmatprep.mubr.bf16.mxu0 %v606_v12  ;;  %574 = vmatprep.mubr.bf16.mxu1 %v607_v13 }
  0x2a   :  { %567 = vmatmul.mubr.bf16.gmra.mrb[4].mxu0 %v608_v14  ;;  %575 = vmatmul.mubr.bf16.gmra.mrb[4].mxu1 %v609_v15 }
  0xf5   :  { %v564_v16 = vpop.f32.mrb[0].mxu0  ;;  %v572_v18 = vpop.f32.mrb[0].mxu1 }
  0xf6   :  { %v213_v19 = vpop.f32.mrb[1].mxu0  ;;  %v245_v20 = vpop.f32.mrb[1].mxu1  ;;  %v336_v23 = vadd.f32 %v564_v16, %v450_v17  ;;  %v344_v24 = vadd.f32 %v572_v18, %v450_v17 }
  0xf7   :  { %v565_v21 = vpop.f32.mrb[2].mxu0  ;;  %v573_v22 = vpop.f32.mrb[2].mxu1  ;;  %v334_v29 = vadd.f32 %v450_v17, %v213_v19  ;;  %v342_v30 = vadd.f32 %v450_v17, %v245_v20 }
  0xf8   :  { %v337_v25 = vadd.f32 %v565_v21, %v450_v17  ;;  %v345_v26 = vadd.f32 %v573_v22, %v450_v17  ;;  %v216_v27 = vpop.f32.mrb[3].mxu0  ;;  %v248_v28 = vpop.f32.mrb[3].mxu1 }
  0xf9   :  { %v335_v31 = vadd.f32 %v450_v17, %v216_v27  ;;  %v343_v32 = vadd.f32 %v450_v17, %v248_v28 }
  0xfa   :  { %v491_v33 = vpack.c.bf16 %v337_v25, %v336_v23  ;;  %v511_v34 = vpack.c.bf16 %v345_v26, %v344_v24 }
  0xfb   :  { %v486_v35 = vpack.c.bf16 %v335_v31, %v334_v29  ;;  %v506_v36 = vpack.c.bf16 %v343_v32, %v342_v30 }
  0xfc   :  { %523 = vst [vmem:[%s708_s3 + $0x8] sm:$0xff] %v491_v33   ;;  %527 = vst [vmem:[%s708_s3 + $0x28] sm:$0xff] %v511_v34  }
  0xfd   :  { %487 = vst [vmem:[%s708_s3] sm:$0xff] %v486_v35   ;;  %526 = vst [vmem:[%s708_s3 + $0x20] sm:$0xff] %v506_v36   ;;  %v568_v37 = vpop.f32.mrb[4].mxu0  ;;  %v576_v38 = vpop.f32.mrb[4].mxu1 }
  0xfe   :  { %v229_v39 = vpop.f32.mrb[5].mxu0  ;;  %v261_v40 = vpop.f32.mrb[5].mxu1  ;;  %v340_v43 = vadd.f32 %v568_v37, %v450_v17  ;;  %v348_v44 = vadd.f32 %v576_v38, %v450_v17 }
  0xff   :  { %v569_v41 = vpop.f32.mrb[6].mxu0  ;;  %v577_v42 = vpop.f32.mrb[6].mxu1  ;;  %v338_v49 = vadd.f32 %v450_v17, %v229_v39  ;;  %v346_v50 = vadd.f32 %v450_v17, %v261_v40 }
 0x100   :  { %v341_v45 = vadd.f32 %v569_v41, %v450_v17  ;;  %v349_v46 = vadd.f32 %v577_v42, %v450_v17  ;;  %v232_v47 = vpop.f32.mrb[7].mxu0  ;;  %v264_v48 = vpop.f32.mrb[7].mxu1 }
 0x101   :  { %v339_v51 = vadd.f32 %v450_v17, %v232_v47  ;;  %v347_v52 = vadd.f32 %v450_v17, %v264_v48 }
 0x102   :  { %v501_v53 = vpack.c.bf16 %v341_v45, %v340_v43  ;;  %v521_v54 = vpack.c.bf16 %v349_v46, %v348_v44 }
 0x103   :  { %v496_v55 = vpack.c.bf16 %v339_v51, %v338_v49  ;;  %v516_v56 = vpack.c.bf16 %v347_v52, %v346_v50 }
 0x104   :  { %525 = vst [vmem:[%s708_s3 + $0x18] sm:$0xff] %v501_v53   ;;  %529 = vst [vmem:[%s708_s3 + $0x38] sm:$0xff] %v521_v54  }
 0x105   :  { %524 = vst [vmem:[%s708_s3 + $0x10] sm:$0xff] %v496_v55   ;;  %528 = vst [vmem:[%s708_s3 + $0x30] sm:$0xff] %v516_v56  }

// kernel: _lambda_.40
= control target key start
LH: loop header
LB: loop body
LE: loop exit
PB: predicated region body
PF: predicated region fallthrough
CT: control target
= control target key end

     0   :  { %s1257_s12 = smov 0   ;;  %s1259_s13 = smov 0   ;;  %s1416_s0 = inlined_call_operand.vmem [shape: bf16[128,128], index: 0, kind: input, shape index: {}]   ;;  %s1417_s1 = inlined_call_operand.vmem [shape: bf16[128,256], index: 1, kind: input, shape index: {}]   ;;  %s1418_s2 = inlined_call_operand.vmem [shape: f32[1,256], index: 2, kind: input, shape index: {}]   ;;  %s1419_s3 = inlined_call_operand.vmem [shape: bf16[128,256], index: 3, kind: output, shape index: {}]  }
   0x1   :  { %s1261_s14 = smov 0   ;;  %s1263_s15 = smov 0  }
   0x2   :  { %s1265_s16 = smov 0  }
   0x3 LB: > { %s28_s17 = sadd.s32 1, %s1231_s15  ;;  %s967_s18 = sadd.s32 4294967295, %s1235_s16   ;;  %s1235_s16 = sphi %s1265_s16, %s13_s16   ;;  %s1231_s15 = sphi %s1263_s15, %s1424_s15   ;;  %s1227_s14 = sphi %s1261_s14, %s1423_s14   ;;  %s1223_s13 = sphi %s1259_s13, %s1422_s13   ;;  %s1219_s12 = sphi %s1257_s12, %s1421_s12  }
   0x4   : > { %p30_p0 = scmp.ge.s32.totalorder %s28_s17, 2  ;;  %p76_p1 = scmp.ne.s32.totalorder %s1223_s13, %s1219_s12 }
   0x5   : > { %p77_p2 = scmp.eq.s32.totalorder %s1235_s16, 0  ;;  %p134_p4 = scmp.eq.s32.totalorder %s967_s18, 1 }
   0x6   : > { %s1426_s17 = smov (%p30_p0, %s28_s17), 0  ;;  %s69_s20 = sadd.s32 1, %s1223_s13 }
   0x7   : > { %p78_p3 = por %p77_p2, %p76_p1  ;;  %s65_s19 = ssub.s32 %s1231_s15, %s1426_s17 }
   0x8   : > { %p67_p5 = scmp.eq.s32.totalorder %s65_s19, 0  ;;  %p1292_p6 = por %p134_p4, %p76_p1 }
   0x9   : > { %p971_p7 = scmp.ge.s32.totalorder %s1235_s16, 2 }
   0xa   : > { %s1297_s22 = scalar_select %p67_p5, %s1223_s13, %s69_s20  }
   0xb   : > { %168 = sbr.rel (%p971_p7) target bundleno = 32 (0x20), region = 20 }
  0x12   : > { %171 = sbr.rel (!%p78_p3) target bundleno = 32 (0x20), region = 24  ;;  %s173_s23 = sand.u32 (%p78_p3), 1, %s1223_s13  }
  0x13   : > { %s973_s24 = sshll.u32 (%p78_p3), %s1231_s15, 2  ;;  %s972_s25 = sshll.u32 (%p78_p3), %s173_s23, 6 }
  0x14   : > { %s1305_s28 = scalar_lea.vmem (%p78_p3), %s1417_s1, %s973_s24  ;;  %s175_s29 = scalar_lea.vmem (%p78_p3), [#allocation3], %s972_s25 }
  0x15   : > { %v196_v0 = vld [vmem:[%s1305_s28] sm:$0xf] (%p78_p3)  ;;  %v198_v1 = vld [vmem:[%s1305_s28 + $0x8] sm:$0xf] (%p78_p3)  ;;  %v200_v2 = vld [vmem:[%s1305_s28 + $0x10] sm:$0xf] (%p78_p3) }
  0x16   : > { %197 = vst [vmem:[%s175_s29] sm:$0xf] (%p78_p3), %v196_v0  ;;  %199 = vst [vmem:[%s175_s29 + $0x4] sm:$0xf] (%p78_p3), %v198_v1  ;;  %v202_v3 = vld [vmem:[%s1305_s28 + $0x18] sm:$0xf] (%p78_p3) }
  0x17   : > { %v204_v4 = vld [vmem:[%s1305_s28 + $0x20] sm:$0xf] (%p78_p3)  ;;  %201 = vst [vmem:[%s175_s29 + $0x8] sm:$0xf] (%p78_p3), %v200_v2  ;;  %203 = vst [vmem:[%s175_s29 + $0xc] sm:$0xf] (%p78_p3), %v202_v3 }
  0x18   : > { %205 = vst [vmem:[%s175_s29 + $0x10] sm:$0xf] (%p78_p3), %v204_v4  ;;  %v206_v5 = vld [vmem:[%s1305_s28 + $0x28] sm:$0xf] (%p78_p3)  ;;  %v208_v6 = vld [vmem:[%s1305_s28 + $0x30] sm:$0xf] (%p78_p3) }
  0x19   : > { %v210_v7 = vld [vmem:[%s1305_s28 + $0x38] sm:$0xf]  ;;  %207 = vst [vmem:[%s175_s29 + $0x14] sm:$0xf] %v206_v5  ;;  %209 = vst [vmem:[%s175_s29 + $0x18] sm:$0xf] %v208_v6 }
  0x1a   : > { %211 = vst [vmem:[%s175_s29 + $0x1c] sm:$0xf] %v210_v7  ;;  %v212_v8 = vld [vmem:[%s1305_s28 + $0x40] sm:$0xf]  ;;  %v214_v9 = vld [vmem:[%s1305_s28 + $0x48] sm:$0xf] }
  0x1b   : > { %v216_v10 = vld [vmem:[%s1305_s28 + $0x50] sm:$0xf]  ;;  %213 = vst [vmem:[%s175_s29 + $0x20] sm:$0xf] %v212_v8  ;;  %215 = vst [vmem:[%s175_s29 + $0x24] sm:$0xf] %v214_v9 }
  0x1c   : > { %217 = vst [vmem:[%s175_s29 + $0x28] sm:$0xf] %v216_v10  ;;  %v218_v11 = vld [vmem:[%s1305_s28 + $0x58] sm:$0xf]  ;;  %v220_v12 = vld [vmem:[%s1305_s28 + $0x60] sm:$0xf] }
  0x1d   : > { %v222_v13 = vld [vmem:[%s1305_s28 + $0x68] sm:$0xf]  ;;  %219 = vst [vmem:[%s175_s29 + $0x2c] sm:$0xf] %v218_v11  ;;  %221 = vst [vmem:[%s175_s29 + $0x30] sm:$0xf] %v220_v12 }
  0x1e   : > { %223 = vst [vmem:[%s175_s29 + $0x34] sm:$0xf] %v222_v13  ;;  %v224_v14 = vld [vmem:[%s1305_s28 + $0x70] sm:$0xf]  ;;  %v226_v15 = vld [vmem:[%s1305_s28 + $0x78] sm:$0xf] }
  0x1f   : > { %225 = vst [vmem:[%s175_s29 + $0x38] sm:$0xf] %v224_v14  ;;  %227 = vst [vmem:[%s175_s29 + $0x3c] sm:$0xf] %v226_v15 }
  0x20 PF: > { %p974_p8 = scmp.ge.s32.totalorder %s1235_s16, 1  ;;  %p287_p9 = scmp.lt.s32.totalorder %s1235_s16, 3 }
  0x22   : > { %p288_p10 = pnand %p974_p8, %p287_p9 }
  0x23   : > { %s294_s30 = sand.u32 (!%p288_p10), 1, %s1219_s12   ;;  %v1189_v16 = vld [vmem:[%s1416_s0] sm:$0xff] (!%p288_p10)   ;;  %v1191_v26 = vld [vmem:[%s1416_s0 + $0x8] sm:$0xff] (!%p288_p10)   ;;  %v1193_v28 = vld [vmem:[%s1416_s0 + $0x10] sm:$0xff] (!%p288_p10)   ;;  %p337_p11 = scmp.lt.s32.totalorder (!%p288_p10), %s1227_s14, 1 }
  0x24   : > { %291 = sbr.rel (%p288_p10) target bundleno = 310 (0x136), region = 69  ;;  %s1329_s6 = sshll.u32 (!%p288_p10), %s294_s30, 6  ;;  %v1190_v17 = vld [vmem:[%s1416_s0 + $0x20] sm:$0xff] (!%p288_p10)   ;;  %1109 = vmatprep.mubr.bf16.mxu0 (!%p288_p10), %v1189_v16  ;;  %v1192_v27 = vld [vmem:[%s1416_s0 + $0x28] sm:$0xff] (!%p288_p10)   ;;  %v1194_v29 = vld [vmem:[%s1416_s0 + $0x30] sm:$0xff] (!%p288_p10)  }
  0x25   : > { %s1335_s9 = scalar_lea.vmem (!%p288_p10), [#allocation3], %s1329_s6  ;;  %1117 = vmatprep.mubr.bf16.mxu1 (!%p288_p10), %v1190_v17  ;;  %v1195_v30 = vld [vmem:[%s1416_s0 + $0x18] sm:$0xff] (!%p288_p10)   ;;  %s1369_s7 = scalar_lea.vmem (!%p288_p10), [#allocation4], %s1329_s6 }
  0x26   : > { %v1181_v18 = vld [vmem:[%s1335_s9] sm:$0xff] (!%p288_p10)   ;;  %v1182_v19 = vld [vmem:[%s1335_s9 + $0x8] sm:$0xff] (!%p288_p10)   ;;  %v1183_v20 = vld [vmem:[%s1335_s9 + $0x10] sm:$0xff] (!%p288_p10)  }
  0x27   : > { %1093 = vmatprep.subr.bf16.mxu0 (!%p288_p10), %v1181_v18  ;;  %1125 = vmatprep.subr.bf16.mxu1 (!%p288_p10), %v1181_v18  ;;  %v1184_v21 = vld [vmem:[%s1335_s9 + $0x18] sm:$0xff] (!%p288_p10)   ;;  %v1185_v22 = vld [vmem:[%s1335_s9 + $0x20] sm:$0xff] (!%p288_p10)   ;;  %v1186_v23 = vld [vmem:[%s1335_s9 + $0x28] sm:$0xff] (!%p288_p10)  }
  0x28   : > { %1094 = vmatpush3.bf16.msra.mxu0 (!%p288_p10), %v1181_v18  ;;  %1133 = vmatpush3.bf16.msra.mxu1 (!%p288_p10), %v1181_v18  ;;  %v1187_v24 = vld [vmem:[%s1335_s9 + $0x30] sm:$0xff] (!%p288_p10)   ;;  %v1188_v25 = vld [vmem:[%s1335_s9 + $0x38] sm:$0xff] (!%p288_p10)  }
  0x29   : > { %1095 = vmatprep.subr.bf16.mxu0 (!%p288_p10), %v1182_v19  ;;  %1126 = vmatprep.subr.bf16.mxu1 (!%p288_p10), %v1182_v19  ;;  %v1196_v31 = vld [vmem:[%s1416_s0 + $0x38] sm:$0xff] (!%p288_p10)  }
  0x2b   : > { %s338_s29 = scalar_select %p337_p11, %s1227_s14, 1 }
  0x2c   : > { %1096 = vmatpush3.bf16.msra.mxu0 %v1182_v19  ;;  %1134 = vmatpush3.bf16.msra.mxu1 %v1182_v19  ;;  %s1011_s6 = sshll.u32 (%p1292_p6), %s1227_s14, 2 }
  0x2d   : > { %1097 = vmatprep.subr.bf16.mxu0 %v1183_v20  ;;  %1127 = vmatprep.subr.bf16.mxu1 %v1183_v20  ;;  %s339_s5 = scalar_lea.vmem %s1418_s2, %s338_s29  ;;  %s768_s10 = scalar_lea.vmem (%p1292_p6), %s1419_s3, %s1011_s6 }
  0x2e   : > { %v993_v33 = vld [vmem:[%s339_s5] ss:$0 sm:$0xff] }
  0x30   : > { %1098 = vmatpush3.bf16.msra.mxu0 %v1183_v20  ;;  %1135 = vmatpush3.bf16.msra.mxu1 %v1183_v20 }
  0x31   : > { %1099 = vmatprep.subr.bf16.mxu0 %v1184_v21  ;;  %1128 = vmatprep.subr.bf16.mxu1 %v1184_v21 }
  0x34   : > { %1100 = vmatpush3.bf16.msra.mxu0 %v1184_v21  ;;  %1136 = vmatpush3.bf16.msra.mxu1 %v1184_v21 }
  0x35   : > { %1101 = vmatprep.subr.bf16.mxu0 %v1185_v22  ;;  %1129 = vmatprep.subr.bf16.mxu1 %v1185_v22 }
  0x38   : > { %1102 = vmatpush3.bf16.msra.mxu0 %v1185_v22  ;;  %1137 = vmatpush3.bf16.msra.mxu1 %v1185_v22 }
  0x39   : > { %1103 = vmatprep.subr.bf16.mxu0 %v1186_v23  ;;  %1130 = vmatprep.subr.bf16.mxu1 %v1186_v23 }
  0x3c   : > { %1104 = vmatpush3.bf16.msra.mxu0 %v1186_v23  ;;  %1138 = vmatpush3.bf16.msra.mxu1 %v1186_v23 }
  0x3d   : > { %1105 = vmatprep.subr.bf16.mxu0 %v1187_v24  ;;  %1131 = vmatprep.subr.bf16.mxu1 %v1187_v24 }
  0x40   : > { %1106 = vmatpush3.bf16.msra.mxu0 %v1187_v24  ;;  %1139 = vmatpush3.bf16.msra.mxu1 %v1187_v24 }
  0x41   : > { %1107 = vmatprep.subr.bf16.mxu0 %v1188_v25  ;;  %1132 = vmatprep.subr.bf16.mxu1 %v1188_v25 }
  0x44   : > { %1108 = vmatpush3.bf16.msra.mxu0 %v1188_v25  ;;  %1140 = vmatpush3.bf16.msra.mxu1 %v1188_v25 }
  0x47   : > { %1110 = vmatmul.mubr.bf16.vlgmr.msra.gmra.mrb[0].mxu0 %v1191_v26  ;;  %1118 = vmatmul.mubr.bf16.vlgmr.msra.gmra.mrb[0].mxu1 %v1192_v27 }
  0x48   : > { %1113 = vmatprep.mubr.bf16.mxu0 %v1193_v28  ;;  %1121 = vmatprep.mubr.bf16.mxu1 %v1194_v29 }
  0x4f   : > { %1114 = vmatmul.mubr.bf16.gmra.mrb[4].mxu0 %v1195_v30  ;;  %1122 = vmatmul.mubr.bf16.gmra.mrb[4].mxu1 %v1196_v31 }
 0x11a   : > { %v1111_v32 = vpop.f32.mrb[0].mxu0  ;;  %v1119_v34 = vpop.f32.mrb[0].mxu1 }
 0x11b   : > { %v540_v35 = vpop.f32.mrb[1].mxu0  ;;  %v572_v36 = vpop.f32.mrb[1].mxu1  ;;  %v663_v39 = vadd.f32 %v1111_v32, %v993_v33  ;;  %v671_v40 = vadd.f32 %v1119_v34, %v993_v33 }
 0x11c   : > { %v1112_v37 = vpop.f32.mrb[2].mxu0  ;;  %v1120_v38 = vpop.f32.mrb[2].mxu1  ;;  %v661_v45 = vadd.f32 %v993_v33, %v540_v35  ;;  %v669_v46 = vadd.f32 %v993_v33, %v572_v36 }
 0x11d   : > { %v664_v41 = vadd.f32 %v1112_v37, %v993_v33  ;;  %v672_v42 = vadd.f32 %v1120_v38, %v993_v33  ;;  %v543_v43 = vpop.f32.mrb[3].mxu0  ;;  %v575_v44 = vpop.f32.mrb[3].mxu1 }
 0x11e   : > { %v662_v47 = vadd.f32 %v993_v33, %v543_v43  ;;  %v670_v48 = vadd.f32 %v993_v33, %v575_v44 }
 0x11f   : > { %v1038_v49 = vpack.c.bf16 %v664_v41, %v663_v39  ;;  %v1058_v50 = vpack.c.bf16 %v672_v42, %v671_v40 }
 0x120   : > { %v1033_v51 = vpack.c.bf16 %v662_v47, %v661_v45  ;;  %v1053_v52 = vpack.c.bf16 %v670_v48, %v669_v46 }
 0x121   : > { %1070 = vst [vmem:[%s1369_s7 + $0x8] sm:$0xff] %v1038_v49   ;;  %1074 = vst [vmem:[%s1369_s7 + $0x28] sm:$0xff] %v1058_v50  }
 0x122   : > { %1034 = vst [vmem:[%s1369_s7] sm:$0xff] %v1033_v51   ;;  %1073 = vst [vmem:[%s1369_s7 + $0x20] sm:$0xff] %v1053_v52   ;;  %v1115_v53 = vpop.f32.mrb[4].mxu0  ;;  %v1123_v54 = vpop.f32.mrb[4].mxu1 }
 0x123   : > { %v556_v55 = vpop.f32.mrb[5].mxu0  ;;  %v588_v56 = vpop.f32.mrb[5].mxu1  ;;  %v667_v59 = vadd.f32 %v1115_v53, %v993_v33  ;;  %v675_v60 = vadd.f32 %v1123_v54, %v993_v33 }
 0x124   : > { %v1116_v57 = vpop.f32.mrb[6].mxu0  ;;  %v1124_v58 = vpop.f32.mrb[6].mxu1  ;;  %v665_v1 = vadd.f32 %v993_v33, %v556_v55  ;;  %v673_v2 = vadd.f32 %v993_v33, %v588_v56  ;;  %763 = sbr.rel (!%p1292_p6) target bundleno = 310 (0x136), region = 85 }
 0x125   : > { %v668_v61 = vadd.f32 %v1116_v57, %v993_v33  ;;  %v676_v62 = vadd.f32 %v1124_v58, %v993_v33  ;;  %v559_v63 = vpop.f32.mrb[7].mxu0  ;;  %v591_v0 = vpop.f32.mrb[7].mxu1 }
 0x126   : > { %v666_v3 = vadd.f32 %v993_v33, %v559_v63  ;;  %v674_v4 = vadd.f32 %v993_v33, %v591_v0 }
 0x127   : > { %v1048_v5 = vpack.c.bf16 %v668_v61, %v667_v59  ;;  %v1068_v6 = vpack.c.bf16 %v676_v62, %v675_v60 }
 0x128   : > { %v1043_v7 = vpack.c.bf16 %v666_v3, %v665_v1  ;;  %v1063_v8 = vpack.c.bf16 %v674_v4, %v673_v2  ;;  %v788_v11 = vld [vmem:[%s1369_s7 + $0x8] sm:$0xf] (%p1292_p6)  ;;  %v790_v12 = vld [vmem:[%s1369_s7 + $0xc] sm:$0xf] (%p1292_p6) }
 0x129   : > { %1072 = vst [vmem:[%s1369_s7 + $0x18] sm:$0xff] %v1048_v5   ;;  %1076 = vst [vmem:[%s1369_s7 + $0x38] sm:$0xff] %v1068_v6   ;;  %v784_v9 = vld [vmem:[%s1369_s7] sm:$0xf] (%p1292_p6)  ;;  %v786_v10 = vld [vmem:[%s1369_s7 + $0x4] sm:$0xf] (%p1292_p6) }
 0x12a   : > { %1071 = vst [vmem:[%s1369_s7 + $0x10] sm:$0xff] %v1043_v7   ;;  %1075 = vst [vmem:[%s1369_s7 + $0x30] sm:$0xff] %v1063_v8   ;;  %v800_v17 = vld [vmem:[%s1369_s7 + $0x20] sm:$0xf] (%p1292_p6)  ;;  %v802_v18 = vld [vmem:[%s1369_s7 + $0x24] sm:$0xf] (%p1292_p6) }
 0x12b   : > { %785 = vst [vmem:[%s768_s10] sm:$0xf] %v784_v9  ;;  %787 = vst [vmem:[%s768_s10 + $0x8] sm:$0xf] %v786_v10  ;;  %v804_v19 = vld [vmem:[%s1369_s7 + $0x28] sm:$0xf] }
 0x12c   : > { %789 = vst [vmem:[%s768_s10 + $0x10] sm:$0xf] %v788_v11  ;;  %791 = vst [vmem:[%s768_s10 + $0x18] sm:$0xf] %v790_v12  ;;  %v806_v20 = vld [vmem:[%s1369_s7 + $0x2c] sm:$0xf] }
 0x12d   : > { %801 = vst [vmem:[%s768_s10 + $0x40] sm:$0xf] %v800_v17  ;;  %803 = vst [vmem:[%s768_s10 + $0x48] sm:$0xf] %v802_v18 }
 0x12e   : > { %805 = vst [vmem:[%s768_s10 + $0x50] sm:$0xf] %v804_v19  ;;  %807 = vst [vmem:[%s768_s10 + $0x58] sm:$0xf] %v806_v20 }
 0x130   : > { %v796_v15 = vld [vmem:[%s1369_s7 + $0x18] sm:$0xf]  ;;  %v798_v16 = vld [vmem:[%s1369_s7 + $0x1c] sm:$0xf] }
 0x131   : > { %v792_v13 = vld [vmem:[%s1369_s7 + $0x10] sm:$0xf]  ;;  %v794_v14 = vld [vmem:[%s1369_s7 + $0x14] sm:$0xf]  ;;  %797 = vst [vmem:[%s768_s10 + $0x30] sm:$0xf] %v796_v15 }
 0x132   : > { %793 = vst [vmem:[%s768_s10 + $0x20] sm:$0xf] %v792_v13  ;;  %795 = vst [vmem:[%s768_s10 + $0x28] sm:$0xf] %v794_v14  ;;  %v808_v21 = vld [vmem:[%s1369_s7 + $0x30] sm:$0xf] }
 0x133   : > { %799 = vst [vmem:[%s768_s10 + $0x38] sm:$0xf] %v798_v16  ;;  %v810_v22 = vld [vmem:[%s1369_s7 + $0x34] sm:$0xf]  ;;  %809 = vst [vmem:[%s768_s10 + $0x60] sm:$0xf] %v808_v21 }
 0x134   : > { %811 = vst [vmem:[%s768_s10 + $0x68] sm:$0xf] %v810_v22  ;;  %v812_v23 = vld [vmem:[%s1369_s7 + $0x38] sm:$0xf]  ;;  %v814_v24 = vld [vmem:[%s1369_s7 + $0x3c] sm:$0xf] }
 0x135   : > { %813 = vst [vmem:[%s768_s10 + $0x70] sm:$0xf] %v812_v23  ;;  %815 = vst [vmem:[%s768_s10 + $0x78] sm:$0xf] %v814_v24 }
 0x136 PF: > { %s13_s16 = sadd.s32 1, %s1235_s16   ;;  %s1421_s12 = smov %s1223_s13 }
 0x137   : > { %p10_p12 = scmp.ge.s32.totalorder %s13_s16, 4   ;;  %s1422_s13 = smov %s1297_s22 }
 0x138   : > { %s1423_s14 = smov %s1231_s15  ;;  %s1424_s15 = smov %s1426_s17 }
 0x139   :  { %12 = sbr.rel (!%p10_p12) target bundleno = 3 (0x3), region = 163 }

// kernel: _lambda_.41
= control target key start
LH: loop header
LB: loop body
LE: loop exit
PB: predicated region body
PF: predicated region fallthrough
CT: control target
= control target key end

     0   :  { %s1542_s15 = smov 0   ;;  %s1544_s16 = smov 0   ;;  %s1767_s0 = inlined_call_operand.vmem [shape: bf16[128,128], index: 0, kind: input, shape index: {}]   ;;  %s1768_s1 = inlined_call_operand.vmem [shape: bf16[128,256], index: 1, kind: input, shape index: {}]   ;;  %s1769_s2 = inlined_call_operand.vmem [shape: f32[1,256], index: 2, kind: input, shape index: {}]   ;;  %s1770_s3 = inlined_call_operand.vmem [shape: bf16[128,256], index: 3, kind: input, shape index: {}]   ;;  %s1771_s4 = inlined_call_operand.vmem [shape: bf16[128,256], index: 4, kind: output, shape index: {}]  }
   0x1   :  { %s1546_s17 = smov 0   ;;  %s1548_s18 = smov 0  }
   0x2   :  { %s1550_s19 = smov 0  }
   0x3 LB: > { %s29_s20 = sadd.s32 1, %s1511_s18  ;;  %s1205_s21 = sadd.s32 4294967295, %s1515_s19   ;;  %s1515_s19 = sphi %s1550_s19, %s14_s19   ;;  %s1511_s18 = sphi %s1548_s18, %s1777_s18   ;;  %s1507_s17 = sphi %s1546_s17, %s1776_s17   ;;  %s1503_s16 = sphi %s1544_s16, %s1775_s16   ;;  %s1499_s15 = sphi %s1542_s15, %s1774_s15  }
   0x4   : > { %p31_p0 = scmp.ge.s32.totalorder %s29_s20, 2  ;;  %p77_p1 = scmp.ne.s32.totalorder %s1503_s16, %s1499_s15 }
   0x5   : > { %p78_p2 = scmp.eq.s32.totalorder %s1515_s19, 0  ;;  %p163_p4 = scmp.eq.s32.totalorder %s1205_s21, 1 }
   0x6   : > { %s1779_s20 = smov (%p31_p0, %s29_s20), 0  ;;  %s70_s24 = sadd.s32 1, %s1503_s16 }
   0x7   : > { %p1574_p3 = por %p78_p2, %p77_p1  ;;  %s66_s23 = ssub.s32 %s1511_s18, %s1779_s20 }
   0x8   : > { %p68_p5 = scmp.eq.s32.totalorder %s66_s23, 0  ;;  %p1581_p6 = por %p163_p4, %p77_p1 }
   0x9   : > { %p1209_p7 = scmp.ge.s32.totalorder %s1515_s19, 2 }
   0xa   : > { %s1586_s26 = scalar_select %p68_p5, %s1503_s16, %s70_s24  }
   0xb   : > { %197 = sbr.rel (%p1209_p7) target bundleno = 46 (0x2e), region = 20 }
  0x12   : > { %200 = sbr.rel (!%p1574_p3) target bundleno = 32 (0x20), region = 24  ;;  %s202_s27 = sand.u32 (%p1574_p3), 1, %s1503_s16  }
  0x13   : > { %s1211_s28 = sshll.u32 (%p1574_p3), %s1511_s18, 2  ;;  %s1210_s29 = sshll.u32 (%p1574_p3), %s202_s27, 6 }
  0x14   : > { %s1596_s6 = scalar_lea.vmem (%p1574_p3), %s1768_s1, %s1211_s28  ;;  %s204_s7 = scalar_lea.vmem (%p1574_p3), [#allocation3], %s1210_s29 }
  0x15   : > { %v225_v0 = vld [vmem:[%s1596_s6] sm:$0xf] (%p1574_p3)  ;;  %v227_v1 = vld [vmem:[%s1596_s6 + $0x8] sm:$0xf] (%p1574_p3)  ;;  %v229_v2 = vld [vmem:[%s1596_s6 + $0x10] sm:$0xf] (%p1574_p3) }
  0x16   : > { %226 = vst [vmem:[%s204_s7] sm:$0xf] (%p1574_p3), %v225_v0  ;;  %228 = vst [vmem:[%s204_s7 + $0x4] sm:$0xf] (%p1574_p3), %v227_v1  ;;  %v231_v3 = vld [vmem:[%s1596_s6 + $0x18] sm:$0xf] (%p1574_p3) }
  0x17   : > { %v233_v4 = vld [vmem:[%s1596_s6 + $0x20] sm:$0xf] (%p1574_p3)  ;;  %230 = vst [vmem:[%s204_s7 + $0x8] sm:$0xf] (%p1574_p3), %v229_v2  ;;  %232 = vst [vmem:[%s204_s7 + $0xc] sm:$0xf] (%p1574_p3), %v231_v3 }
  0x18   : > { %234 = vst [vmem:[%s204_s7 + $0x10] sm:$0xf] (%p1574_p3), %v233_v4  ;;  %v235_v5 = vld [vmem:[%s1596_s6 + $0x28] sm:$0xf] (%p1574_p3)  ;;  %v237_v6 = vld [vmem:[%s1596_s6 + $0x30] sm:$0xf] (%p1574_p3) }
  0x19   : > { %v239_v7 = vld [vmem:[%s1596_s6 + $0x38] sm:$0xf]  ;;  %236 = vst [vmem:[%s204_s7 + $0x14] sm:$0xf] %v235_v5  ;;  %238 = vst [vmem:[%s204_s7 + $0x18] sm:$0xf] %v237_v6 }
  0x1a   : > { %240 = vst [vmem:[%s204_s7 + $0x1c] sm:$0xf] %v239_v7  ;;  %v241_v8 = vld [vmem:[%s1596_s6 + $0x40] sm:$0xf]  ;;  %v243_v9 = vld [vmem:[%s1596_s6 + $0x48] sm:$0xf] }
  0x1b   : > { %v245_v10 = vld [vmem:[%s1596_s6 + $0x50] sm:$0xf]  ;;  %242 = vst [vmem:[%s204_s7 + $0x20] sm:$0xf] %v241_v8  ;;  %244 = vst [vmem:[%s204_s7 + $0x24] sm:$0xf] %v243_v9 }
  0x1c   : > { %246 = vst [vmem:[%s204_s7 + $0x28] sm:$0xf] %v245_v10  ;;  %v247_v11 = vld [vmem:[%s1596_s6 + $0x58] sm:$0xf]  ;;  %v249_v12 = vld [vmem:[%s1596_s6 + $0x60] sm:$0xf] }
  0x1d   : > { %v251_v13 = vld [vmem:[%s1596_s6 + $0x68] sm:$0xf]  ;;  %248 = vst [vmem:[%s204_s7 + $0x2c] sm:$0xf] %v247_v11  ;;  %250 = vst [vmem:[%s204_s7 + $0x30] sm:$0xf] %v249_v12 }
  0x1e   : > { %252 = vst [vmem:[%s204_s7 + $0x34] sm:$0xf] %v251_v13  ;;  %v253_v14 = vld [vmem:[%s1596_s6 + $0x70] sm:$0xf]  ;;  %v255_v15 = vld [vmem:[%s1596_s6 + $0x78] sm:$0xf] }
  0x1f   : > { %254 = vst [vmem:[%s204_s7 + $0x38] sm:$0xf] %v253_v14  ;;  %256 = vst [vmem:[%s204_s7 + $0x3c] sm:$0xf] %v255_v15 }
  0x20 PF: > { %317 = sbr.rel (!%p1574_p3) target bundleno = 46 (0x2e), region = 69  ;;  %s319_s8 = sand.u32 (%p1574_p3), 1, %s1503_s16  }
  0x21   : > { %s1213_s9 = sshll.u32 (%p1574_p3), %s1511_s18, 2  ;;  %s1212_s10 = sshll.u32 (%p1574_p3), %s319_s8, 6 }
  0x22   : > { %s1621_s13 = scalar_lea.vmem (%p1574_p3), %s1770_s3, %s1213_s9  ;;  %s321_s14 = scalar_lea.vmem (%p1574_p3), [#allocation4], %s1212_s10 }
  0x23   : > { %v342_v16 = vld [vmem:[%s1621_s13] sm:$0xf] (%p1574_p3)  ;;  %v344_v17 = vld [vmem:[%s1621_s13 + $0x8] sm:$0xf] (%p1574_p3)  ;;  %v346_v18 = vld [vmem:[%s1621_s13 + $0x10] sm:$0xf] (%p1574_p3) }
  0x24   : > { %343 = vst [vmem:[%s321_s14] sm:$0xf] (%p1574_p3), %v342_v16  ;;  %345 = vst [vmem:[%s321_s14 + $0x4] sm:$0xf] (%p1574_p3), %v344_v17  ;;  %v348_v19 = vld [vmem:[%s1621_s13 + $0x18] sm:$0xf] (%p1574_p3) }
  0x25   : > { %v350_v20 = vld [vmem:[%s1621_s13 + $0x20] sm:$0xf] (%p1574_p3)  ;;  %347 = vst [vmem:[%s321_s14 + $0x8] sm:$0xf] (%p1574_p3), %v346_v18  ;;  %349 = vst [vmem:[%s321_s14 + $0xc] sm:$0xf] (%p1574_p3), %v348_v19 }
  0x26   : > { %351 = vst [vmem:[%s321_s14 + $0x10] sm:$0xf] (%p1574_p3), %v350_v20  ;;  %v352_v21 = vld [vmem:[%s1621_s13 + $0x28] sm:$0xf] (%p1574_p3)  ;;  %v354_v22 = vld [vmem:[%s1621_s13 + $0x30] sm:$0xf] (%p1574_p3) }
  0x27   : > { %v356_v23 = vld [vmem:[%s1621_s13 + $0x38] sm:$0xf]  ;;  %353 = vst [vmem:[%s321_s14 + $0x14] sm:$0xf] %v352_v21  ;;  %355 = vst [vmem:[%s321_s14 + $0x18] sm:$0xf] %v354_v22 }
  0x28   : > { %357 = vst [vmem:[%s321_s14 + $0x1c] sm:$0xf] %v356_v23  ;;  %v358_v24 = vld [vmem:[%s1621_s13 + $0x40] sm:$0xf]  ;;  %v360_v25 = vld [vmem:[%s1621_s13 + $0x48] sm:$0xf] }
  0x29   : > { %v362_v26 = vld [vmem:[%s1621_s13 + $0x50] sm:$0xf]  ;;  %359 = vst [vmem:[%s321_s14 + $0x20] sm:$0xf] %v358_v24  ;;  %361 = vst [vmem:[%s321_s14 + $0x24] sm:$0xf] %v360_v25 }
  0x2a   : > { %363 = vst [vmem:[%s321_s14 + $0x28] sm:$0xf] %v362_v26  ;;  %v364_v27 = vld [vmem:[%s1621_s13 + $0x58] sm:$0xf]  ;;  %v366_v28 = vld [vmem:[%s1621_s13 + $0x60] sm:$0xf] }
  0x2b   : > { %v368_v29 = vld [vmem:[%s1621_s13 + $0x68] sm:$0xf]  ;;  %365 = vst [vmem:[%s321_s14 + $0x2c] sm:$0xf] %v364_v27  ;;  %367 = vst [vmem:[%s321_s14 + $0x30] sm:$0xf] %v366_v28 }
  0x2c   : > { %369 = vst [vmem:[%s321_s14 + $0x34] sm:$0xf] %v368_v29  ;;  %v370_v30 = vld [vmem:[%s1621_s13 + $0x70] sm:$0xf]  ;;  %v372_v31 = vld [vmem:[%s1621_s13 + $0x78] sm:$0xf] }
  0x2d   : > { %371 = vst [vmem:[%s321_s14 + $0x38] sm:$0xf] %v370_v30  ;;  %373 = vst [vmem:[%s321_s14 + $0x3c] sm:$0xf] %v372_v31 }
  0x2e PF: > { %p1214_p8 = scmp.ge.s32.totalorder %s1515_s19, 1  ;;  %p427_p9 = scmp.lt.s32.totalorder %s1515_s19, 3 }
  0x30   : > { %p428_p10 = pnand %p1214_p8, %p427_p9 }
  0x31   : > { %s434_s21 = sand.u32 (!%p428_p10), 1, %s1499_s15   ;;  %v1469_v32 = vld [vmem:[%s1767_s0] sm:$0xff] (!%p428_p10)   ;;  %v1471_v42 = vld [vmem:[%s1767_s0 + $0x8] sm:$0xff] (!%p428_p10)   ;;  %v1473_v44 = vld [vmem:[%s1767_s0 + $0x10] sm:$0xff] (!%p428_p10)   ;;  %p490_p11 = scmp.lt.s32.totalorder (!%p428_p10), %s1507_s17, 1 }
  0x32   : > { %431 = sbr.rel (%p428_p10) target bundleno = 328 (0x148), region = 110  ;;  %s1645_s24 = sshll.u32 (!%p428_p10), %s434_s21, 6  ;;  %v1470_v33 = vld [vmem:[%s1767_s0 + $0x20] sm:$0xff] (!%p428_p10)   ;;  %1389 = vmatprep.mubr.bf16.mxu0 (!%p428_p10), %v1469_v32  ;;  %v1472_v43 = vld [vmem:[%s1767_s0 + $0x28] sm:$0xff] (!%p428_p10)   ;;  %v1474_v45 = vld [vmem:[%s1767_s0 + $0x30] sm:$0xff] (!%p428_p10)  }
  0x33   : > { %s1651_s29 = scalar_lea.vmem (!%p428_p10), [#allocation3], %s1645_s24  ;;  %1397 = vmatprep.mubr.bf16.mxu1 (!%p428_p10), %v1470_v33  ;;  %v1475_v46 = vld [vmem:[%s1767_s0 + $0x18] sm:$0xff] (!%p428_p10)   ;;  %s443_s28 = scalar_lea.vmem (!%p428_p10), [#allocation4], %s1645_s24 }
  0x34   : > { %v1461_v34 = vld [vmem:[%s1651_s29] sm:$0xff] (!%p428_p10)   ;;  %v1462_v35 = vld [vmem:[%s1651_s29 + $0x8] sm:$0xff] (!%p428_p10)   ;;  %v1463_v36 = vld [vmem:[%s1651_s29 + $0x10] sm:$0xff] (!%p428_p10)  }
  0x35   : > { %1373 = vmatprep.subr.bf16.mxu0 (!%p428_p10), %v1461_v34  ;;  %1405 = vmatprep.subr.bf16.mxu1 (!%p428_p10), %v1461_v34  ;;  %v1464_v37 = vld [vmem:[%s1651_s29 + $0x18] sm:$0xff] (!%p428_p10)   ;;  %v1465_v38 = vld [vmem:[%s1651_s29 + $0x20] sm:$0xff] (!%p428_p10)   ;;  %v1466_v39 = vld [vmem:[%s1651_s29 + $0x28] sm:$0xff] (!%p428_p10)  }
  0x36   : > { %1374 = vmatpush3.bf16.msra.mxu0 (!%p428_p10), %v1461_v34  ;;  %1413 = vmatpush3.bf16.msra.mxu1 (!%p428_p10), %v1461_v34  ;;  %v1467_v40 = vld [vmem:[%s1651_s29 + $0x30] sm:$0xff] (!%p428_p10)   ;;  %v1468_v41 = vld [vmem:[%s1651_s29 + $0x38] sm:$0xff] (!%p428_p10)   ;;  %v1343_v48 = vld [vmem:[%s443_s28 + $0x8] sm:$0xff] (!%p428_p10)   ;;  %s1716_s29 = scalar_lea.vmem (!%p428_p10), [#allocation5], %s1645_s24 }
  0x37   : > { %1375 = vmatprep.subr.bf16.mxu0 (!%p428_p10), %v1462_v35  ;;  %1406 = vmatprep.subr.bf16.mxu1 (!%p428_p10), %v1462_v35  ;;  %v1476_v47 = vld [vmem:[%s1767_s0 + $0x38] sm:$0xff] (!%p428_p10)   ;;  %v1347_v49 = vld [vmem:[%s443_s28 + $0x28] sm:$0xff] (!%p428_p10)   ;;  %v1272_v50 = vld [vmem:[%s443_s28] sm:$0xff] (!%p428_p10)   ;;  %v1277_v55 = vunpack.c.l.bf16 (!%p428_p10), %v1343_v48  ;;  %v1278_v63 = vunpack.c.h.bf16 (!%p428_p10), %v1343_v48 }
  0x38   : > { %v1346_v51 = vld [vmem:[%s443_s28 + $0x20] sm:$0xff] (!%p428_p10)   ;;  %v1687_v53 = vld [vmem:[%s443_s28 + $0x18] sm:$0xff] (!%p428_p10)   ;;  %v1293_v56 = vunpack.c.l.bf16 (!%p428_p10), %v1347_v49  ;;  %v1273_v57 = vunpack.c.l.bf16 (!%p428_p10), %v1272_v50  ;;  %v1691_v59 = vld [vmem:[%s443_s28 + $0x10] sm:$0xff] (!%p428_p10)   ;;  %v1294_v0 = vunpack.c.h.bf16 (!%p428_p10), %v1347_v49  ;;  %v1274_v1 = vunpack.c.h.bf16 (!%p428_p10), %v1272_v50 }
  0x39   : > { %s491_s21 = scalar_select %p490_p11, %s1507_s17, 1  ;;  %v1689_v54 = vld [vmem:[%s443_s28 + $0x38] sm:$0xff]   ;;  %v1289_v58 = vunpack.c.l.bf16 %v1346_v51  ;;  %v1693_v60 = vld [vmem:[%s443_s28 + $0x30] sm:$0xff]   ;;  %v1290_v2 = vunpack.c.h.bf16 %v1346_v51  ;;  %v1285_v7 = vunpack.c.l.bf16 %v1687_v53  ;;  %v1281_v13 = vunpack.c.l.bf16 %v1691_v59 }
  0x3a   : > { %1376 = vmatpush3.bf16.msra.mxu0 %v1462_v35  ;;  %1414 = vmatpush3.bf16.msra.mxu1 %v1462_v35  ;;  %v1301_v8 = vunpack.c.l.bf16 %v1689_v54  ;;  %v1297_v14 = vunpack.c.l.bf16 %v1693_v60  ;;  %v1286_v27 = vunpack.c.h.bf16 %v1687_v53  ;;  %v1302_v28 = vunpack.c.h.bf16 %v1689_v54  ;;  %s1252_s24 = sshll.u32 (%p1581_p6), %s1507_s17, 2 }
  0x3b   : > { %1377 = vmatprep.subr.bf16.mxu0 %v1463_v36  ;;  %1407 = vmatprep.subr.bf16.mxu1 %v1463_v36  ;;  %s492_s27 = scalar_lea.vmem %s1769_s2, %s491_s21  ;;  %v1282_v31 = vunpack.c.h.bf16 %v1691_v59  ;;  %v1298_v32 = vunpack.c.h.bf16 %v1693_v60  ;;  %s986_s5 = scalar_lea.vmem (%p1581_p6), %s1771_s4, %s1252_s24 }
  0x3c   : > { %v1685_v52 = vld [vmem:[%s492_s27] ss:$0 sm:$0xff] }
  0x3e   : > { %1378 = vmatpush3.bf16.msra.mxu0 %v1463_v36  ;;  %1415 = vmatpush3.bf16.msra.mxu1 %v1463_v36 }
  0x3f   : > { %1379 = vmatprep.subr.bf16.mxu0 %v1464_v37  ;;  %1408 = vmatprep.subr.bf16.mxu1 %v1464_v37 }
  0x42   : > { %1380 = vmatpush3.bf16.msra.mxu0 %v1464_v37  ;;  %1416 = vmatpush3.bf16.msra.mxu1 %v1464_v37 }
  0x43   : > { %1381 = vmatprep.subr.bf16.mxu0 %v1465_v38  ;;  %1409 = vmatprep.subr.bf16.mxu1 %v1465_v38 }
  0x46   : > { %1382 = vmatpush3.bf16.msra.mxu0 %v1465_v38  ;;  %1417 = vmatpush3.bf16.msra.mxu1 %v1465_v38 }
  0x47   : > { %1383 = vmatprep.subr.bf16.mxu0 %v1466_v39  ;;  %1410 = vmatprep.subr.bf16.mxu1 %v1466_v39 }
  0x4a   : > { %1384 = vmatpush3.bf16.msra.mxu0 %v1466_v39  ;;  %1418 = vmatpush3.bf16.msra.mxu1 %v1466_v39 }
  0x4b   : > { %1385 = vmatprep.subr.bf16.mxu0 %v1467_v40  ;;  %1411 = vmatprep.subr.bf16.mxu1 %v1467_v40 }
  0x4e   : > { %1386 = vmatpush3.bf16.msra.mxu0 %v1467_v40  ;;  %1419 = vmatpush3.bf16.msra.mxu1 %v1467_v40 }
  0x4f   : > { %1387 = vmatprep.subr.bf16.mxu0 %v1468_v41  ;;  %1412 = vmatprep.subr.bf16.mxu1 %v1468_v41 }
  0x52   : > { %1388 = vmatpush3.bf16.msra.mxu0 %v1468_v41  ;;  %1420 = vmatpush3.bf16.msra.mxu1 %v1468_v41 }
  0x55   : > { %1390 = vmatmul.mubr.bf16.vlgmr.msra.gmra.mrb[0].mxu0 %v1471_v42  ;;  %1398 = vmatmul.mubr.bf16.vlgmr.msra.gmra.mrb[0].mxu1 %v1472_v43 }
  0x56   : > { %1393 = vmatprep.mubr.bf16.mxu0 %v1473_v44  ;;  %1401 = vmatprep.mubr.bf16.mxu1 %v1474_v45 }
  0x5d   : > { %1394 = vmatmul.mubr.bf16.gmra.mrb[4].mxu0 %v1475_v46  ;;  %1402 = vmatmul.mubr.bf16.gmra.mrb[4].mxu1 %v1476_v47 }
 0x128   : > { %v1391_v61 = vpop.f32.mrb[0].mxu0  ;;  %v1399_v62 = vpop.f32.mrb[0].mxu1 }
 0x129   : > { %v817_v3 = vadd.f32 %v1391_v61, %v1685_v52  ;;  %v825_v4 = vadd.f32 %v1399_v62, %v1685_v52  ;;  %v694_v5 = vpop.f32.mrb[1].mxu0  ;;  %v726_v6 = vpop.f32.mrb[1].mxu1 }
 0x12a   : > { %v815_v9 = vadd.f32 %v1685_v52, %v694_v5  ;;  %v823_v10 = vadd.f32 %v1685_v52, %v726_v6  ;;  %v1392_v11 = vpop.f32.mrb[2].mxu0  ;;  %v1400_v12 = vpop.f32.mrb[2].mxu1 }
 0x12b   : > { %v865_v15 = vadd.f32 %v1277_v55, %v817_v3  ;;  %v873_v16 = vadd.f32 %v1293_v56, %v825_v4  ;;  %v818_v17 = vadd.f32 %v1392_v11, %v1685_v52  ;;  %v826_v18 = vadd.f32 %v1400_v12, %v1685_v52  ;;  %v697_v19 = vpop.f32.mrb[3].mxu0  ;;  %v729_v20 = vpop.f32.mrb[3].mxu1 }
 0x12c   : > { %v863_v21 = vadd.f32 %v1273_v57, %v815_v9  ;;  %v871_v22 = vadd.f32 %v1289_v58, %v823_v10  ;;  %v816_v23 = vadd.f32 %v1685_v52, %v697_v19  ;;  %v824_v24 = vadd.f32 %v1685_v52, %v729_v20 }
 0x12d   : > { %v866_v25 = vadd.f32 %v1278_v63, %v818_v17  ;;  %v874_v26 = vadd.f32 %v1294_v0, %v826_v18  ;;  %v881_v33 = vmax.f32 %v865_v15, 0.0  ;;  %v889_v34 = vmax.f32 %v873_v16, 0.0 }
 0x12e   : > { %v864_v29 = vadd.f32 %v1274_v1, %v816_v23  ;;  %v872_v30 = vadd.f32 %v1290_v2, %v824_v24  ;;  %v879_v37 = vmax.f32 %v863_v21, 0.0  ;;  %v887_v38 = vmax.f32 %v871_v22, 0.0 }
 0x12f   : > { %v882_v35 = vmax.f32 %v866_v25, 0.0  ;;  %v890_v36 = vmax.f32 %v874_v26, 0.0 }
 0x130   : > { %v880_v39 = vmax.f32 %v864_v29, 0.0  ;;  %v888_v40 = vmax.f32 %v872_v30, 0.0  ;;  %v1395_v41 = vpop.f32.mrb[4].mxu0  ;;  %v1403_v42 = vpop.f32.mrb[4].mxu1 }
 0x131   : > { %v1311_v43 = vpack.c.bf16 %v882_v35, %v881_v33  ;;  %v1331_v44 = vpack.c.bf16 %v890_v36, %v889_v34  ;;  %v821_v45 = vadd.f32 %v1395_v41, %v1685_v52  ;;  %v829_v46 = vadd.f32 %v1403_v42, %v1685_v52  ;;  %v710_v47 = vpop.f32.mrb[5].mxu0  ;;  %v742_v48 = vpop.f32.mrb[5].mxu1 }
 0x132   : > { %v1306_v49 = vpack.c.bf16 %v880_v39, %v879_v37  ;;  %v1326_v50 = vpack.c.bf16 %v888_v40, %v887_v38  ;;  %v819_v51 = vadd.f32 %v1685_v52, %v710_v47  ;;  %v827_v53 = vadd.f32 %v1685_v52, %v742_v48  ;;  %v1396_v54 = vpop.f32.mrb[6].mxu0  ;;  %v1404_v55 = vpop.f32.mrb[6].mxu1 }
 0x133   : > { %1350 = vst [vmem:[%s1716_s29 + $0x8] sm:$0xff] %v1311_v43   ;;  %1354 = vst [vmem:[%s1716_s29 + $0x28] sm:$0xff] %v1331_v44   ;;  %v869_v56 = vadd.f32 %v1285_v7, %v821_v45  ;;  %v877_v57 = vadd.f32 %v1301_v8, %v829_v46  ;;  %v822_v58 = vadd.f32 %v1396_v54, %v1685_v52  ;;  %v713_v60 = vpop.f32.mrb[7].mxu0  ;;  %v745_v61 = vpop.f32.mrb[7].mxu1 }
 0x134   : > { %v830_v59 = vadd.f32 %v1404_v55, %v1685_v52  ;;  %1307 = vst [vmem:[%s1716_s29] sm:$0xff] %v1306_v49   ;;  %1353 = vst [vmem:[%s1716_s29 + $0x20] sm:$0xff] %v1326_v50   ;;  %v867_v62 = vadd.f32 %v1281_v13, %v819_v51  ;;  %v875_v63 = vadd.f32 %v1297_v14, %v827_v53 }
 0x135   : > { %v820_v0 = vadd.f32 %v1685_v52, %v713_v60  ;;  %v828_v1 = vadd.f32 %v1685_v52, %v745_v61  ;;  %v870_v2 = vadd.f32 %v1286_v27, %v822_v58  ;;  %v885_v6 = vmax.f32 %v869_v56, 0.0 }
 0x136   : > { %v878_v3 = vadd.f32 %v1302_v28, %v830_v59  ;;  %v893_v7 = vmax.f32 %v877_v57, 0.0  ;;  %v883_v10 = vmax.f32 %v867_v62, 0.0  ;;  %v891_v11 = vmax.f32 %v875_v63, 0.0 }
 0x137   : > { %v868_v4 = vadd.f32 %v1282_v31, %v820_v0  ;;  %v876_v5 = vadd.f32 %v1298_v32, %v828_v1  ;;  %v886_v8 = vmax.f32 %v870_v2, 0.0  ;;  %981 = sbr.rel (!%p1581_p6) target bundleno = 328 (0x148), region = 130 }
 0x138   : > { %v894_v9 = vmax.f32 %v878_v3, 0.0 }
 0x139   : > { %v884_v12 = vmax.f32 %v868_v4, 0.0  ;;  %v892_v13 = vmax.f32 %v876_v5, 0.0  ;;  %v1321_v14 = vpack.c.bf16 %v886_v8, %v885_v6 }
 0x13a   : > { %v1341_v15 = vpack.c.bf16 %v894_v9, %v893_v7  ;;  %v1006_v19 = vld [vmem:[%s1716_s29 + $0x8] sm:$0xf] (%p1581_p6)  ;;  %v1008_v20 = vld [vmem:[%s1716_s29 + $0xc] sm:$0xf] (%p1581_p6) }
 0x13b   : > { %v1316_v16 = vpack.c.bf16 %v884_v12, %v883_v10  ;;  %v1336_v52 = vpack.c.bf16 %v892_v13, %v891_v11  ;;  %1352 = vst [vmem:[%s1716_s29 + $0x18] sm:$0xff] %v1321_v14   ;;  %v1002_v17 = vld [vmem:[%s1716_s29] sm:$0xf] (%p1581_p6)  ;;  %v1004_v18 = vld [vmem:[%s1716_s29 + $0x4] sm:$0xf] (%p1581_p6) }
 0x13c   : > { %1356 = vst [vmem:[%s1716_s29 + $0x38] sm:$0xff] %v1341_v15   ;;  %1003 = vst [vmem:[%s986_s5] sm:$0xf] (%p1581_p6), %v1002_v17  ;;  %v1018_v25 = vld [vmem:[%s1716_s29 + $0x20] sm:$0xf] (%p1581_p6)  ;;  %v1020_v26 = vld [vmem:[%s1716_s29 + $0x24] sm:$0xf] (%p1581_p6) }
 0x13d   : > { %1351 = vst [vmem:[%s1716_s29 + $0x10] sm:$0xff] %v1316_v16   ;;  %1355 = vst [vmem:[%s1716_s29 + $0x30] sm:$0xff] %v1336_v52   ;;  %v1022_v27 = vld [vmem:[%s1716_s29 + $0x28] sm:$0xf] (%p1581_p6)  ;;  %v1024_v28 = vld [vmem:[%s1716_s29 + $0x2c] sm:$0xf] (%p1581_p6) }
 0x13e   : > { %1005 = vst [vmem:[%s986_s5 + $0x8] sm:$0xf] %v1004_v18  ;;  %1007 = vst [vmem:[%s986_s5 + $0x10] sm:$0xf] %v1006_v19 }
 0x13f   : > { %1009 = vst [vmem:[%s986_s5 + $0x18] sm:$0xf] %v1008_v20  ;;  %1019 = vst [vmem:[%s986_s5 + $0x40] sm:$0xf] %v1018_v25 }
 0x140   : > { %1021 = vst [vmem:[%s986_s5 + $0x48] sm:$0xf] %v1020_v26  ;;  %1023 = vst [vmem:[%s986_s5 + $0x50] sm:$0xf] %v1022_v27 }
 0x141   : > { %1025 = vst [vmem:[%s986_s5 + $0x58] sm:$0xf] %v1024_v28 }
 0x142   : > { %v1014_v23 = vld [vmem:[%s1716_s29 + $0x18] sm:$0xf]  ;;  %v1016_v24 = vld [vmem:[%s1716_s29 + $0x1c] sm:$0xf] }
 0x143   : > { %1015 = vst [vmem:[%s986_s5 + $0x30] sm:$0xf] %v1014_v23  ;;  %1017 = vst [vmem:[%s986_s5 + $0x38] sm:$0xf] %v1016_v24  ;;  %v1030_v31 = vld [vmem:[%s1716_s29 + $0x38] sm:$0xf] }
 0x144   : > { %v1010_v21 = vld [vmem:[%s1716_s29 + $0x10] sm:$0xf]  ;;  %v1012_v22 = vld [vmem:[%s1716_s29 + $0x14] sm:$0xf]  ;;  %v1032_v32 = vld [vmem:[%s1716_s29 + $0x3c] sm:$0xf] }
 0x145   : > { %1011 = vst [vmem:[%s986_s5 + $0x20] sm:$0xf] %v1010_v21  ;;  %1013 = vst [vmem:[%s986_s5 + $0x28] sm:$0xf] %v1012_v22  ;;  %v1026_v29 = vld [vmem:[%s1716_s29 + $0x30] sm:$0xf] }
 0x146   : > { %v1028_v30 = vld [vmem:[%s1716_s29 + $0x34] sm:$0xf]  ;;  %1027 = vst [vmem:[%s986_s5 + $0x60] sm:$0xf] %v1026_v29  ;;  %1031 = vst [vmem:[%s986_s5 + $0x70] sm:$0xf] %v1030_v31 }
 0x147   : > { %1029 = vst [vmem:[%s986_s5 + $0x68] sm:$0xf] %v1028_v30  ;;  %1033 = vst [vmem:[%s986_s5 + $0x78] sm:$0xf] %v1032_v32 }
 0x148 PF: > { %s14_s19 = sadd.s32 1, %s1515_s19   ;;  %s1774_s15 = smov %s1503_s16 }
 0x149   : > { %p11_p12 = scmp.ge.s32.totalorder %s14_s19, 4   ;;  %s1775_s16 = smov %s1586_s26 }
 0x14a   : > { %s1776_s17 = smov %s1511_s18  ;;  %s1777_s18 = smov %s1779_s20 }
 0x14b   :  { %13 = sbr.rel (!%p11_p12) target bundleno = 3 (0x3), region = 216 }

// kernel: _lambda_.42
= control target key start
LH: loop header
LB: loop body
LE: loop exit
PB: predicated region body
PF: predicated region fallthrough
CT: control target
= control target key end

     0   :  { %s1484_s12 = smov 0   ;;  %s1486_s13 = smov 0   ;;  %s1743_s0 = inlined_call_operand.vmem [shape: bf16[128,256], index: 0, kind: input, shape index: {}]   ;;  %s1744_s1 = inlined_call_operand.vmem [shape: bf16[256,256], index: 1, kind: input, shape index: {}]   ;;  %s1745_s2 = inlined_call_operand.vmem [shape: f32[1,256], index: 2, kind: input, shape index: {}]   ;;  %s1746_s3 = inlined_call_operand.vmem [shape: bf16[128,256], index: 3, kind: output, shape index: {}]  }
   0x1   :  { %s1488_s14 = smov 0   ;;  %s1490_s15 = smov 0  }
   0x2   :  { %s1492_s16 = smov 0  }
   0x3 LB: > { %s28_s17 = sadd.s32 1, %s1458_s15  ;;  %s1138_s18 = sadd.s32 4294967295, %s1462_s16   ;;  %s1462_s16 = sphi %s1492_s16, %s13_s16   ;;  %s1458_s15 = sphi %s1490_s15, %s1751_s15   ;;  %s1454_s14 = sphi %s1488_s14, %s1750_s14   ;;  %s1450_s13 = sphi %s1486_s13, %s1749_s13   ;;  %s1446_s12 = sphi %s1484_s12, %s1748_s12  }
   0x4   : > { %p30_p0 = scmp.ge.s32.totalorder %s28_s17, 2  ;;  %p76_p1 = scmp.ne.s32.totalorder %s1450_s13, %s1446_s12 }
   0x5   : > { %p77_p2 = scmp.eq.s32.totalorder %s1462_s16, 0  ;;  %p134_p4 = scmp.eq.s32.totalorder %s1138_s18, 1 }
   0x6   : > { %s1753_s17 = smov (%p30_p0, %s28_s17), 0  ;;  %s69_s20 = sadd.s32 1, %s1450_s13 }
   0x7   : > { %p78_p3 = por %p77_p2, %p76_p1  ;;  %s65_s19 = ssub.s32 %s1458_s15, %s1753_s17 }
   0x8   : > { %p67_p5 = scmp.eq.s32.totalorder %s65_s19, 0  ;;  %p1519_p6 = por %p134_p4, %p76_p1 }
   0x9   : > { %p1142_p7 = scmp.ge.s32.totalorder %s1462_s16, 2 }
   0xa   : > { %s1524_s22 = scalar_select %p67_p5, %s1450_s13, %s69_s20  }
   0xb   : > { %171 = sbr.rel (%p1142_p7) target bundleno = 43 (0x2b), region = 20 }
  0x12   : > { %174 = sbr.rel (!%p78_p3) target bundleno = 43 (0x2b), region = 24  ;;  %s176_s23 = sand.u32 (%p78_p3), 1, %s1450_s13  }
  0x13   : > { %s1144_s24 = sshll.u32 (%p78_p3), %s1458_s15, 2  ;;  %s1143_s25 = sshll.u32 (%p78_p3), %s176_s23, 7 }
  0x14   : > { %s1532_s28 = scalar_lea.vmem (%p78_p3), %s1744_s1, %s1144_s24  ;;  %s1536_s29 = scalar_lea.vmem (%p78_p3), [#allocation3], %s1143_s25 }
  0x15   : > { %v199_v0 = vld [vmem:[%s1532_s28] sm:$0xf] (%p78_p3)  ;;  %v201_v1 = vld [vmem:[%s1532_s28 + $0x8] sm:$0xf] (%p78_p3)  ;;  %v203_v2 = vld [vmem:[%s1532_s28 + $0x10] sm:$0xf] (%p78_p3) }
  0x16   : > { %200 = vst [vmem:[%s1536_s29] sm:$0xf] (%p78_p3), %v199_v0  ;;  %202 = vst [vmem:[%s1536_s29 + $0x4] sm:$0xf] (%p78_p3), %v201_v1  ;;  %v205_v3 = vld [vmem:[%s1532_s28 + $0x18] sm:$0xf] (%p78_p3) }
  0x17   : > { %v207_v4 = vld [vmem:[%s1532_s28 + $0x20] sm:$0xf] (%p78_p3)  ;;  %204 = vst [vmem:[%s1536_s29 + $0x8] sm:$0xf] (%p78_p3), %v203_v2  ;;  %206 = vst [vmem:[%s1536_s29 + $0xc] sm:$0xf] (%p78_p3), %v205_v3 }
  0x18   : > { %208 = vst [vmem:[%s1536_s29 + $0x10] sm:$0xf] (%p78_p3), %v207_v4  ;;  %v209_v5 = vld [vmem:[%s1532_s28 + $0x28] sm:$0xf] (%p78_p3)  ;;  %v211_v6 = vld [vmem:[%s1532_s28 + $0x30] sm:$0xf] (%p78_p3) }
  0x19   : > { %v213_v7 = vld [vmem:[%s1532_s28 + $0x38] sm:$0xf]  ;;  %210 = vst [vmem:[%s1536_s29 + $0x14] sm:$0xf] %v209_v5  ;;  %212 = vst [vmem:[%s1536_s29 + $0x18] sm:$0xf] %v211_v6 }
  0x1a   : > { %214 = vst [vmem:[%s1536_s29 + $0x1c] sm:$0xf] %v213_v7  ;;  %v215_v8 = vld [vmem:[%s1532_s28 + $0x40] sm:$0xf]  ;;  %v217_v9 = vld [vmem:[%s1532_s28 + $0x48] sm:$0xf] }
  0x1b   : > { %v219_v10 = vld [vmem:[%s1532_s28 + $0x50] sm:$0xf]  ;;  %216 = vst [vmem:[%s1536_s29 + $0x20] sm:$0xf] %v215_v8  ;;  %218 = vst [vmem:[%s1536_s29 + $0x24] sm:$0xf] %v217_v9 }
  0x1c   : > { %220 = vst [vmem:[%s1536_s29 + $0x28] sm:$0xf] %v219_v10  ;;  %v221_v11 = vld [vmem:[%s1532_s28 + $0x58] sm:$0xf]  ;;  %v223_v12 = vld [vmem:[%s1532_s28 + $0x60] sm:$0xf] }
  0x1d   : > { %v225_v13 = vld [vmem:[%s1532_s28 + $0x68] sm:$0xf]  ;;  %222 = vst [vmem:[%s1536_s29 + $0x2c] sm:$0xf] %v221_v11  ;;  %224 = vst [vmem:[%s1536_s29 + $0x30] sm:$0xf] %v223_v12 }
  0x1e   : > { %226 = vst [vmem:[%s1536_s29 + $0x34] sm:$0xf] %v225_v13  ;;  %v227_v14 = vld [vmem:[%s1532_s28 + $0x70] sm:$0xf]  ;;  %v229_v15 = vld [vmem:[%s1532_s28 + $0x78] sm:$0xf] }
  0x1f   : > { %v231_v16 = vld [vmem:[%s1532_s28 + $0x80] sm:$0xf]  ;;  %228 = vst [vmem:[%s1536_s29 + $0x38] sm:$0xf] %v227_v14  ;;  %230 = vst [vmem:[%s1536_s29 + $0x3c] sm:$0xf] %v229_v15 }
  0x20   : > { %232 = vst [vmem:[%s1536_s29 + $0x40] sm:$0xf] %v231_v16  ;;  %v233_v17 = vld [vmem:[%s1532_s28 + $0x88] sm:$0xf]  ;;  %v235_v18 = vld [vmem:[%s1532_s28 + $0x90] sm:$0xf] }
  0x21   : > { %v237_v19 = vld [vmem:[%s1532_s28 + $0x98] sm:$0xf]  ;;  %234 = vst [vmem:[%s1536_s29 + $0x44] sm:$0xf] %v233_v17  ;;  %236 = vst [vmem:[%s1536_s29 + $0x48] sm:$0xf] %v235_v18 }
  0x22   : > { %238 = vst [vmem:[%s1536_s29 + $0x4c] sm:$0xf] %v237_v19  ;;  %v239_v20 = vld [vmem:[%s1532_s28 + $0xa0] sm:$0xf]  ;;  %v241_v21 = vld [vmem:[%s1532_s28 + $0xa8] sm:$0xf] }
  0x23   : > { %v243_v22 = vld [vmem:[%s1532_s28 + $0xb0] sm:$0xf]  ;;  %240 = vst [vmem:[%s1536_s29 + $0x50] sm:$0xf] %v239_v20  ;;  %242 = vst [vmem:[%s1536_s29 + $0x54] sm:$0xf] %v241_v21 }
  0x24   : > { %244 = vst [vmem:[%s1536_s29 + $0x58] sm:$0xf] %v243_v22  ;;  %v245_v23 = vld [vmem:[%s1532_s28 + $0xb8] sm:$0xf]  ;;  %v247_v24 = vld [vmem:[%s1532_s28 + $0xc0] sm:$0xf] }
  0x25   : > { %v249_v25 = vld [vmem:[%s1532_s28 + $0xc8] sm:$0xf]  ;;  %246 = vst [vmem:[%s1536_s29 + $0x5c] sm:$0xf] %v245_v23  ;;  %248 = vst [vmem:[%s1536_s29 + $0x60] sm:$0xf] %v247_v24 }
  0x26   : > { %250 = vst [vmem:[%s1536_s29 + $0x64] sm:$0xf] %v249_v25  ;;  %v251_v26 = vld [vmem:[%s1532_s28 + $0xd0] sm:$0xf]  ;;  %v253_v27 = vld [vmem:[%s1532_s28 + $0xd8] sm:$0xf] }
  0x27   : > { %v255_v28 = vld [vmem:[%s1532_s28 + $0xe0] sm:$0xf]  ;;  %252 = vst [vmem:[%s1536_s29 + $0x68] sm:$0xf] %v251_v26  ;;  %254 = vst [vmem:[%s1536_s29 + $0x6c] sm:$0xf] %v253_v27 }
  0x28   : > { %256 = vst [vmem:[%s1536_s29 + $0x70] sm:$0xf] %v255_v28  ;;  %v257_v29 = vld [vmem:[%s1532_s28 + $0xe8] sm:$0xf]  ;;  %v259_v30 = vld [vmem:[%s1532_s28 + $0xf0] sm:$0xf] }
  0x29   : > { %v261_v31 = vld [vmem:[%s1532_s28 + $0xf8] sm:$0xf]  ;;  %258 = vst [vmem:[%s1536_s29 + $0x74] sm:$0xf] %v257_v29  ;;  %260 = vst [vmem:[%s1536_s29 + $0x78] sm:$0xf] %v259_v30 }
  0x2a   : > { %262 = vst [vmem:[%s1536_s29 + $0x7c] sm:$0xf] %v261_v31 }
  0x2b PF: > { %p1145_p8 = scmp.ge.s32.totalorder %s1462_s16, 1  ;;  %p354_p9 = scmp.lt.s32.totalorder %s1462_s16, 3 }
  0x2d   : > { %p355_p10 = pnand %p1145_p8, %p354_p9 }
  0x2e   : > { %s361_s30 = sand.u32 (!%p355_p10), 1, %s1446_s12   ;;  %v1402_v32 = vld [vmem:[%s1743_s0 + $0x4] ss:$8 sps:$4 sm:$0xff] (!%p355_p10)   ;;  %v1400_v50 = vld [vmem:[%s1743_s0] ss:$8 sps:$4 sm:$0xff] (!%p355_p10)   ;;  %p409_p11 = scmp.lt.s32.totalorder (!%p355_p10), %s1454_s14, 1 }
  0x2f   : > { %358 = sbr.rel (%p355_p10) target bundleno = 338 (0x152), region = 69  ;;  %s1146_s4 = sshll.u32 (!%p355_p10), %s361_s30, 7  ;;  %v1405_v33 = vld [vmem:[%s1743_s0 + $0x44] ss:$8 sps:$4 sm:$0xff] (!%p355_p10)   ;;  %706 = vmatprep.mubr.bf16.mxu0 (!%p355_p10), %v1402_v32  ;;  %v1403_v51 = vld [vmem:[%s1743_s0 + $0x40] ss:$8 sps:$4 sm:$0xff] (!%p355_p10)  }
  0x30   : > { %s1611_s9 = scalar_lea.vmem (!%p355_p10), [#allocation3], %s1146_s4  ;;  %738 = vmatprep.mubr.bf16.mxu1 (!%p355_p10), %v1405_v33  ;;  %v1406_v52 = vld [vmem:[%s1743_s0 + $0x14] ss:$8 sps:$4 sm:$0xff] (!%p355_p10)   ;;  %v1410_v54 = vld [vmem:[%s1743_s0 + $0x10] ss:$8 sps:$4 sm:$0xff] (!%p355_p10)   ;;  %s1147_s6 = sshll.u32 (!%p355_p10), %s361_s30, 6 }
  0x31   : > { %v1384_v34 = vld [vmem:[%s1611_s9 + $0x40] sm:$0xff] (!%p355_p10)   ;;  %v1386_v36 = vld [vmem:[%s1611_s9 + $0x48] sm:$0xff] (!%p355_p10)   ;;  %v1388_v38 = vld [vmem:[%s1611_s9 + $0x50] sm:$0xff] (!%p355_p10)   ;;  %s1684_s7 = scalar_lea.vmem (!%p355_p10), [#allocation4], %s1147_s6 }
  0x32   : > { %v1385_v35 = vld [vmem:[%s1611_s9] sm:$0xff] (!%p355_p10)   ;;  %1264 = vmatprep.subr.bf16.mxu0 (!%p355_p10), %v1384_v34  ;;  %1328 = vmatprep.subr.bf16.mxu1 (!%p355_p10), %v1384_v34  ;;  %v1387_v37 = vld [vmem:[%s1611_s9 + $0x8] sm:$0xff] (!%p355_p10)   ;;  %v1389_v39 = vld [vmem:[%s1611_s9 + $0x10] sm:$0xff] (!%p355_p10)  }
  0x33   : > { %1265 = vmatpush3.bf16.msra.mxu0 (!%p355_p10), %v1385_v35  ;;  %1336 = vmatpush3.bf16.msra.mxu1 (!%p355_p10), %v1385_v35  ;;  %v1390_v40 = vld [vmem:[%s1611_s9 + $0x58] sm:$0xff] (!%p355_p10)   ;;  %v1392_v42 = vld [vmem:[%s1611_s9 + $0x60] sm:$0xff] (!%p355_p10)   ;;  %v1394_v44 = vld [vmem:[%s1611_s9 + $0x68] sm:$0xff] (!%p355_p10)  }
  0x34   : > { %1266 = vmatprep.subr.bf16.mxu0 (!%p355_p10), %v1386_v36  ;;  %1329 = vmatprep.subr.bf16.mxu1 (!%p355_p10), %v1386_v36  ;;  %v1391_v41 = vld [vmem:[%s1611_s9 + $0x18] sm:$0xff] (!%p355_p10)   ;;  %v1393_v43 = vld [vmem:[%s1611_s9 + $0x20] sm:$0xff] (!%p355_p10)   ;;  %v1395_v45 = vld [vmem:[%s1611_s9 + $0x28] sm:$0xff] (!%p355_p10)  }
  0x35   : > { %v1396_v46 = vld [vmem:[%s1611_s9 + $0x70] sm:$0xff] (!%p355_p10)   ;;  %v1398_v48 = vld [vmem:[%s1611_s9 + $0x78] sm:$0xff] (!%p355_p10)   ;;  %v1412_v56 = vld [vmem:[%s1743_s0 + $0x24] ss:$8 sps:$4 sm:$0xff] (!%p355_p10)  }
  0x36   : > { %v1397_v47 = vld [vmem:[%s1611_s9 + $0x30] sm:$0xff]   ;;  %v1399_v49 = vld [vmem:[%s1611_s9 + $0x38] sm:$0xff]   ;;  %v1414_v57 = vld [vmem:[%s1743_s0 + $0x64] ss:$8 sps:$4 sm:$0xff]   ;;  %s410_s28 = scalar_select %p409_p11, %s1454_s14, 1 }
  0x37   : > { %1267 = vmatpush3.bf16.msra.mxu0 %v1387_v37  ;;  %1337 = vmatpush3.bf16.msra.mxu1 %v1387_v37  ;;  %v1408_v53 = vld [vmem:[%s1743_s0 + $0x54] ss:$8 sps:$4 sm:$0xff]   ;;  %v1411_v55 = vld [vmem:[%s1743_s0 + $0x50] ss:$8 sps:$4 sm:$0xff]   ;;  %v1416_v58 = vld [vmem:[%s1743_s0 + $0x20] ss:$8 sps:$4 sm:$0xff]  }
  0x38   : > { %1268 = vmatprep.subr.bf16.mxu0 %v1388_v38  ;;  %1330 = vmatprep.subr.bf16.mxu1 %v1388_v38  ;;  %v1417_v59 = vld [vmem:[%s1743_s0 + $0x60] ss:$8 sps:$4 sm:$0xff]   ;;  %v1418_v60 = vld [vmem:[%s1743_s0 + $0x34] ss:$8 sps:$4 sm:$0xff]   ;;  %v1422_v62 = vld [vmem:[%s1743_s0 + $0x30] ss:$8 sps:$4 sm:$0xff]   ;;  %s411_s5 = scalar_lea.vmem %s1745_s2, %s410_s28 }
  0x39   : > { %v1420_v61 = vld [vmem:[%s1743_s0 + $0x74] ss:$8 sps:$4 sm:$0xff]   ;;  %v1423_v63 = vld [vmem:[%s1743_s0 + $0x70] ss:$8 sps:$4 sm:$0xff]   ;;  %v1676_v8 = vld [vmem:[%s411_s5] ss:$0 sm:$0xff] }
  0x3a   : > { %s1198_s12 = sshll.u32 (%p1519_p6), %s1454_s14, 2 }
  0x3b   : > { %1269 = vmatpush3.bf16.msra.mxu0 %v1389_v39  ;;  %1338 = vmatpush3.bf16.msra.mxu1 %v1389_v39  ;;  %s936_s9 = scalar_lea.vmem (%p1519_p6), %s1746_s3, %s1198_s12 }
  0x3c   : > { %1270 = vmatprep.subr.bf16.mxu0 %v1390_v40  ;;  %1331 = vmatprep.subr.bf16.mxu1 %v1390_v40 }
  0x3f   : > { %1271 = vmatpush3.bf16.msra.mxu0 %v1391_v41  ;;  %1339 = vmatpush3.bf16.msra.mxu1 %v1391_v41 }
  0x40   : > { %1272 = vmatprep.subr.bf16.mxu0 %v1392_v42  ;;  %1332 = vmatprep.subr.bf16.mxu1 %v1392_v42 }
  0x43   : > { %1273 = vmatpush3.bf16.msra.mxu0 %v1393_v43  ;;  %1340 = vmatpush3.bf16.msra.mxu1 %v1393_v43 }
  0x44   : > { %1274 = vmatprep.subr.bf16.mxu0 %v1394_v44  ;;  %1333 = vmatprep.subr.bf16.mxu1 %v1394_v44 }
  0x47   : > { %1275 = vmatpush3.bf16.msra.mxu0 %v1395_v45  ;;  %1341 = vmatpush3.bf16.msra.mxu1 %v1395_v45 }
  0x48   : > { %1276 = vmatprep.subr.bf16.mxu0 %v1396_v46  ;;  %1334 = vmatprep.subr.bf16.mxu1 %v1396_v46 }
  0x4b   : > { %1277 = vmatpush3.bf16.msra.mxu0 %v1397_v47  ;;  %1342 = vmatpush3.bf16.msra.mxu1 %v1397_v47 }
  0x4c   : > { %1278 = vmatprep.subr.bf16.mxu0 %v1398_v48  ;;  %1335 = vmatprep.subr.bf16.mxu1 %v1398_v48 }
  0x4f   : > { %1279 = vmatpush3.bf16.msra.mxu0 %v1399_v49  ;;  %1343 = vmatpush3.bf16.msra.mxu1 %v1399_v49 }
  0x52   : > { %707 = vmatmul.mubr.bf16.vlgmr.msra.gmra.mrb[0].mxu0 %v1400_v50  ;;  %739 = vmatmul.mubr.bf16.vlgmr.msra.gmra.mrb[0].mxu1 %v1403_v51 }
  0x53   : > { %714 = vmatprep.mubr.bf16.mxu0 %v1406_v52  ;;  %746 = vmatprep.mubr.bf16.mxu1 %v1408_v53 }
  0x5a   : > { %715 = vmatmul.mubr.bf16.gmra.mrb[4].mxu0 %v1410_v54  ;;  %747 = vmatmul.mubr.bf16.gmra.mrb[4].mxu1 %v1411_v55 }
  0x5b   : > { %722 = vmatprep.mubr.bf16.mxu0 %v1412_v56  ;;  %754 = vmatprep.mubr.bf16.mxu1 %v1414_v57 }
  0x62   : > { %723 = vmatmul.mubr.bf16.gmra.mrb[8].mxu0 %v1416_v58  ;;  %755 = vmatmul.mubr.bf16.gmra.mrb[8].mxu1 %v1417_v59 }
  0x63   : > { %730 = vmatprep.mubr.bf16.mxu0 %v1418_v60  ;;  %762 = vmatprep.mubr.bf16.mxu1 %v1420_v61 }
  0x6a   : > { %731 = vmatmul.mubr.bf16.gmra.mrb[12].mxu0 %v1422_v62  ;;  %763 = vmatmul.mubr.bf16.gmra.mrb[12].mxu1 %v1423_v63 }
 0x125   : > { %v1280_v0 = vpop.f32.mrb[0].mxu0  ;;  %v1304_v1 = vpop.f32.mrb[0].mxu1 }
 0x126   : > { %v1281_v2 = vpop.f32.mrb[1].mxu0  ;;  %v1305_v3 = vpop.f32.mrb[1].mxu1 }
 0x127   : > { %v1282_v4 = vadd.f32 %v1281_v2, %v1280_v0  ;;  %v1306_v5 = vadd.f32 %v1305_v3, %v1304_v1  ;;  %v1283_v6 = vpop.f32.mrb[2].mxu0  ;;  %v1307_v7 = vpop.f32.mrb[2].mxu1 }
 0x128   : > { %v1284_v9 = vpop.f32.mrb[3].mxu0  ;;  %v1308_v10 = vpop.f32.mrb[3].mxu1 }
 0x129   : > { %v1285_v11 = vadd.f32 %v1284_v9, %v1283_v6  ;;  %v1309_v12 = vadd.f32 %v1308_v10, %v1307_v7  ;;  %v829_v13 = vadd.f32 %v1282_v4, %v1676_v8  ;;  %v837_v14 = vadd.f32 %v1306_v5, %v1676_v8 }
 0x12b   : > { %v830_v15 = vadd.f32 %v1285_v11, %v1676_v8  ;;  %v838_v16 = vadd.f32 %v1309_v12, %v1676_v8 }
 0x12d   : > { %v1220_v17 = vpack.c.bf16 %v830_v15, %v829_v13  ;;  %v1240_v18 = vpack.c.bf16 %v838_v16, %v837_v14  ;;  %v1286_v19 = vpop.f32.mrb[4].mxu0  ;;  %v1310_v20 = vpop.f32.mrb[4].mxu1 }
 0x12e   : > { %v1287_v21 = vpop.f32.mrb[5].mxu0  ;;  %v1311_v22 = vpop.f32.mrb[5].mxu1 }
 0x12f   : > { %1221 = vst [vmem:[%s1684_s7] sm:$0xff] %v1220_v17   ;;  %1260 = vst [vmem:[%s1684_s7 + $0x20] sm:$0xff] %v1240_v18   ;;  %v1288_v23 = vadd.f32 %v1287_v21, %v1286_v19  ;;  %v1312_v24 = vadd.f32 %v1311_v22, %v1310_v20  ;;  %v1289_v25 = vpop.f32.mrb[6].mxu0  ;;  %v1313_v26 = vpop.f32.mrb[6].mxu1 }
 0x130   : > { %v1290_v27 = vpop.f32.mrb[7].mxu0  ;;  %v1314_v28 = vpop.f32.mrb[7].mxu1 }
 0x131   : > { %v1291_v29 = vadd.f32 %v1290_v27, %v1289_v25  ;;  %v1315_v30 = vadd.f32 %v1314_v28, %v1313_v26  ;;  %v831_v31 = vadd.f32 %v1288_v23, %v1676_v8  ;;  %v839_v32 = vadd.f32 %v1312_v24, %v1676_v8 }
 0x133   : > { %v832_v33 = vadd.f32 %v1291_v29, %v1676_v8  ;;  %v840_v34 = vadd.f32 %v1315_v30, %v1676_v8 }
 0x135   : > { %v1225_v35 = vpack.c.bf16 %v832_v33, %v831_v31  ;;  %v1245_v36 = vpack.c.bf16 %v840_v34, %v839_v32  ;;  %v1292_v37 = vpop.f32.mrb[8].mxu0  ;;  %v1316_v38 = vpop.f32.mrb[8].mxu1 }
 0x136   : > { %v1293_v39 = vpop.f32.mrb[9].mxu0  ;;  %v1317_v40 = vpop.f32.mrb[9].mxu1  ;;  %v952_v10 = vld [vmem:[%s1684_s7] sm:$0xf] (%p1519_p6)  ;;  %v954_v11 = vld [vmem:[%s1684_s7 + $0x4] sm:$0xf] (%p1519_p6) }
 0x137   : > { %1257 = vst [vmem:[%s1684_s7 + $0x8] sm:$0xff] %v1225_v35   ;;  %1261 = vst [vmem:[%s1684_s7 + $0x28] sm:$0xff] %v1245_v36   ;;  %v1294_v41 = vadd.f32 %v1293_v39, %v1292_v37  ;;  %v1318_v42 = vadd.f32 %v1317_v40, %v1316_v38  ;;  %v1295_v43 = vpop.f32.mrb[10].mxu0  ;;  %v1319_v44 = vpop.f32.mrb[10].mxu1  ;;  %v968_v17 = vld [vmem:[%s1684_s7 + $0x20] sm:$0xf] (%p1519_p6) }
 0x138   : > { %v1296_v45 = vpop.f32.mrb[11].mxu0  ;;  %v1320_v46 = vpop.f32.mrb[11].mxu1  ;;  %953 = vst [vmem:[%s936_s9] sm:$0xf] (%p1519_p6), %v952_v10  ;;  %955 = vst [vmem:[%s936_s9 + $0x8] sm:$0xf] (%p1519_p6), %v954_v11 }
 0x139   : > { %v1297_v47 = vadd.f32 %v1296_v45, %v1295_v43  ;;  %v1321_v48 = vadd.f32 %v1320_v46, %v1319_v44  ;;  %v833_v49 = vadd.f32 %v1294_v41, %v1676_v8  ;;  %v841_v50 = vadd.f32 %v1318_v42, %v1676_v8  ;;  %v970_v18 = vld [vmem:[%s1684_s7 + $0x24] sm:$0xf] (%p1519_p6)  ;;  %969 = vst [vmem:[%s936_s9 + $0x40] sm:$0xf] (%p1519_p6), %v968_v17 }
 0x13a   : > { %971 = vst [vmem:[%s936_s9 + $0x48] sm:$0xf] (%p1519_p6), %v970_v18 }
 0x13b   : > { %v834_v51 = vadd.f32 %v1297_v47, %v1676_v8  ;;  %v842_v52 = vadd.f32 %v1321_v48, %v1676_v8 }
 0x13d   : > { %v1230_v53 = vpack.c.bf16 %v834_v51, %v833_v49  ;;  %v1250_v54 = vpack.c.bf16 %v842_v52, %v841_v50  ;;  %v1298_v55 = vpop.f32.mrb[12].mxu0  ;;  %v1322_v56 = vpop.f32.mrb[12].mxu1 }
 0x13e   : > { %v1299_v57 = vpop.f32.mrb[13].mxu0  ;;  %v1323_v58 = vpop.f32.mrb[13].mxu1  ;;  %v958_v12 = vld [vmem:[%s1684_s7 + $0xc] sm:$0xf] (%p1519_p6)  ;;  %v972_v19 = vld [vmem:[%s1684_s7 + $0x28] sm:$0xf] (%p1519_p6) }
 0x13f   : > { %1258 = vst [vmem:[%s1684_s7 + $0x10] sm:$0xff] %v1230_v53   ;;  %1262 = vst [vmem:[%s1684_s7 + $0x30] sm:$0xff] %v1250_v54   ;;  %v1300_v59 = vadd.f32 %v1299_v57, %v1298_v55  ;;  %v1324_v60 = vadd.f32 %v1323_v58, %v1322_v56  ;;  %v1301_v61 = vpop.f32.mrb[14].mxu0  ;;  %v1325_v62 = vpop.f32.mrb[14].mxu1  ;;  %v974_v20 = vld [vmem:[%s1684_s7 + $0x2c] sm:$0xf] (%p1519_p6) }
 0x140   : > { %v1302_v63 = vpop.f32.mrb[15].mxu0  ;;  %v1326_v0 = vpop.f32.mrb[15].mxu1  ;;  %959 = vst [vmem:[%s936_s9 + $0x18] sm:$0xf] (%p1519_p6), %v958_v12  ;;  %973 = vst [vmem:[%s936_s9 + $0x50] sm:$0xf] (%p1519_p6), %v972_v19 }
 0x141   : > { %v1303_v1 = vadd.f32 %v1302_v63, %v1301_v61  ;;  %v1327_v2 = vadd.f32 %v1326_v0, %v1325_v62  ;;  %v835_v3 = vadd.f32 %v1300_v59, %v1676_v8  ;;  %v843_v4 = vadd.f32 %v1324_v60, %v1676_v8  ;;  %931 = sbr.rel (!%p1519_p6) target bundleno = 338 (0x152), region = 85  ;;  %975 = vst [vmem:[%s936_s9 + $0x58] sm:$0xf] (%p1519_p6), %v974_v20 }
 0x143   : > { %v836_v5 = vadd.f32 %v1303_v1, %v1676_v8  ;;  %v844_v6 = vadd.f32 %v1327_v2, %v1676_v8  ;;  %v956_v8 = vld [vmem:[%s1684_s7 + $0x8] sm:$0xf] (%p1519_p6) }
 0x144   : > { %957 = vst [vmem:[%s936_s9 + $0x10] sm:$0xf] (%p1519_p6), %v956_v8 }
 0x145   : > { %v1235_v7 = vpack.c.bf16 %v836_v5, %v835_v3  ;;  %v1255_v9 = vpack.c.bf16 %v844_v6, %v843_v4 }
 0x146   : > { %v960_v13 = vld [vmem:[%s1684_s7 + $0x10] sm:$0xf] (%p1519_p6)  ;;  %v962_v14 = vld [vmem:[%s1684_s7 + $0x14] sm:$0xf] (%p1519_p6) }
 0x147   : > { %1259 = vst [vmem:[%s1684_s7 + $0x18] sm:$0xff] %v1235_v7   ;;  %1263 = vst [vmem:[%s1684_s7 + $0x38] sm:$0xff] %v1255_v9   ;;  %v976_v21 = vld [vmem:[%s1684_s7 + $0x30] sm:$0xf] (%p1519_p6)  ;;  %v978_v22 = vld [vmem:[%s1684_s7 + $0x34] sm:$0xf] (%p1519_p6) }
 0x148   : > { %961 = vst [vmem:[%s936_s9 + $0x20] sm:$0xf] %v960_v13  ;;  %963 = vst [vmem:[%s936_s9 + $0x28] sm:$0xf] %v962_v14 }
 0x149   : > { %977 = vst [vmem:[%s936_s9 + $0x60] sm:$0xf] %v976_v21  ;;  %979 = vst [vmem:[%s936_s9 + $0x68] sm:$0xf] %v978_v22 }
 0x14e   : > { %v964_v15 = vld [vmem:[%s1684_s7 + $0x18] sm:$0xf]  ;;  %v966_v16 = vld [vmem:[%s1684_s7 + $0x1c] sm:$0xf] }
 0x14f   : > { %965 = vst [vmem:[%s936_s9 + $0x30] sm:$0xf] %v964_v15  ;;  %967 = vst [vmem:[%s936_s9 + $0x38] sm:$0xf] %v966_v16  ;;  %v980_v23 = vld [vmem:[%s1684_s7 + $0x38] sm:$0xf] }
 0x150   : > { %v982_v24 = vld [vmem:[%s1684_s7 + $0x3c] sm:$0xf]  ;;  %981 = vst [vmem:[%s936_s9 + $0x70] sm:$0xf] %v980_v23 }
 0x151   : > { %983 = vst [vmem:[%s936_s9 + $0x78] sm:$0xf] %v982_v24 }
 0x152 PF: > { %s13_s16 = sadd.s32 1, %s1462_s16   ;;  %s1748_s12 = smov %s1450_s13 }
 0x153   : > { %p10_p12 = scmp.ge.s32.totalorder %s13_s16, 4   ;;  %s1749_s13 = smov %s1524_s22 }
 0x154   : > { %s1750_s14 = smov %s1458_s15  ;;  %s1751_s15 = smov %s1753_s17 }
 0x155   :  { %12 = sbr.rel (!%p10_p12) target bundleno = 3 (0x3), region = 163 }

// kernel: _lambda_.43
= control target key start
LH: loop header
LB: loop body
LE: loop exit
PB: predicated region body
PF: predicated region fallthrough
CT: control target
= control target key end

     0   :  { %s1650_s12 = smov 0   ;;  %s1652_s13 = smov 0   ;;  %s1950_s0 = inlined_call_operand.vmem [shape: bf16[128,256], index: 0, kind: input, shape index: {}]   ;;  %s1951_s1 = inlined_call_operand.vmem [shape: bf16[256,512], index: 1, kind: input, shape index: {}]   ;;  %s1952_s2 = inlined_call_operand.vmem [shape: f32[1,512], index: 2, kind: input, shape index: {}]   ;;  %s1953_s3 = inlined_call_operand.vmem [shape: bf16[128,512], index: 3, kind: output, shape index: {}]  }
   0x1   :  { %s1654_s14 = smov 0   ;;  %s1656_s15 = smov 0  }
   0x2   :  { %s1658_s16 = smov 0  }
   0x3 LB: > { %s28_s17 = sadd.s32 1, %s1624_s15  ;;  %s1347_s18 = sadd.s32 4294967295, %s1628_s16   ;;  %s1628_s16 = sphi %s1658_s16, %s13_s16   ;;  %s1624_s15 = sphi %s1656_s15, %s1958_s15   ;;  %s1620_s14 = sphi %s1654_s14, %s1957_s14   ;;  %s1616_s13 = sphi %s1652_s13, %s1956_s13   ;;  %s1612_s12 = sphi %s1650_s12, %s1955_s12  }
   0x4   : > { %p30_p0 = scmp.ge.s32.totalorder %s28_s17, 2  ;;  %p76_p1 = scmp.ne.s32.totalorder %s1616_s13, %s1612_s12 }
   0x5   : > { %p77_p2 = scmp.eq.s32.totalorder %s1628_s16, 0  ;;  %p134_p4 = scmp.eq.s32.totalorder %s1347_s18, 1 }
   0x6   : > { %s1960_s17 = smov (%p30_p0, %s28_s17), 0  ;;  %s69_s20 = sadd.s32 1, %s1616_s13 }
   0x7   : > { %p78_p3 = por %p77_p2, %p76_p1  ;;  %s65_s19 = ssub.s32 %s1624_s15, %s1960_s17 }
   0x8   : > { %p67_p5 = scmp.eq.s32.totalorder %s65_s19, 0  ;;  %p1685_p6 = por %p134_p4, %p76_p1 }
   0x9   : > { %p1351_p7 = scmp.ge.s32.totalorder %s1628_s16, 2 }
   0xa   : > { %s1690_s22 = scalar_select %p67_p5, %s1616_s13, %s69_s20  }
   0xb   : > { %171 = sbr.rel (%p1351_p7) target bundleno = 38 (0x26), region = 20 }
  0x12   : > { %174 = sbr.rel (!%p78_p3) target bundleno = 38 (0x26), region = 24  ;;  %s176_s23 = sand.u32 (%p78_p3), 1, %s1616_s13  }
  0x13   : > { %s1428_s24 = sshll.u32 (%p78_p3), %s1624_s15, 3  ;;  %s1352_s25 = sshll.u32 (%p78_p3), %s176_s23, 8 }
  0x14   : > { %s1698_s28 = scalar_lea.vmem (%p78_p3), %s1951_s1, %s1428_s24  ;;  %s1703_s29 = scalar_lea.vmem (%p78_p3), [#allocation3], %s1352_s25 }
  0x15   : > { %v274_v0 = vld [vmem:[%s1698_s28] sm:$0xff] (%p78_p3)  ;;  %v276_v1 = vld [vmem:[%s1698_s28 + $0x10] sm:$0xff] (%p78_p3) }
  0x16   : > { %v278_v2 = vld [vmem:[%s1698_s28 + $0x20] sm:$0xff] (%p78_p3)  ;;  %275 = vst [vmem:[%s1703_s29] sm:$0xff] (%p78_p3), %v274_v0  ;;  %277 = vst [vmem:[%s1703_s29 + $0x8] sm:$0xff] (%p78_p3), %v276_v1  ;;  %v280_v3 = vld [vmem:[%s1698_s28 + $0x30] sm:$0xff] (%p78_p3) }
  0x17   : > { %279 = vst [vmem:[%s1703_s29 + $0x10] sm:$0xff] (%p78_p3), %v278_v2  ;;  %v282_v4 = vld [vmem:[%s1698_s28 + $0x40] sm:$0xff] (%p78_p3)  ;;  %v284_v5 = vld [vmem:[%s1698_s28 + $0x50] sm:$0xff] (%p78_p3)  ;;  %281 = vst [vmem:[%s1703_s29 + $0x18] sm:$0xff] (%p78_p3), %v280_v3 }
  0x18   : > { %283 = vst [vmem:[%s1703_s29 + $0x20] sm:$0xff] (%p78_p3), %v282_v4  ;;  %285 = vst [vmem:[%s1703_s29 + $0x28] sm:$0xff] (%p78_p3), %v284_v5  ;;  %v286_v6 = vld [vmem:[%s1698_s28 + $0x60] sm:$0xff] (%p78_p3)  ;;  %v288_v7 = vld [vmem:[%s1698_s28 + $0x70] sm:$0xff] (%p78_p3) }
  0x19   : > { %v290_v8 = vld [vmem:[%s1698_s28 + $0x80] sm:$0xff]  ;;  %287 = vst [vmem:[%s1703_s29 + $0x30] sm:$0xff] %v286_v6  ;;  %289 = vst [vmem:[%s1703_s29 + $0x38] sm:$0xff] %v288_v7  ;;  %v292_v9 = vld [vmem:[%s1698_s28 + $0x90] sm:$0xff] }
  0x1a   : > { %291 = vst [vmem:[%s1703_s29 + $0x40] sm:$0xff] %v290_v8  ;;  %v294_v10 = vld [vmem:[%s1698_s28 + $0xa0] sm:$0xff]  ;;  %v296_v11 = vld [vmem:[%s1698_s28 + $0xb0] sm:$0xff]  ;;  %293 = vst [vmem:[%s1703_s29 + $0x48] sm:$0xff] %v292_v9 }
  0x1b   : > { %295 = vst [vmem:[%s1703_s29 + $0x50] sm:$0xff] %v294_v10  ;;  %297 = vst [vmem:[%s1703_s29 + $0x58] sm:$0xff] %v296_v11  ;;  %v298_v12 = vld [vmem:[%s1698_s28 + $0xc0] sm:$0xff]  ;;  %v300_v13 = vld [vmem:[%s1698_s28 + $0xd0] sm:$0xff] }
  0x1c   : > { %v302_v14 = vld [vmem:[%s1698_s28 + $0xe0] sm:$0xff]  ;;  %299 = vst [vmem:[%s1703_s29 + $0x60] sm:$0xff] %v298_v12  ;;  %301 = vst [vmem:[%s1703_s29 + $0x68] sm:$0xff] %v300_v13  ;;  %v304_v15 = vld [vmem:[%s1698_s28 + $0xf0] sm:$0xff] }
  0x1d   : > { %303 = vst [vmem:[%s1703_s29 + $0x70] sm:$0xff] %v302_v14  ;;  %v306_v16 = vld [vmem:[%s1698_s28 + $0x100] sm:$0xff]  ;;  %v308_v17 = vld [vmem:[%s1698_s28 + $0x110] sm:$0xff]  ;;  %305 = vst [vmem:[%s1703_s29 + $0x78] sm:$0xff] %v304_v15 }
  0x1e   : > { %307 = vst [vmem:[%s1703_s29 + $0x80] sm:$0xff] %v306_v16  ;;  %309 = vst [vmem:[%s1703_s29 + $0x88] sm:$0xff] %v308_v17  ;;  %v310_v18 = vld [vmem:[%s1698_s28 + $0x120] sm:$0xff]  ;;  %v312_v19 = vld [vmem:[%s1698_s28 + $0x130] sm:$0xff] }
  0x1f   : > { %v314_v20 = vld [vmem:[%s1698_s28 + $0x140] sm:$0xff]  ;;  %311 = vst [vmem:[%s1703_s29 + $0x90] sm:$0xff] %v310_v18  ;;  %313 = vst [vmem:[%s1703_s29 + $0x98] sm:$0xff] %v312_v19  ;;  %v316_v21 = vld [vmem:[%s1698_s28 + $0x150] sm:$0xff] }
  0x20   : > { %315 = vst [vmem:[%s1703_s29 + $0xa0] sm:$0xff] %v314_v20  ;;  %v318_v22 = vld [vmem:[%s1698_s28 + $0x160] sm:$0xff]  ;;  %v320_v23 = vld [vmem:[%s1698_s28 + $0x170] sm:$0xff]  ;;  %317 = vst [vmem:[%s1703_s29 + $0xa8] sm:$0xff] %v316_v21 }
  0x21   : > { %319 = vst [vmem:[%s1703_s29 + $0xb0] sm:$0xff] %v318_v22  ;;  %321 = vst [vmem:[%s1703_s29 + $0xb8] sm:$0xff] %v320_v23  ;;  %v322_v24 = vld [vmem:[%s1698_s28 + $0x180] sm:$0xff]  ;;  %v324_v25 = vld [vmem:[%s1698_s28 + $0x190] sm:$0xff] }
  0x22   : > { %v326_v26 = vld [vmem:[%s1698_s28 + $0x1a0] sm:$0xff]  ;;  %323 = vst [vmem:[%s1703_s29 + $0xc0] sm:$0xff] %v322_v24  ;;  %325 = vst [vmem:[%s1703_s29 + $0xc8] sm:$0xff] %v324_v25  ;;  %v328_v27 = vld [vmem:[%s1698_s28 + $0x1b0] sm:$0xff] }
  0x23   : > { %327 = vst [vmem:[%s1703_s29 + $0xd0] sm:$0xff] %v326_v26  ;;  %v330_v28 = vld [vmem:[%s1698_s28 + $0x1c0] sm:$0xff]  ;;  %v332_v29 = vld [vmem:[%s1698_s28 + $0x1d0] sm:$0xff]  ;;  %329 = vst [vmem:[%s1703_s29 + $0xd8] sm:$0xff] %v328_v27 }
  0x24   : > { %331 = vst [vmem:[%s1703_s29 + $0xe0] sm:$0xff] %v330_v28  ;;  %333 = vst [vmem:[%s1703_s29 + $0xe8] sm:$0xff] %v332_v29  ;;  %v334_v30 = vld [vmem:[%s1698_s28 + $0x1e0] sm:$0xff]  ;;  %v336_v31 = vld [vmem:[%s1698_s28 + $0x1f0] sm:$0xff] }
  0x25   : > { %335 = vst [vmem:[%s1703_s29 + $0xf0] sm:$0xff] %v334_v30  ;;  %337 = vst [vmem:[%s1703_s29 + $0xf8] sm:$0xff] %v336_v31 }
  0x26 PF: > { %p1355_p8 = scmp.ge.s32.totalorder %s1628_s16, 1  ;;  %p350_p9 = scmp.lt.s32.totalorder %s1628_s16, 3 }
  0x28   : > { %p351_p10 = pnand %p1355_p8, %p350_p9 }
  0x29   : > { %s357_s30 = sand.u32 (!%p351_p10), 1, %s1612_s12   ;;  %v1568_v32 = vld [vmem:[%s1950_s0 + $0x4] ss:$8 sps:$4 sm:$0xff] (!%p351_p10)   ;;  %v1566_v2 = vld [vmem:[%s1950_s0] ss:$8 sps:$4 sm:$0xff] (!%p351_p10)   ;;  %s1358_s28 = sshll.u32 (!%p351_p10), %s1620_s14, 1  ;;  %v984_v16 = vlaneseq (!%p351_p10) }
  0x2a   : > { %354 = sbr.rel (%p351_p10) target bundleno = 362 (0x16a), region = 66  ;;  %s1356_s4 = sshll.u32 (!%p351_p10), %s357_s30, 8  ;;  %v1571_v33 = vld [vmem:[%s1950_s0 + $0x44] ss:$8 sps:$4 sm:$0xff] (!%p351_p10)   ;;  %802 = vmatprep.mubr.bf16.mxu0 (!%p351_p10), %v1568_v32  ;;  %v1569_v3 = vld [vmem:[%s1950_s0 + $0x40] ss:$8 sps:$4 sm:$0xff] (!%p351_p10)  }
  0x2b   : > { %s1777_s9 = scalar_lea.vmem (!%p351_p10), [#allocation3], %s1356_s4  ;;  %842 = vmatprep.mubr.bf16.mxu1 (!%p351_p10), %v1571_v33  ;;  %v1572_v4 = vld [vmem:[%s1950_s0 + $0x14] ss:$8 sps:$4 sm:$0xff] (!%p351_p10)   ;;  %v1576_v6 = vld [vmem:[%s1950_s0 + $0x10] ss:$8 sps:$4 sm:$0xff] (!%p351_p10)   ;;  %p408_p11 = scmp.lt.s32.totalorder (!%p351_p10), %s1358_s28, 3 }
  0x2c   : > { %v1518_v34 = vld [vmem:[%s1777_s9 + $0x4] ss:$8 sps:$4 sm:$0xff] (!%p351_p10)   ;;  %v1520_v35 = vld [vmem:[%s1777_s9] ss:$8 sps:$4 sm:$0xff] (!%p351_p10)   ;;  %v1521_v36 = vld [vmem:[%s1777_s9 + $0x14] ss:$8 sps:$4 sm:$0xff] (!%p351_p10)  }
  0x2d   : > { %770 = vmatprep.subr.bf16.mxu0 (!%p351_p10), %v1518_v34  ;;  %1446 = vmatprep.subr.bf16.mxu1 (!%p351_p10), %v1518_v34  ;;  %v1523_v37 = vld [vmem:[%s1777_s9 + $0x10] ss:$8 sps:$4 sm:$0xff] (!%p351_p10)   ;;  %v1524_v38 = vld [vmem:[%s1777_s9 + $0x24] ss:$8 sps:$4 sm:$0xff] (!%p351_p10)   ;;  %v1526_v39 = vld [vmem:[%s1777_s9 + $0x20] ss:$8 sps:$4 sm:$0xff] (!%p351_p10)  }
  0x2e   : > { %771 = vmatpush1.bf16.msra.mxu0 (!%p351_p10), %v1520_v35  ;;  %1462 = vmatpush1.bf16.msra.mxu1 (!%p351_p10), %v1520_v35  ;;  %v1527_v40 = vld [vmem:[%s1777_s9 + $0x34] ss:$8 sps:$4 sm:$0xff] (!%p351_p10)   ;;  %v1529_v41 = vld [vmem:[%s1777_s9 + $0x30] ss:$8 sps:$4 sm:$0xff] (!%p351_p10)   ;;  %v1530_v42 = vld [vmem:[%s1777_s9 + $0x44] ss:$8 sps:$4 sm:$0xff] (!%p351_p10)  }
  0x2f   : > { %772 = vmatprep.subr.bf16.mxu0 (!%p351_p10), %v1521_v36  ;;  %1447 = vmatprep.subr.bf16.mxu1 (!%p351_p10), %v1521_v36  ;;  %v1532_v43 = vld [vmem:[%s1777_s9 + $0x40] ss:$8 sps:$4 sm:$0xff] (!%p351_p10)   ;;  %v1533_v44 = vld [vmem:[%s1777_s9 + $0x54] ss:$8 sps:$4 sm:$0xff] (!%p351_p10)   ;;  %v1535_v45 = vld [vmem:[%s1777_s9 + $0x50] ss:$8 sps:$4 sm:$0xff] (!%p351_p10)  }
  0x30   : > { %v1536_v46 = vld [vmem:[%s1777_s9 + $0x64] ss:$8 sps:$4 sm:$0xff] (!%p351_p10)   ;;  %v1538_v47 = vld [vmem:[%s1777_s9 + $0x60] ss:$8 sps:$4 sm:$0xff] (!%p351_p10)   ;;  %v1539_v48 = vld [vmem:[%s1777_s9 + $0x74] ss:$8 sps:$4 sm:$0xff] (!%p351_p10)  }
  0x31   : > { %v1541_v49 = vld [vmem:[%s1777_s9 + $0x70] ss:$8 sps:$4 sm:$0xff]   ;;  %v1542_v50 = vld [vmem:[%s1777_s9 + $0x84] ss:$8 sps:$4 sm:$0xff]   ;;  %v1544_v51 = vld [vmem:[%s1777_s9 + $0x80] ss:$8 sps:$4 sm:$0xff]  }
  0x32   : > { %773 = vmatpush1.bf16.msra.mxu0 %v1523_v37  ;;  %1463 = vmatpush1.bf16.msra.mxu1 %v1523_v37  ;;  %v1545_v52 = vld [vmem:[%s1777_s9 + $0x94] ss:$8 sps:$4 sm:$0xff]   ;;  %v1547_v53 = vld [vmem:[%s1777_s9 + $0x90] ss:$8 sps:$4 sm:$0xff]   ;;  %v1548_v54 = vld [vmem:[%s1777_s9 + $0xa4] ss:$8 sps:$4 sm:$0xff]  }
  0x33   : > { %774 = vmatprep.subr.bf16.mxu0 %v1524_v38  ;;  %1448 = vmatprep.subr.bf16.mxu1 %v1524_v38  ;;  %v1550_v55 = vld [vmem:[%s1777_s9 + $0xa0] ss:$8 sps:$4 sm:$0xff]   ;;  %v1551_v56 = vld [vmem:[%s1777_s9 + $0xb4] ss:$8 sps:$4 sm:$0xff]   ;;  %v1553_v57 = vld [vmem:[%s1777_s9 + $0xb0] ss:$8 sps:$4 sm:$0xff]  }
  0x34   : > { %v1554_v58 = vld [vmem:[%s1777_s9 + $0xc4] ss:$8 sps:$4 sm:$0xff]   ;;  %v1556_v59 = vld [vmem:[%s1777_s9 + $0xc0] ss:$8 sps:$4 sm:$0xff]   ;;  %v1557_v60 = vld [vmem:[%s1777_s9 + $0xd4] ss:$8 sps:$4 sm:$0xff]  }
  0x35   : > { %v1559_v61 = vld [vmem:[%s1777_s9 + $0xd0] ss:$8 sps:$4 sm:$0xff]   ;;  %v1560_v62 = vld [vmem:[%s1777_s9 + $0xe4] ss:$8 sps:$4 sm:$0xff]   ;;  %v1562_v63 = vld [vmem:[%s1777_s9 + $0xe0] ss:$8 sps:$4 sm:$0xff]  }
  0x36   : > { %775 = vmatpush1.bf16.msra.mxu0 %v1526_v39  ;;  %1464 = vmatpush1.bf16.msra.mxu1 %v1526_v39  ;;  %v1563_v0 = vld [vmem:[%s1777_s9 + $0xf4] ss:$8 sps:$4 sm:$0xff]   ;;  %v1565_v1 = vld [vmem:[%s1777_s9 + $0xf0] ss:$8 sps:$4 sm:$0xff]   ;;  %v1578_v8 = vld [vmem:[%s1950_s0 + $0x24] ss:$8 sps:$4 sm:$0xff]  }
  0x37   : > { %776 = vmatprep.subr.bf16.mxu0 %v1527_v40  ;;  %1449 = vmatprep.subr.bf16.mxu1 %v1527_v40  ;;  %v1574_v5 = vld [vmem:[%s1950_s0 + $0x54] ss:$8 sps:$4 sm:$0xff]   ;;  %v1577_v7 = vld [vmem:[%s1950_s0 + $0x50] ss:$8 sps:$4 sm:$0xff]   ;;  %v1580_v9 = vld [vmem:[%s1950_s0 + $0x64] ss:$8 sps:$4 sm:$0xff]  }
  0x38   : > { %v1582_v10 = vld [vmem:[%s1950_s0 + $0x20] ss:$8 sps:$4 sm:$0xff]   ;;  %v1584_v12 = vld [vmem:[%s1950_s0 + $0x34] ss:$8 sps:$4 sm:$0xff]   ;;  %v1588_v14 = vld [vmem:[%s1950_s0 + $0x30] ss:$8 sps:$4 sm:$0xff]  }
  0x39   : > { %v1583_v11 = vld [vmem:[%s1950_s0 + $0x60] ss:$8 sps:$4 sm:$0xff]   ;;  %v1586_v13 = vld [vmem:[%s1950_s0 + $0x74] ss:$8 sps:$4 sm:$0xff]   ;;  %v1589_v15 = vld [vmem:[%s1950_s0 + $0x70] ss:$8 sps:$4 sm:$0xff]  }
  0x3a   : > { %777 = vmatpush1.bf16.msra.mxu0 %v1529_v41  ;;  %1465 = vmatpush1.bf16.msra.mxu1 %v1529_v41  ;;  %s1962_s28 = smov (!%p408_p11, %s1358_s28), 3  ;;  %v985_v17 = vshrl.u32 %v984_v16, 7  ;;  %s1357_s6 = sshll.u32 %s357_s30, 7 }
  0x3b   : > { %778 = vmatprep.subr.bf16.mxu0 %v1530_v42  ;;  %1450 = vmatprep.subr.bf16.mxu1 %v1530_v42  ;;  %s410_s5 = scalar_lea.vmem %s1952_s2, %s1962_s28  ;;  %s1871_s12 = scalar_lea.vmem [#allocation4], %s1357_s6 }
  0x3c   : > { %v986_v18 = vsub.s32 0, %v985_v17  ;;  %v982_v19 = vld [vmem:[%s410_s5] sm:$0x3]  ;;  %v990_v20 = vsub.s32 1, %v985_v17  ;;  %s1445_s30 = sshll.u32 (%p1685_p6), %s1620_s14, 3 }
  0x3d   : > { %s1150_s9 = scalar_lea.vmem (%p1685_p6), %s1953_s3, %s1445_s30 }
  0x3e   : > { %779 = vmatpush1.bf16.msra.mxu0 %v1532_v43  ;;  %1466 = vmatpush1.bf16.msra.mxu1 %v1532_v43  ;;  %v1857_v21 = vrot.slane %v982_v19, %v986_v18  ;;  %v1859_v22 = vrot.slane %v982_v19, %v990_v20 }
  0x3f   : > { %780 = vmatprep.subr.bf16.mxu0 %v1533_v44  ;;  %1451 = vmatprep.subr.bf16.mxu1 %v1533_v44 }
  0x42   : > { %781 = vmatpush1.bf16.msra.mxu0 %v1535_v45  ;;  %1467 = vmatpush1.bf16.msra.mxu1 %v1535_v45 }
  0x43   : > { %782 = vmatprep.subr.bf16.mxu0 %v1536_v46  ;;  %1452 = vmatprep.subr.bf16.mxu1 %v1536_v46 }
  0x46   : > { %783 = vmatpush1.bf16.msra.mxu0 %v1538_v47  ;;  %1468 = vmatpush1.bf16.msra.mxu1 %v1538_v47 }
  0x47   : > { %784 = vmatprep.subr.bf16.mxu0 %v1539_v48  ;;  %1453 = vmatprep.subr.bf16.mxu1 %v1539_v48 }
  0x4a   : > { %785 = vmatpush1.bf16.msra.mxu0 %v1541_v49  ;;  %1469 = vmatpush1.bf16.msra.mxu1 %v1541_v49 }
  0x4b   : > { %786 = vmatprep.subr.bf16.mxu0 %v1542_v50  ;;  %1454 = vmatprep.subr.bf16.mxu1 %v1542_v50 }
  0x4e   : > { %787 = vmatpush1.bf16.msra.mxu0 %v1544_v51  ;;  %1470 = vmatpush1.bf16.msra.mxu1 %v1544_v51 }
  0x4f   : > { %788 = vmatprep.subr.bf16.mxu0 %v1545_v52  ;;  %1455 = vmatprep.subr.bf16.mxu1 %v1545_v52 }
  0x52   : > { %789 = vmatpush1.bf16.msra.mxu0 %v1547_v53  ;;  %1471 = vmatpush1.bf16.msra.mxu1 %v1547_v53 }
  0x53   : > { %790 = vmatprep.subr.bf16.mxu0 %v1548_v54  ;;  %1456 = vmatprep.subr.bf16.mxu1 %v1548_v54 }
  0x56   : > { %791 = vmatpush1.bf16.msra.mxu0 %v1550_v55  ;;  %1472 = vmatpush1.bf16.msra.mxu1 %v1550_v55 }
  0x57   : > { %792 = vmatprep.subr.bf16.mxu0 %v1551_v56  ;;  %1457 = vmatprep.subr.bf16.mxu1 %v1551_v56 }
  0x5a   : > { %793 = vmatpush1.bf16.msra.mxu0 %v1553_v57  ;;  %1473 = vmatpush1.bf16.msra.mxu1 %v1553_v57 }
  0x5b   : > { %794 = vmatprep.subr.bf16.mxu0 %v1554_v58  ;;  %1458 = vmatprep.subr.bf16.mxu1 %v1554_v58 }
  0x5e   : > { %795 = vmatpush1.bf16.msra.mxu0 %v1556_v59  ;;  %1474 = vmatpush1.bf16.msra.mxu1 %v1556_v59 }
  0x5f   : > { %796 = vmatprep.subr.bf16.mxu0 %v1557_v60  ;;  %1459 = vmatprep.subr.bf16.mxu1 %v1557_v60 }
  0x62   : > { %797 = vmatpush1.bf16.msra.mxu0 %v1559_v61  ;;  %1475 = vmatpush1.bf16.msra.mxu1 %v1559_v61 }
  0x63   : > { %798 = vmatprep.subr.bf16.mxu0 %v1560_v62  ;;  %1460 = vmatprep.subr.bf16.mxu1 %v1560_v62 }
  0x66   : > { %799 = vmatpush1.bf16.msra.mxu0 %v1562_v63  ;;  %1476 = vmatpush1.bf16.msra.mxu1 %v1562_v63 }
  0x67   : > { %800 = vmatprep.subr.bf16.mxu0 %v1563_v0  ;;  %1461 = vmatprep.subr.bf16.mxu1 %v1563_v0 }
  0x6a   : > { %801 = vmatpush1.bf16.msra.mxu0 %v1565_v1  ;;  %1477 = vmatpush1.bf16.msra.mxu1 %v1565_v1 }
  0x6d   : > { %803 = vmatmul.mubr.bf16.vlgmr.msra.gmra.mrb[0].mxu0 %v1566_v2  ;;  %843 = vmatmul.mubr.bf16.vlgmr.msra.gmra.mrb[0].mxu1 %v1569_v3 }
  0x6e   : > { %812 = vmatprep.mubr.bf16.mxu0 %v1572_v4  ;;  %852 = vmatprep.mubr.bf16.mxu1 %v1574_v5 }
  0x75   : > { %813 = vmatmul.mubr.bf16.gmra.mrb[4].mxu0 %v1576_v6  ;;  %853 = vmatmul.mubr.bf16.gmra.mrb[4].mxu1 %v1577_v7 }
  0x76   : > { %822 = vmatprep.mubr.bf16.mxu0 %v1578_v8  ;;  %862 = vmatprep.mubr.bf16.mxu1 %v1580_v9 }
  0x7d   : > { %823 = vmatmul.mubr.bf16.gmra.mrb[8].mxu0 %v1582_v10  ;;  %863 = vmatmul.mubr.bf16.gmra.mrb[8].mxu1 %v1583_v11 }
  0x7e   : > { %832 = vmatprep.mubr.bf16.mxu0 %v1584_v12  ;;  %872 = vmatprep.mubr.bf16.mxu1 %v1586_v13 }
  0x85   : > { %833 = vmatmul.mubr.bf16.gmra.mrb[12].mxu0 %v1588_v14  ;;  %873 = vmatmul.mubr.bf16.gmra.mrb[12].mxu1 %v1589_v15 }
 0x140   : > { %v804_v23 = vpop.f32.mrb[0].mxu0  ;;  %v844_v24 = vpop.f32.mrb[0].mxu1 }
 0x141   : > { %v994_v25 = vadd.f32 %v1857_v21, %v804_v23  ;;  %v1010_v26 = vadd.f32 %v1857_v21, %v844_v24  ;;  %v806_v27 = vpop.f32.mrb[1].mxu0  ;;  %v846_v28 = vpop.f32.mrb[1].mxu1 }
 0x142   : > { %v995_v29 = vadd.f32 %v1859_v22, %v806_v27  ;;  %v1011_v30 = vadd.f32 %v1859_v22, %v846_v28  ;;  %v808_v31 = vpop.f32.mrb[2].mxu0  ;;  %v848_v32 = vpop.f32.mrb[2].mxu1 }
 0x143   : > { %v996_v33 = vadd.f32 %v1857_v21, %v808_v31  ;;  %v1012_v34 = vadd.f32 %v1857_v21, %v848_v32  ;;  %v810_v35 = vpop.f32.mrb[3].mxu0  ;;  %v850_v36 = vpop.f32.mrb[3].mxu1 }
 0x144   : > { %v1429_v37 = vpack.c.bf16 %v995_v29, %v994_v25  ;;  %v1437_v38 = vpack.c.bf16 %v1011_v30, %v1010_v26  ;;  %v997_v39 = vadd.f32 %v1859_v22, %v810_v35  ;;  %v1013_v40 = vadd.f32 %v1859_v22, %v850_v36 }
 0x146   : > { %1122 = vst [vmem:[%s1871_s12] sm:$0xff] %v1429_v37  ;;  %1130 = vst [vmem:[%s1871_s12 + $0x40] sm:$0xff] %v1437_v38  ;;  %v1430_v41 = vpack.c.bf16 %v997_v39, %v996_v33  ;;  %v1438_v42 = vpack.c.bf16 %v1013_v40, %v1012_v34 }
 0x148   : > { %1123 = vst [vmem:[%s1871_s12 + $0x8] sm:$0xff] %v1430_v41  ;;  %1131 = vst [vmem:[%s1871_s12 + $0x48] sm:$0xff] %v1438_v42  ;;  %v814_v43 = vpop.f32.mrb[4].mxu0  ;;  %v854_v44 = vpop.f32.mrb[4].mxu1 }
 0x149   : > { %v998_v45 = vadd.f32 %v1857_v21, %v814_v43  ;;  %v1014_v46 = vadd.f32 %v1857_v21, %v854_v44  ;;  %v816_v47 = vpop.f32.mrb[5].mxu0  ;;  %v856_v48 = vpop.f32.mrb[5].mxu1 }
 0x14a   : > { %v999_v49 = vadd.f32 %v1859_v22, %v816_v47  ;;  %v1015_v50 = vadd.f32 %v1859_v22, %v856_v48  ;;  %v818_v51 = vpop.f32.mrb[6].mxu0  ;;  %v858_v52 = vpop.f32.mrb[6].mxu1 }
 0x14b   : > { %v1000_v53 = vadd.f32 %v1857_v21, %v818_v51  ;;  %v1016_v54 = vadd.f32 %v1857_v21, %v858_v52  ;;  %v820_v55 = vpop.f32.mrb[7].mxu0  ;;  %v860_v56 = vpop.f32.mrb[7].mxu1 }
 0x14c   : > { %v1431_v57 = vpack.c.bf16 %v999_v49, %v998_v45  ;;  %v1439_v58 = vpack.c.bf16 %v1015_v50, %v1014_v46  ;;  %v1001_v59 = vadd.f32 %v1859_v22, %v820_v55  ;;  %v1017_v60 = vadd.f32 %v1859_v22, %v860_v56 }
 0x14d   : > { %v1224_v47 = vld [vmem:[%s1871_s12 + $0x40] sm:$0xff] (%p1685_p6) }
 0x14e   : > { %1124 = vst [vmem:[%s1871_s12 + $0x10] sm:$0xff] %v1431_v57  ;;  %1132 = vst [vmem:[%s1871_s12 + $0x50] sm:$0xff] %v1439_v58  ;;  %v1432_v61 = vpack.c.bf16 %v1001_v59, %v1000_v53  ;;  %v1440_v62 = vpack.c.bf16 %v1017_v60, %v1016_v54 }
 0x14f   : > { %1225 = vst [vmem:[%s1150_s9 + $0x80] sm:$0xff] (%p1685_p6), %v1224_v47  ;;  %v1226_v48 = vld [vmem:[%s1871_s12 + $0x48] sm:$0xff] (%p1685_p6) }
 0x150   : > { %1125 = vst [vmem:[%s1871_s12 + $0x18] sm:$0xff] %v1432_v61  ;;  %1133 = vst [vmem:[%s1871_s12 + $0x58] sm:$0xff] %v1440_v62  ;;  %v824_v63 = vpop.f32.mrb[8].mxu0  ;;  %v864_v0 = vpop.f32.mrb[8].mxu1 }
 0x151   : > { %v1002_v1 = vadd.f32 %v1857_v21, %v824_v63  ;;  %v1018_v2 = vadd.f32 %v1857_v21, %v864_v0  ;;  %v826_v3 = vpop.f32.mrb[9].mxu0  ;;  %v866_v4 = vpop.f32.mrb[9].mxu1  ;;  %1227 = vst [vmem:[%s1150_s9 + $0x90] sm:$0xff] (%p1685_p6), %v1226_v48 }
 0x152   : > { %v1003_v5 = vadd.f32 %v1859_v22, %v826_v3  ;;  %v1019_v6 = vadd.f32 %v1859_v22, %v866_v4  ;;  %v828_v7 = vpop.f32.mrb[10].mxu0  ;;  %v868_v8 = vpop.f32.mrb[10].mxu1 }
 0x153   : > { %v1004_v9 = vadd.f32 %v1857_v21, %v828_v7  ;;  %v1020_v10 = vadd.f32 %v1857_v21, %v868_v8  ;;  %v830_v11 = vpop.f32.mrb[11].mxu0  ;;  %v870_v12 = vpop.f32.mrb[11].mxu1 }
 0x154   : > { %v1433_v13 = vpack.c.bf16 %v1003_v5, %v1002_v1  ;;  %v1441_v14 = vpack.c.bf16 %v1019_v6, %v1018_v2  ;;  %v1005_v15 = vadd.f32 %v1859_v22, %v830_v11  ;;  %v1021_v16 = vadd.f32 %v1859_v22, %v870_v12 }
 0x155   : > { %v1212_v41 = vld [vmem:[%s1871_s12 + $0x10] sm:$0xff] (%p1685_p6) }
 0x156   : > { %1126 = vst [vmem:[%s1871_s12 + $0x20] sm:$0xff] %v1433_v13  ;;  %1134 = vst [vmem:[%s1871_s12 + $0x60] sm:$0xff] %v1441_v14  ;;  %v1434_v17 = vpack.c.bf16 %v1005_v15, %v1004_v9  ;;  %v1442_v18 = vpack.c.bf16 %v1021_v16, %v1020_v10  ;;  %v1228_v49 = vld [vmem:[%s1871_s12 + $0x50] sm:$0xff] (%p1685_p6) }
 0x157   : > { %v1214_v42 = vld [vmem:[%s1871_s12 + $0x18] sm:$0xff] (%p1685_p6)  ;;  %1213 = vst [vmem:[%s1150_s9 + $0x20] sm:$0xff] (%p1685_p6), %v1212_v41  ;;  %1229 = vst [vmem:[%s1150_s9 + $0xa0] sm:$0xff] (%p1685_p6), %v1228_v49 }
 0x158   : > { %1127 = vst [vmem:[%s1871_s12 + $0x28] sm:$0xff] %v1434_v17  ;;  %1135 = vst [vmem:[%s1871_s12 + $0x68] sm:$0xff] %v1442_v18  ;;  %v834_v19 = vpop.f32.mrb[12].mxu0  ;;  %v874_v20 = vpop.f32.mrb[12].mxu1  ;;  %v1230_v50 = vld [vmem:[%s1871_s12 + $0x58] sm:$0xff] (%p1685_p6) }
 0x159   : > { %v1006_v23 = vadd.f32 %v1857_v21, %v834_v19  ;;  %v1022_v24 = vadd.f32 %v1857_v21, %v874_v20  ;;  %v836_v25 = vpop.f32.mrb[13].mxu0  ;;  %v876_v26 = vpop.f32.mrb[13].mxu1  ;;  %1215 = vst [vmem:[%s1150_s9 + $0x30] sm:$0xff] (%p1685_p6), %v1214_v42  ;;  %1231 = vst [vmem:[%s1150_s9 + $0xb0] sm:$0xff] (%p1685_p6), %v1230_v50 }
 0x15a   : > { %v1007_v27 = vadd.f32 %v1859_v22, %v836_v25  ;;  %v1023_v28 = vadd.f32 %v1859_v22, %v876_v26  ;;  %v838_v29 = vpop.f32.mrb[14].mxu0  ;;  %v878_v30 = vpop.f32.mrb[14].mxu1  ;;  %1144 = sbr.rel (!%p1685_p6) target bundleno = 362 (0x16a), region = 82 }
 0x15b   : > { %v1008_v31 = vadd.f32 %v1857_v21, %v838_v29  ;;  %v1024_v32 = vadd.f32 %v1857_v21, %v878_v30  ;;  %v840_v33 = vpop.f32.mrb[15].mxu0  ;;  %v880_v34 = vpop.f32.mrb[15].mxu1  ;;  %v1208_v21 = vld [vmem:[%s1871_s12] sm:$0xff] (%p1685_p6) }
 0x15c   : > { %v1435_v35 = vpack.c.bf16 %v1007_v27, %v1006_v23  ;;  %v1443_v36 = vpack.c.bf16 %v1023_v28, %v1022_v24  ;;  %v1009_v37 = vadd.f32 %v1859_v22, %v840_v33  ;;  %v1025_v38 = vadd.f32 %v1859_v22, %v880_v34  ;;  %v1210_v22 = vld [vmem:[%s1871_s12 + $0x8] sm:$0xff] (%p1685_p6)  ;;  %1209 = vst [vmem:[%s1150_s9] sm:$0xff] (%p1685_p6), %v1208_v21 }
 0x15d   : > { %v1216_v43 = vld [vmem:[%s1871_s12 + $0x20] sm:$0xff] (%p1685_p6)  ;;  %1211 = vst [vmem:[%s1150_s9 + $0x10] sm:$0xff] (%p1685_p6), %v1210_v22 }
 0x15e   : > { %1128 = vst [vmem:[%s1871_s12 + $0x30] sm:$0xff] %v1435_v35  ;;  %1136 = vst [vmem:[%s1871_s12 + $0x70] sm:$0xff] %v1443_v36  ;;  %v1436_v39 = vpack.c.bf16 %v1009_v37, %v1008_v31  ;;  %v1444_v40 = vpack.c.bf16 %v1025_v38, %v1024_v32  ;;  %v1232_v51 = vld [vmem:[%s1871_s12 + $0x60] sm:$0xff] (%p1685_p6) }
 0x15f   : > { %v1218_v44 = vld [vmem:[%s1871_s12 + $0x28] sm:$0xff] (%p1685_p6)  ;;  %1217 = vst [vmem:[%s1150_s9 + $0x40] sm:$0xff] (%p1685_p6), %v1216_v43  ;;  %1233 = vst [vmem:[%s1150_s9 + $0xc0] sm:$0xff] (%p1685_p6), %v1232_v51 }
 0x160   : > { %1129 = vst [vmem:[%s1871_s12 + $0x38] sm:$0xff] %v1436_v39  ;;  %1137 = vst [vmem:[%s1871_s12 + $0x78] sm:$0xff] %v1444_v40  ;;  %v1234_v52 = vld [vmem:[%s1871_s12 + $0x68] sm:$0xff] (%p1685_p6) }
 0x161   : > { %1219 = vst [vmem:[%s1150_s9 + $0x50] sm:$0xff] %v1218_v44  ;;  %1235 = vst [vmem:[%s1150_s9 + $0xd0] sm:$0xff] %v1234_v52 }
 0x165   : > { %v1220_v45 = vld [vmem:[%s1871_s12 + $0x30] sm:$0xff] }
 0x166   : > { %1221 = vst [vmem:[%s1150_s9 + $0x60] sm:$0xff] %v1220_v45  ;;  %v1236_v53 = vld [vmem:[%s1871_s12 + $0x70] sm:$0xff] }
 0x167   : > { %v1222_v46 = vld [vmem:[%s1871_s12 + $0x38] sm:$0xff]  ;;  %1237 = vst [vmem:[%s1150_s9 + $0xe0] sm:$0xff] %v1236_v53 }
 0x168   : > { %1223 = vst [vmem:[%s1150_s9 + $0x70] sm:$0xff] %v1222_v46  ;;  %v1238_v54 = vld [vmem:[%s1871_s12 + $0x78] sm:$0xff] }
 0x169   : > { %1239 = vst [vmem:[%s1150_s9 + $0xf0] sm:$0xff] %v1238_v54 }
 0x16a PF: > { %s13_s16 = sadd.s32 1, %s1628_s16   ;;  %s1955_s12 = smov %s1616_s13 }
 0x16b   : > { %p10_p12 = scmp.ge.s32.totalorder %s13_s16, 4   ;;  %s1956_s13 = smov %s1690_s22 }
 0x16c   : > { %s1957_s14 = smov %s1624_s15  ;;  %s1958_s15 = smov %s1960_s17 }
 0x16d   :  { %12 = sbr.rel (!%p10_p12) target bundleno = 3 (0x3), region = 157 }

// kernel: _lambda_.44
= control target key start
LH: loop header
LB: loop body
LE: loop exit
PB: predicated region body
PF: predicated region fallthrough
CT: control target
= control target key end

     0   :  { %s1094_s9 = smov 0   ;;  %s1188_s0 = inlined_call_operand.vmem [shape: bf16[2,1,256], index: 0, kind: input, shape index: {}]   ;;  %s1189_s1 = inlined_call_operand.vmem [shape: bf16[2,2,512], index: 1, kind: input, shape index: {}]   ;;  %s1190_s2 = inlined_call_operand.vmem [shape: bf16[2,1,256], index: 2, kind: output, shape index: {}]  }
   0x1 LB: > { %s949_s10 = sadd.s32 4294967295, %s1072_s9   ;;  %p953_p0 = scmp.ge.s32.totalorder %s1072_s9, 1  ;;  %s1072_s9 = sphi %s1094_s9, %s12_s9  }
   0x2   : > { %p120_p1 = scmp.lt.s32.totalorder %s1072_s9, 3 }
   0x4   : > { %p121_p2 = pnand %p953_p0, %p120_p1 }
   0x5   : > { %p144_p3 = scmp.lt.s32.totalorder (!%p121_p2), %s949_s10, 1  ;;  %v1074_v0 = vmov (!%p121_p2), 0.0   ;;  %vm1075_vm0 = vmmov (!%p121_p2), 0   ;;  %vm161_vm1 = vcmask (!%p121_p2), 523264   ;;  %vm238_vm2 = vcmask (!%p121_p2), 8192   ;;  %s1077_s19 = smov (!%p121_p2), 64  }
   0x6   : > { %124 = sbr.rel (%p121_p2) target bundleno = 1426 (0x592), region = 28  ;;  %992 = vmatprep.subr.mxu0 (!%p121_p2), %v1074_v0  ;;  %994 = vmatprep.mubr.msk.f32.mxu0 (!%p121_p2), %vm1075_vm0, %v1074_v0  ;;  %v254_v9 = vlaneseq (!%p121_p2)  ;;  %v1076_v10 = vmov (!%p121_p2), 1983009808   ;;  %vm269_vm3 = vcmask (!%p121_p2), 1041408   ;;  %vm265_vm4 = vcmask (!%p121_p2), 15360  }
   0x7   : > { %997 = vmatprep.subr.mxu1 (!%p121_p2), %v1074_v0  ;;  %999 = vmatprep.mubr.msk.f32.mxu1 (!%p121_p2), %vm1075_vm0, %v1074_v0  ;;  %v252_v11 = vunpack.c.l.s4 (!%p121_p2), %v1076_v10  ;;  %vm874_vm5 = vcmask (!%p121_p2), 1040384   ;;  %vm875_vm6 = vsmask.f32 (!%p121_p2), 256  ;;  %vm877_vm7 = vcmask (!%p121_p2), 1041409  }
   0x8   : > { %v1126_v12 = vshrl.u32 (!%p121_p2), %v254_v9, 7  ;;  %vm878_vm8 = vsmask.f32 (!%p121_p2), 1280  ;;  %vm876_vm9 = vmand (!%p121_p2), %vm874_vm5, %vm875_vm6 }
   0x9   : > { %v253_v13 = vunpack.c.0.s8 (!%p121_p2), %v252_v11  ;;  %vm879_vm10 = vmand (!%p121_p2), %vm877_vm7, %vm878_vm8 }
   0xa   : > { %v344_v15 = vsub.s32 (!%p121_p2), 0, %v1126_v12  ;;  %v514_v18 = vsub.s32 (!%p121_p2), 2, %v1126_v12  ;;  %vm880_vm11 = vmor (!%p121_p2), %vm879_vm10, %vm876_vm9 }
   0xb   : > { %v256_v14 = vsub.s32 (!%p121_p2), %v253_v13, %v1126_v12 }
   0xd   : > { %s1192_s10 = smov (!%p144_p3, %s949_s10), 1 }
   0xe   : > { %s954_s11 = sshll.u32 %s1192_s10, 1  ;;  %s955_s12 = sshll.u32 %s1192_s10, 2 }
   0xf   : > { %s151_s15 = scalar_lea.vmem %s1189_s1, %s955_s12  ;;  %s147_s18 = scalar_lea.vmem %s1188_s0, %s954_s11 }
  0x10   : > { %v159_v1 = vld [vmem:[%s151_s15] sm:$0xf]  ;;  %s155_s22 = scalar_lea.vmem %s1190_s2, %s954_s11 }
  0x11   : > { %v160_v2 = vunpack.c.l.bf16 %v159_v1  ;;  %v156_v3 = vld [vmem:[%s147_s18] sm:$0x3] }
  0x12   : > { %v157_v4 = vunpack.c.l.bf16 %v156_v3 }
  0x13   : > { %993 = vmatpush3.xpose.msk.msra.mxu0 %vm161_vm1, %v160_v2  ;;  %v257_v16 = vrot.slane %v160_v2, %v256_v14  ;;  %v250_v25 = vcombine.high %v160_v2, %v160_v2 }
  0x14   : > { %v158_v5 = vmul.f32 0.125, %v157_v4  ;;  %1007 = vmatprep.subr.mxu0 %v1074_v0 }
  0x15   : > { %348 = vrot.lane.b32.xlu1 %v257_v16, %s1077_s19  ;;  %v264_v26 = vrot.slane %v250_v25, %v256_v14  ;;  %v516_v27 = vcombine.high %v257_v16, %v257_v16 }
  0x16   : > { %995 = vmatmul.mubr.msk.f32.vlgmr.msra.gmra.mrb[0].mxu0 %vm161_vm1, %v158_v5  ;;  %v345_v17 = vrot.slane %v158_v5, %v344_v15  ;;  %v515_v19 = vrot.slane %v158_v5, %v514_v18  ;;  %v1078_v18 = vmov 1966171168  }
  0x17   : > { %1009 = vmatprep.mubr.msk.f32.mxu0 %vm1075_vm0, %v1074_v0  ;;  %998 = vmatpush3.msk.msra.mxu1 %vm269_vm3, %v264_v26  ;;  %v602_v61 = vcombine.high %v264_v26, %v264_v26 }
  0x18   : > { %1002 = vmatprep.subr.mxu1 %v1074_v0 }
  0x19   : > { %346 = vrot.lane.b32.xlu1 %v345_v17, %s1077_s19 }
  0x1d   : > { %678 = vrot.lane.b32.xlu1 %v515_v19, %s1077_s19 }
  0x87   : > { %v349_v29 = vpop.permute.xlu1 %348 }
  0x8b   : > { %v347_v32 = vpop.permute.xlu1 %346 }
  0x8f   : > { %v679_v34 = vpop.permute.xlu1 %678 }
  0xe9   : > { %v234_v6 = vpop.f32.mrb[0].mxu0 }
  0xea   : > { %v996_v7 = vpop.f32.mrb[1].mxu0  ;;  %v239_v8 = vsel %vm238_vm2, %v234_v6, -inf }
  0xeb   : > { %240 = vmax.xlane.f32.xlu0 %v239_v8 }
 0x178   : > { %v241_v20 = vpop.xlane.xlu0 %240 }
 0x179   : > { %v242_v21 = vsub.f32 %v234_v6, %v241_v20 }
 0x17b   : > { %v243_v22 = vmul.f32 1.442695, %v242_v21 }
 0x17d   : > { %1050 = vpow2.f32 %v243_v22 }
 0x187   : > { %v1051_v23 = vpop.eup %1050 }
 0x188   : > { %v245_v24 = vsel %vm238_vm2, %v1051_v23, 0.0 }
 0x189   : > { %246 = vadd.xlane.f32.xlu0 %v245_v24 }
 0x19f   : > { %680 = vrot.lane.b32.xlu0 %v516_v27, %s1077_s19 }
 0x216   : > { %v247_v28 = vpop.xlane.xlu0 %246 }
 0x217   : > { %1052 = vrcp.f32 %v247_v28  ;;  %v881_v28 = vld [vmem:[%s155_s22] sm:$0x3] }
 0x21a   : > { %v681_v33 = vpop.permute.xlu0 %680 }
 0x221   : > { %v1053_v30 = vpop.eup %1052 }
 0x222   : > { %v249_v31 = vmul.f32 %v1053_v30, %v1051_v23 }
 0x224   : > { %1000 = vmatmul.mubr.msk.f32.vlgmr.msra.gmra.mrb[0].mxu1 %vm265_vm4, %v249_v31 }
 0x225   : > { %1003 = vmatpush3.xpose.msk.msra.mxu1 %vm161_vm1, %v349_v29  ;;  %1004 = vmatprep.mubr.msk.f32.mxu1 %vm1075_vm0, %v1074_v0 }
 0x226   : > { %1012 = vmatprep.subr.mxu1 %v1074_v0 }
 0x228   : > { %1005 = vmatmul.mubr.msk.f32.vlgmr.msra.gmra.mrb[2].mxu1 %vm161_vm1, %v347_v32 }
 0x229   : > { %1013 = vmatpush3.xpose.msk.msra.mxu1 %vm161_vm1, %v516_v27  ;;  %1014 = vmatprep.mubr.msk.f32.mxu1 %vm1075_vm0, %v1074_v0 }
 0x22a   : > { %1022 = vmatprep.subr.mxu1 %v1074_v0 }
 0x22c   : > { %1015 = vmatmul.mubr.msk.f32.vlgmr.msra.gmra.mrb[4].mxu1 %vm161_vm1, %v515_v19  ;;  %v860_v19 = vunpack.c.l.s4 %v1078_v18 }
 0x22d   : > { %1023 = vmatpush3.xpose.msk.msra.mxu1 %vm161_vm1, %v681_v33  ;;  %1024 = vmatprep.mubr.msk.f32.mxu1 %vm1075_vm0, %v1074_v0 }
 0x22e   : > { %v861_v20 = vunpack.c.0.s8 %v860_v19 }
 0x230   : > { %1025 = vmatmul.mubr.msk.f32.vlgmr.msra.gmra.mrb[6].mxu1 %vm161_vm1, %v679_v34  ;;  %v864_v23 = vsub.s32 %v861_v20, %v1126_v12 }
 0x2f7   : > { %v1153_v35 = vpop.f32.mrb[0].mxu1 }
 0x2f8   : > { %v1001_v36 = vpop.f32.mrb[1].mxu1 }
 0x2fb   : > { %v420_v37 = vpop.f32.mrb[2].mxu1 }
 0x2fc   : > { %v1006_v38 = vpop.f32.mrb[3].mxu1  ;;  %v424_v39 = vsel %vm238_vm2, %v420_v37, -inf }
 0x2fd   : > { %425 = vmax.xlane.f32.xlu1 %v424_v39 }
 0x2ff   : > { %v587_v40 = vpop.f32.mrb[4].mxu1 }
 0x300   : > { %v1016_v41 = vpop.f32.mrb[5].mxu1  ;;  %v591_v42 = vsel %vm238_vm2, %v587_v40, -inf }
 0x301   : > { %592 = vmax.xlane.f32.xlu0 %v591_v42 }
 0x303   : > { %v752_v43 = vpop.f32.mrb[6].mxu1 }
 0x304   : > { %v1026_v44 = vpop.f32.mrb[7].mxu1  ;;  %v756_v45 = vsel %vm238_vm2, %v752_v43, -inf }
 0x305   : > { %757 = vmax.xlane.f32.xlu1 %v756_v45 }
 0x317   : > { %435 = vrot.lane.b32.xlu0 %v264_v26, %s1077_s19 }
 0x38a   : > { %v426_v46 = vpop.xlane.xlu1 %425 }
 0x38b   : > { %v427_v47 = vsub.f32 %v420_v37, %v426_v46 }
 0x38d   : > { %v428_v48 = vmul.f32 1.442695, %v427_v47 }
 0x38e   : > { %v593_v49 = vpop.xlane.xlu0 %592 }
 0x38f   : > { %1054 = vpow2.f32 %v428_v48  ;;  %v594_v50 = vsub.f32 %v587_v40, %v593_v49 }
 0x391   : > { %v595_v51 = vmul.f32 1.442695, %v594_v50 }
 0x392   : > { %v758_v52 = vpop.xlane.xlu1 %757  ;;  %v436_v62 = vpop.permute.xlu0 %435 }
 0x393   : > { %1056 = vpow2.f32 %v595_v51  ;;  %v759_v53 = vsub.f32 %v752_v43, %v758_v52  ;;  %1008 = vmatpush3.msk.msra.mxu0 %vm269_vm3, %v436_v62 }
 0x394   : > { %1017 = vmatprep.subr.mxu0 %v1074_v0 }
 0x395   : > { %v760_v54 = vmul.f32 1.442695, %v759_v53 }
 0x397   : > { %1058 = vpow2.f32 %v760_v54 }
 0x399   : > { %v1055_v55 = vpop.eup %1054 }
 0x39a   : > { %v430_v56 = vsel %vm238_vm2, %v1055_v55, 0.0 }
 0x39b   : > { %431 = vadd.xlane.f32.xlu1 %v430_v56 }
 0x39d   : > { %v1057_v57 = vpop.eup %1056 }
 0x39e   : > { %v597_v58 = vsel %vm238_vm2, %v1057_v57, 0.0 }
 0x39f   : > { %598 = vadd.xlane.f32.xlu1 %v597_v58 }
 0x3a1   : > { %v1059_v59 = vpop.eup %1058 }
 0x3a2   : > { %v762_v60 = vsel %vm238_vm2, %v1059_v59, 0.0 }
 0x3a3   : > { %763 = vadd.xlane.f32.xlu1 %v762_v60 }
 0x3b4   : > { %767 = vrot.lane.b32.xlu1 %v602_v61, %s1077_s19 }
 0x428   : > { %v432_v63 = vpop.xlane.xlu1 %431 }
 0x429   : > { %1060 = vrcp.f32 %v432_v63 }
 0x42c   : > { %v599_v1 = vpop.xlane.xlu1 %598 }
 0x42d   : > { %1062 = vrcp.f32 %v599_v1 }
 0x430   : > { %v764_v2 = vpop.xlane.xlu1 %763 }
 0x431   : > { %1064 = vrcp.f32 %v764_v2 }
 0x433   : > { %v1061_v3 = vpop.eup %1060 }
 0x434   : > { %v434_v4 = vmul.f32 %v1061_v3, %v1055_v55  ;;  %v768_v7 = vpop.permute.xlu1 %767 }
 0x436   : > { %1010 = vmatmul.mubr.msk.f32.vlgmr.msra.gmra.mrb[2].mxu0 %vm265_vm4, %v434_v4 }
 0x437   : > { %v1063_v5 = vpop.eup %1062  ;;  %1018 = vmatpush3.msk.msra.mxu0 %vm269_vm3, %v602_v61  ;;  %1019 = vmatprep.mubr.msk.f32.mxu0 %vm1075_vm0, %v1074_v0 }
 0x438   : > { %v601_v6 = vmul.f32 %v1063_v5, %v1057_v57  ;;  %1027 = vmatprep.subr.mxu0 %v1074_v0 }
 0x43a   : > { %1020 = vmatmul.mubr.msk.f32.vlgmr.msra.gmra.mrb[4].mxu0 %vm265_vm4, %v601_v6 }
 0x43b   : > { %v1065_v8 = vpop.eup %1064  ;;  %1028 = vmatpush3.msk.msra.mxu0 %vm269_vm3, %v768_v7  ;;  %1029 = vmatprep.mubr.msk.f32.mxu0 %vm1075_vm0, %v1074_v0 }
 0x43c   : > { %v766_v9 = vmul.f32 %v1065_v8, %v1059_v59 }
 0x43e   : > { %1030 = vmatmul.mubr.msk.f32.vlgmr.msra.gmra.mrb[6].mxu0 %vm265_vm4, %v766_v9 }
 0x509   : > { %v508_v10 = vpop.f32.mrb[2].mxu0 }
 0x50a   : > { %v1011_v11 = vpop.f32.mrb[3].mxu0 }
 0x50d   : > { %v674_v13 = vpop.f32.mrb[4].mxu0 }
 0x50e   : > { %v1021_v14 = vpop.f32.mrb[5].mxu0 }
 0x511   : > { %v840_v15 = vpop.f32.mrb[6].mxu0 }
 0x512   : > { %v1045_v16 = vpack.i.bf16 %v840_v15, %v508_v10  ;;  %v1031_v17 = vpop.f32.mrb[7].mxu0 }
 0x514   : > { %1046 = vrot.lane.b32.xlu1 %v1045_v16, %s1077_s19 }
 0x586   : > { %v1047_v21 = vpop.permute.xlu1 %1046 }
 0x587   : > { %v1049_v0 = vunpack.i.h.bf16 %v1047_v21  ;;  %v1048_v22 = vunpack.i.l.bf16 %v1047_v21 }
 0x589   : > { %v853_v24 = vsel %vm161_vm1, %v674_v13, %v1049_v0  ;;  %v852_v25 = vsel %vm161_vm1, %v1153_v35, %v1048_v22 }
 0x58a   : > { %v973_v26 = vpack.c.bf16 %v853_v24, %v852_v25 }
 0x58c   : > { %v865_v27 = vrot.slane %v973_v26, %v864_v23 }
 0x58e   : > { %v872_v29 = vrot.slane %v865_v27, %v864_v23 }
 0x590   : > { %v882_v30 = vsel %vm880_vm11, %v872_v29, %v881_v28 }
 0x591   : > { %883 = vst [vmem:[%s155_s22] sm:$0x3] %v882_v30 }
 0x592 PF: > { %s12_s9 = sadd.s32 1, %s1072_s9  }
 0x593   : > { %p9_p4 = scmp.ge.s32.totalorder %s12_s9, 4  }
 0x595   :  { %11 = sbr.rel (!%p9_p4) target bundleno = 1 (0x1), region = 61 }

// kernel: _lambda_.45
= control target key start
LH: loop header
LB: loop body
LE: loop exit
PB: predicated region body
PF: predicated region fallthrough
CT: control target
= control target key end

     0   :  { %s804_s1 = inlined_call_operand.vmem [shape: bf16[256,128], index: 1, kind: input, shape index: {}]   ;;  %s805_s0 = inlined_call_operand.vmem [shape: bf16[128,256], index: 0, kind: input, shape index: {}]   ;;  %s806_s2 = inlined_call_operand.vmem [shape: f32[1,128], index: 2, kind: input, shape index: {}]   ;;  %s807_s3 = inlined_call_operand.vmem [shape: f32[128,128], index: 3, kind: output, shape index: {}]  }
   0x1   :  { %v579_v0 = vld [vmem:[%s804_s1 + $0x40] sm:$0xff]   ;;  %v581_v2 = vld [vmem:[%s804_s1 + $0x48] sm:$0xff]   ;;  %v583_v4 = vld [vmem:[%s804_s1 + $0x50] sm:$0xff]  }
   0x2   :  { %v580_v1 = vld [vmem:[%s804_s1] sm:$0xff]   ;;  %499 = vmatprep.subr.bf16.mxu0 %v579_v0  ;;  %563 = vmatprep.subr.bf16.mxu1 %v579_v0  ;;  %v582_v3 = vld [vmem:[%s804_s1 + $0x8] sm:$0xff]   ;;  %v584_v5 = vld [vmem:[%s804_s1 + $0x10] sm:$0xff]  }
   0x3   :  { %500 = vmatpush3.bf16.msra.mxu0 %v580_v1  ;;  %571 = vmatpush3.bf16.msra.mxu1 %v580_v1  ;;  %v585_v6 = vld [vmem:[%s804_s1 + $0x58] sm:$0xff]   ;;  %v587_v8 = vld [vmem:[%s804_s1 + $0x60] sm:$0xff]   ;;  %v589_v10 = vld [vmem:[%s804_s1 + $0x68] sm:$0xff]  }
   0x4   :  { %501 = vmatprep.subr.bf16.mxu0 %v581_v2  ;;  %564 = vmatprep.subr.bf16.mxu1 %v581_v2  ;;  %v586_v7 = vld [vmem:[%s804_s1 + $0x18] sm:$0xff]   ;;  %v588_v9 = vld [vmem:[%s804_s1 + $0x20] sm:$0xff]   ;;  %v590_v13 = vld [vmem:[%s804_s1 + $0x28] sm:$0xff]  }
   0x5   :  { %v597_v11 = vld [vmem:[%s805_s0 + $0x4] ss:$8 sps:$4 sm:$0xff]   ;;  %v591_v14 = vld [vmem:[%s804_s1 + $0x70] sm:$0xff]   ;;  %v593_v16 = vld [vmem:[%s804_s1 + $0x78] sm:$0xff]  }
   0x6   :  { %v600_v12 = vld [vmem:[%s805_s0 + $0x44] ss:$8 sps:$4 sm:$0xff]   ;;  %307 = vmatprep.mubr.bf16.mxu0 %v597_v11  ;;  %v592_v15 = vld [vmem:[%s804_s1 + $0x30] sm:$0xff]   ;;  %v594_v17 = vld [vmem:[%s804_s1 + $0x38] sm:$0xff]  }
   0x7   :  { %502 = vmatpush3.bf16.msra.mxu0 %v582_v3  ;;  %572 = vmatpush3.bf16.msra.mxu1 %v582_v3  ;;  %v595_v18 = vld [vmem:[%s805_s0] ss:$8 sps:$4 sm:$0xff]   ;;  %v601_v20 = vld [vmem:[%s805_s0 + $0x14] ss:$8 sps:$4 sm:$0xff]   ;;  %v605_v22 = vld [vmem:[%s805_s0 + $0x10] ss:$8 sps:$4 sm:$0xff]  }
   0x8   :  { %503 = vmatprep.subr.bf16.mxu0 %v583_v4  ;;  %565 = vmatprep.subr.bf16.mxu1 %v583_v4  ;;  %v598_v19 = vld [vmem:[%s805_s0 + $0x40] ss:$8 sps:$4 sm:$0xff]   ;;  %v603_v21 = vld [vmem:[%s805_s0 + $0x54] ss:$8 sps:$4 sm:$0xff]   ;;  %v606_v23 = vld [vmem:[%s805_s0 + $0x50] ss:$8 sps:$4 sm:$0xff]  }
   0x9   :  { %339 = vmatprep.mubr.bf16.mxu1 %v600_v12  ;;  %v607_v24 = vld [vmem:[%s805_s0 + $0x24] ss:$8 sps:$4 sm:$0xff]   ;;  %v611_v26 = vld [vmem:[%s805_s0 + $0x20] ss:$8 sps:$4 sm:$0xff]   ;;  %v613_v28 = vld [vmem:[%s805_s0 + $0x34] ss:$8 sps:$4 sm:$0xff]  }
   0xa   :  { %v609_v25 = vld [vmem:[%s805_s0 + $0x64] ss:$8 sps:$4 sm:$0xff]   ;;  %v612_v27 = vld [vmem:[%s805_s0 + $0x60] ss:$8 sps:$4 sm:$0xff]   ;;  %v615_v29 = vld [vmem:[%s805_s0 + $0x74] ss:$8 sps:$4 sm:$0xff]  }
   0xb   :  { %504 = vmatpush3.bf16.msra.mxu0 %v584_v5  ;;  %573 = vmatpush3.bf16.msra.mxu1 %v584_v5  ;;  %v617_v30 = vld [vmem:[%s805_s0 + $0x30] ss:$8 sps:$4 sm:$0xff]   ;;  %v738_v35 = vld [vmem:[%s806_s2] ss:$0 sm:$0xff] }
   0xc   :  { %505 = vmatprep.subr.bf16.mxu0 %v585_v6  ;;  %566 = vmatprep.subr.bf16.mxu1 %v585_v6  ;;  %v618_v31 = vld [vmem:[%s805_s0 + $0x70] ss:$8 sps:$4 sm:$0xff]  }
   0xf   :  { %506 = vmatpush3.bf16.msra.mxu0 %v586_v7  ;;  %574 = vmatpush3.bf16.msra.mxu1 %v586_v7 }
  0x10   :  { %507 = vmatprep.subr.bf16.mxu0 %v587_v8  ;;  %567 = vmatprep.subr.bf16.mxu1 %v587_v8 }
  0x13   :  { %508 = vmatpush3.bf16.msra.mxu0 %v588_v9  ;;  %575 = vmatpush3.bf16.msra.mxu1 %v588_v9 }
  0x14   :  { %509 = vmatprep.subr.bf16.mxu0 %v589_v10  ;;  %568 = vmatprep.subr.bf16.mxu1 %v589_v10 }
  0x17   :  { %510 = vmatpush3.bf16.msra.mxu0 %v590_v13  ;;  %576 = vmatpush3.bf16.msra.mxu1 %v590_v13 }
  0x18   :  { %511 = vmatprep.subr.bf16.mxu0 %v591_v14  ;;  %569 = vmatprep.subr.bf16.mxu1 %v591_v14 }
  0x1b   :  { %512 = vmatpush3.bf16.msra.mxu0 %v592_v15  ;;  %577 = vmatpush3.bf16.msra.mxu1 %v592_v15 }
  0x1c   :  { %513 = vmatprep.subr.bf16.mxu0 %v593_v16  ;;  %570 = vmatprep.subr.bf16.mxu1 %v593_v16 }
  0x1f   :  { %514 = vmatpush3.bf16.msra.mxu0 %v594_v17  ;;  %578 = vmatpush3.bf16.msra.mxu1 %v594_v17 }
  0x22   :  { %308 = vmatmul.mubr.bf16.vlgmr.msra.gmra.mrb[0].mxu0 %v595_v18  ;;  %340 = vmatmul.mubr.bf16.vlgmr.msra.gmra.mrb[0].mxu1 %v598_v19 }
  0x23   :  { %315 = vmatprep.mubr.bf16.mxu0 %v601_v20  ;;  %347 = vmatprep.mubr.bf16.mxu1 %v603_v21 }
  0x2a   :  { %316 = vmatmul.mubr.bf16.gmra.mrb[4].mxu0 %v605_v22  ;;  %348 = vmatmul.mubr.bf16.gmra.mrb[4].mxu1 %v606_v23 }
  0x2b   :  { %323 = vmatprep.mubr.bf16.mxu0 %v607_v24  ;;  %355 = vmatprep.mubr.bf16.mxu1 %v609_v25 }
  0x32   :  { %324 = vmatmul.mubr.bf16.gmra.mrb[8].mxu0 %v611_v26  ;;  %356 = vmatmul.mubr.bf16.gmra.mrb[8].mxu1 %v612_v27 }
  0x33   :  { %331 = vmatprep.mubr.bf16.mxu0 %v613_v28  ;;  %363 = vmatprep.mubr.bf16.mxu1 %v615_v29 }
  0x3a   :  { %332 = vmatmul.mubr.bf16.gmra.mrb[12].mxu0 %v617_v30  ;;  %364 = vmatmul.mubr.bf16.gmra.mrb[12].mxu1 %v618_v31 }
  0xf5   :  { %v515_v32 = vpop.f32.mrb[0].mxu0  ;;  %v539_v33 = vpop.f32.mrb[0].mxu1 }
  0xf6   :  { %v516_v34 = vpop.f32.mrb[1].mxu0  ;;  %v540_v36 = vpop.f32.mrb[1].mxu1 }
  0xf7   :  { %v517_v37 = vadd.f32 %v516_v34, %v515_v32  ;;  %v541_v38 = vadd.f32 %v540_v36, %v539_v33  ;;  %v518_v39 = vpop.f32.mrb[2].mxu0  ;;  %v542_v40 = vpop.f32.mrb[2].mxu1 }
  0xf8   :  { %v519_v41 = vpop.f32.mrb[3].mxu0  ;;  %v543_v42 = vpop.f32.mrb[3].mxu1 }
  0xf9   :  { %v430_v43 = vadd.f32 %v517_v37, %v738_v35  ;;  %v438_v44 = vadd.f32 %v541_v38, %v738_v35  ;;  %v520_v45 = vadd.f32 %v519_v41, %v518_v39  ;;  %v544_v46 = vadd.f32 %v543_v42, %v542_v40 }
  0xfb   :  { %446 = vst [vmem:[%s807_s3] sm:$0xff] %v430_v43  ;;  %454 = vst [vmem:[%s807_s3 + $0x40] sm:$0xff] %v438_v44  ;;  %v431_v47 = vadd.f32 %v520_v45, %v738_v35  ;;  %v439_v48 = vadd.f32 %v544_v46, %v738_v35 }
  0xfd   :  { %447 = vst [vmem:[%s807_s3 + $0x8] sm:$0xff] %v431_v47  ;;  %455 = vst [vmem:[%s807_s3 + $0x48] sm:$0xff] %v439_v48  ;;  %v521_v49 = vpop.f32.mrb[4].mxu0  ;;  %v545_v50 = vpop.f32.mrb[4].mxu1 }
  0xfe   :  { %v522_v51 = vpop.f32.mrb[5].mxu0  ;;  %v546_v52 = vpop.f32.mrb[5].mxu1 }
  0xff   :  { %v523_v53 = vadd.f32 %v522_v51, %v521_v49  ;;  %v547_v54 = vadd.f32 %v546_v52, %v545_v50  ;;  %v524_v55 = vpop.f32.mrb[6].mxu0  ;;  %v548_v56 = vpop.f32.mrb[6].mxu1 }
 0x100   :  { %v525_v57 = vpop.f32.mrb[7].mxu0  ;;  %v549_v58 = vpop.f32.mrb[7].mxu1 }
 0x101   :  { %v432_v59 = vadd.f32 %v523_v53, %v738_v35  ;;  %v440_v60 = vadd.f32 %v547_v54, %v738_v35  ;;  %v526_v61 = vadd.f32 %v525_v57, %v524_v55  ;;  %v550_v62 = vadd.f32 %v549_v58, %v548_v56 }
 0x103   :  { %448 = vst [vmem:[%s807_s3 + $0x10] sm:$0xff] %v432_v59  ;;  %456 = vst [vmem:[%s807_s3 + $0x50] sm:$0xff] %v440_v60  ;;  %v433_v63 = vadd.f32 %v526_v61, %v738_v35  ;;  %v441_v0 = vadd.f32 %v550_v62, %v738_v35 }
 0x105   :  { %449 = vst [vmem:[%s807_s3 + $0x18] sm:$0xff] %v433_v63  ;;  %457 = vst [vmem:[%s807_s3 + $0x58] sm:$0xff] %v441_v0  ;;  %v527_v1 = vpop.f32.mrb[8].mxu0  ;;  %v551_v2 = vpop.f32.mrb[8].mxu1 }
 0x106   :  { %v528_v3 = vpop.f32.mrb[9].mxu0  ;;  %v552_v4 = vpop.f32.mrb[9].mxu1 }
 0x107   :  { %v529_v5 = vadd.f32 %v528_v3, %v527_v1  ;;  %v553_v6 = vadd.f32 %v552_v4, %v551_v2  ;;  %v530_v7 = vpop.f32.mrb[10].mxu0  ;;  %v554_v8 = vpop.f32.mrb[10].mxu1 }
 0x108   :  { %v531_v9 = vpop.f32.mrb[11].mxu0  ;;  %v555_v10 = vpop.f32.mrb[11].mxu1 }
 0x109   :  { %v434_v11 = vadd.f32 %v529_v5, %v738_v35  ;;  %v442_v12 = vadd.f32 %v553_v6, %v738_v35  ;;  %v532_v13 = vadd.f32 %v531_v9, %v530_v7  ;;  %v556_v14 = vadd.f32 %v555_v10, %v554_v8 }
 0x10b   :  { %450 = vst [vmem:[%s807_s3 + $0x20] sm:$0xff] %v434_v11  ;;  %458 = vst [vmem:[%s807_s3 + $0x60] sm:$0xff] %v442_v12  ;;  %v435_v15 = vadd.f32 %v532_v13, %v738_v35  ;;  %v443_v16 = vadd.f32 %v556_v14, %v738_v35 }
 0x10d   :  { %451 = vst [vmem:[%s807_s3 + $0x28] sm:$0xff] %v435_v15  ;;  %459 = vst [vmem:[%s807_s3 + $0x68] sm:$0xff] %v443_v16  ;;  %v533_v17 = vpop.f32.mrb[12].mxu0  ;;  %v557_v18 = vpop.f32.mrb[12].mxu1 }
 0x10e   :  { %v534_v19 = vpop.f32.mrb[13].mxu0  ;;  %v558_v20 = vpop.f32.mrb[13].mxu1 }
 0x10f   :  { %v535_v21 = vadd.f32 %v534_v19, %v533_v17  ;;  %v559_v22 = vadd.f32 %v558_v20, %v557_v18  ;;  %v536_v23 = vpop.f32.mrb[14].mxu0  ;;  %v560_v24 = vpop.f32.mrb[14].mxu1 }
 0x110   :  { %v537_v25 = vpop.f32.mrb[15].mxu0  ;;  %v561_v26 = vpop.f32.mrb[15].mxu1 }
 0x111   :  { %v436_v27 = vadd.f32 %v535_v21, %v738_v35  ;;  %v444_v28 = vadd.f32 %v559_v22, %v738_v35  ;;  %v538_v29 = vadd.f32 %v537_v25, %v536_v23  ;;  %v562_v30 = vadd.f32 %v561_v26, %v560_v24 }
 0x113   :  { %452 = vst [vmem:[%s807_s3 + $0x30] sm:$0xff] %v436_v27  ;;  %460 = vst [vmem:[%s807_s3 + $0x70] sm:$0xff] %v444_v28  ;;  %v437_v31 = vadd.f32 %v538_v29, %v738_v35  ;;  %v445_v32 = vadd.f32 %v562_v30, %v738_v35 }
 0x115   :  { %453 = vst [vmem:[%s807_s3 + $0x38] sm:$0xff] %v437_v31  ;;  %461 = vst [vmem:[%s807_s3 + $0x78] sm:$0xff] %v445_v32 }

</bundles_post_ra>
